<compile_context>
chip_gen: v7x
topology: tpu7x:2x2x1
jax: 0.10.0
libtpu: 0.0.40
codegen_flags: <defaults>
</compile_context>

<pallas_src>
import functools
import math

import jax
import jax.numpy as jnp
from jax.experimental import pallas as pl
from jax.experimental.pallas import tpu as pltpu

LANES = 128      # TPU lane width: final output channels padded to this
ROW_TILE = 128   # N*7*7 rows padded up to one MXU-friendly tile


# ----------------------------- Pallas kernel -------------------------------

def _decoder_kernel(*refs):
    """Whole decoder at 7x7 resolution: 15 chained 1x1-conv matmuls.

    refs = (x, w1, b1, w2, b2, ..., w15, b15, out).
    Per block: conv->ReLU, conv->ReLU, conv (no ReLU; the nearest-2x upsample
    that sits before the 3rd conv commutes with every later pointwise op, so
    it is applied once, outside the kernel)."""
    x_ref = refs[0]
    out_ref = refs[-1]
    wb = refs[1:-1]
    n_convs = len(wb) // 2

    h = x_ref[...]                                   # bf16 (ROWS_P, Cin)
    acc = None
    for c in range(n_convs):                         # unrolled at trace time
        w = wb[2 * c][...]                           # bf16 (cin, cout)
        b = wb[2 * c + 1][...]                       # f32  (1, cout)
        acc = jnp.dot(h, w, preferred_element_type=jnp.float32) + b
        if c % 3 != 2:                               # convs 1 & 2 of each block
            acc = jnp.maximum(acc, 0.0)
        h = acc.astype(jnp.bfloat16)                 # next MXU matmul in bf16
    out_ref[...] = acc.astype(out_ref.dtype)         # lane-padded (ROWS_P, 128)


def decoder_pallas(x2d, flat_wb, rows_p):
    """One fused pallas_call over the padded (rows_p, Cin) base pixels."""
    in_arrays = (x2d,) + tuple(flat_wb)
    in_specs = [pl.BlockSpec(a.shape, lambda i: (0, 0)) for a in in_arrays]
    return pl.pallas_call(
        _decoder_kernel,
        out_shape=jax.ShapeDtypeStruct((rows_p, LANES), jnp.float32),
        grid_spec=pltpu.PrefetchScalarGridSpec(
            num_scalar_prefetch=0,
            grid=(1,),
            in_specs=in_specs,
            out_specs=pl.BlockSpec((rows_p, LANES), lambda i: (0, 0))),
        compiler_params=pltpu.CompilerParams(
            dimension_semantics=("arbitrary",),
            vmem_limit_bytes=32 * 1024 * 1024),
    )(*in_arrays)


# ------------------------------- JAX glue ----------------------------------

def resnet_forward(features, params, in_ftrs, output_dim):
    # TODO(synk): the pretrained torchvision resnet50 backbone (self.init_model)
    # requires downloaded weights and is not reimplemented; `features` is its
    # flattened (N, in_ftrs*7*7) output (avgpool/fc replaced by Identity).
    N = features.shape[0]
    H = W = 7
    x = features.reshape(N, in_ftrs, H, W)              # x.view(-1, in_ftrs, 7, 7)
    x = jnp.transpose(x, (0, 2, 3, 1)).reshape(N * H * W, in_ftrs)  # channels on lanes

    rows = N * H * W
    rows_p = ((rows + ROW_TILE - 1) // ROW_TILE) * ROW_TILE
    if rows_p != rows:
        x = jnp.pad(x, ((0, rows_p - rows), (0, 0)))     # tiny one-time pad
    x = x.astype(jnp.bfloat16)                           # halve input DMA bytes

    flat_wb = []
    for name in ("up1", "up2", "up3", "up4", "up5"):
        blk = params[name]
        for j in (1, 2, 3):
            flat_wb += [blk[f"w{j}"], blk[f"b{j}"]]

    out = decoder_pallas(x, flat_wb, rows_p)             # (rows_p, 128) f32
    y = out[:rows, :output_dim].reshape(N, H, W, output_dim)

    # Single 32x nearest-neighbour upsample: each block's 2x nearest upsample
    # commutes with every following 1x1 conv, so 5 x (2x) collapses to one
    # broadcast of the 7x7 result (exact for mode='nearest').
    S = 2 ** 5
    y = jnp.broadcast_to(y[:, :, None, :, None, :], (N, H, S, W, S, output_dim))
    y = y.reshape(N, H * S, W * S, output_dim)
    return jnp.transpose(y, (0, 3, 1, 2))                # NCHW (N, out, 224, 224)


# ------------------------------ parameters ---------------------------------

def _conv1x1_params(key, cin, cout, pad_out=None):
    """PyTorch Conv2d default init (kaiming_uniform a=sqrt(5), fan_in=cin),
    stored in matmul layout: W (cin, cout) bf16, b (1, cout) f32.  The final
    conv is zero-padded along cout to `pad_out` lanes for lane-dense stores."""
    kw, kb = jax.random.split(key)
    bound = 1.0 / math.sqrt(cin)
    w = jax.random.uniform(kw, (cin, cout), jnp.float32, -bound, bound)
    b = jax.random.uniform(kb, (1, cout), jnp.float32, -bound, bound)
    if pad_out is not None and pad_out > cout:
        w = jnp.pad(w, ((0, 0), (0, pad_out - cout)))
        b = jnp.pad(b, ((0, 0), (0, pad_out - cout)))
    return w.astype(jnp.bfloat16), b


def init_params(key, in_ftrs=256, output_dim=3):
    dims = [
        (in_ftrs,        in_ftrs // 2,  in_ftrs // 2),
        (in_ftrs // 2,   in_ftrs // 4,  in_ftrs // 4),
        (in_ftrs // 4,   in_ftrs // 8,  in_ftrs // 8),
        (in_ftrs // 8,   in_ftrs // 32, in_ftrs // 32),
        (in_ftrs // 32,  in_ftrs // 64, output_dim),
    ]
    params = {}
    keys = jax.random.split(key, len(dims))
    last = len(dims)
    for i, ((cin, cmid, cout), k) in enumerate(zip(dims, keys), start=1):
        k1, k2, k3 = jax.random.split(k, 3)
        w1, b1 = _conv1x1_params(k1, cin, cmid)                    # Conv2d(cin, cmid, 1)
        w2, b2 = _conv1x1_params(k2, cmid, cout)                   # Conv2d(cmid, cout, 1)
        w3, b3 = _conv1x1_params(k3, cout, cout,                   # Conv2d(cout, cout, 1)
                                 pad_out=LANES if i == last else None)
        params[f"up{i}"] = {"w1": w1, "b1": b1, "w2": w2, "b2": b2,
                            "w3": w3, "b3": b3}
    return params


# --------------------------------- demo -------------------------------------

if __name__ == "__main__":
    key = jax.random.PRNGKey(0)
    kx, kp = jax.random.split(key)

    batch = 2
    in_ftrs = 256          # scaled down from resnet50's 2048 for a small demo
    output_dim = 3

    # backbone feature output: (N, in_ftrs * 7 * 7)
    features = jax.random.normal(kx, (batch, in_ftrs * 7 * 7), jnp.float32)
    params = init_params(kp, in_ftrs=in_ftrs, output_dim=output_dim)

    fwd = jax.jit(functools.partial(resnet_forward, in_ftrs=in_ftrs,
                                    output_dim=output_dim))
    out = jax.block_until_ready(fwd(features, params))

    assert out.shape == (batch, output_dim, 7 * 32, 7 * 32), out.shape  # (2, 3, 224, 224)
    assert bool(jnp.all(jnp.isfinite(out)))
    print("KERNEL_OK")
</pallas_src>

<mosaic_0001>
module attributes {stable_mosaic.version = 11 : i64} {
  func.func @_decoder_kernel(%arg0: i32, %arg1: memref<128x256xbf16, #tpu.memory_space<vmem>>, %arg2: memref<256x128xbf16, #tpu.memory_space<vmem>>, %arg3: memref<1x128xf32, #tpu.memory_space<vmem>>, %arg4: memref<128x128xbf16, #tpu.memory_space<vmem>>, %arg5: memref<1x128xf32, #tpu.memory_space<vmem>>, %arg6: memref<128x128xbf16, #tpu.memory_space<vmem>>, %arg7: memref<1x128xf32, #tpu.memory_space<vmem>>, %arg8: memref<128x64xbf16, #tpu.memory_space<vmem>>, %arg9: memref<1x64xf32, #tpu.memory_space<vmem>>, %arg10: memref<64x64xbf16, #tpu.memory_space<vmem>>, %arg11: memref<1x64xf32, #tpu.memory_space<vmem>>, %arg12: memref<64x64xbf16, #tpu.memory_space<vmem>>, %arg13: memref<1x64xf32, #tpu.memory_space<vmem>>, %arg14: memref<64x32xbf16, #tpu.memory_space<vmem>>, %arg15: memref<1x32xf32, #tpu.memory_space<vmem>>, %arg16: memref<32x32xbf16, #tpu.memory_space<vmem>>, %arg17: memref<1x32xf32, #tpu.memory_space<vmem>>, %arg18: memref<32x32xbf16, #tpu.memory_space<vmem>>, %arg19: memref<1x32xf32, #tpu.memory_space<vmem>>, %arg20: memref<32x8xbf16, #tpu.memory_space<vmem>>, %arg21: memref<1x8xf32, #tpu.memory_space<vmem>>, %arg22: memref<8x8xbf16, #tpu.memory_space<vmem>>, %arg23: memref<1x8xf32, #tpu.memory_space<vmem>>, %arg24: memref<8x8xbf16, #tpu.memory_space<vmem>>, %arg25: memref<1x8xf32, #tpu.memory_space<vmem>>, %arg26: memref<8x4xbf16, #tpu.memory_space<vmem>>, %arg27: memref<1x4xf32, #tpu.memory_space<vmem>>, %arg28: memref<4x3xbf16, #tpu.memory_space<vmem>>, %arg29: memref<1x3xf32, #tpu.memory_space<vmem>>, %arg30: memref<3x128xbf16, #tpu.memory_space<vmem>>, %arg31: memref<1x128xf32, #tpu.memory_space<vmem>>, %arg32: memref<128x128xf32, #tpu.memory_space<vmem>>) attributes {dimension_semantics = [#tpu.dimension_semantics<arbitrary>], iteration_bounds = array<i64: 1>, scalar_prefetch = 0 : i64, scratch_operands = 0 : i64, tpu.core_type = #tpu.core_type<tc>, window_params = [{pipeline_mode = #tpu.pipeline_mode<synchronous>, transform_indices = @transform_0, window_bounds = array<i64: 128, 256>}, {pipeline_mode = #tpu.pipeline_mode<synchronous>, transform_indices = @transform_1, window_bounds = array<i64: 256, 128>}, {pipeline_mode = #tpu.pipeline_mode<synchronous>, transform_indices = @transform_2, window_bounds = array<i64: 1, 128>}, {pipeline_mode = #tpu.pipeline_mode<synchronous>, transform_indices = @transform_3, window_bounds = array<i64: 128, 128>}, {pipeline_mode = #tpu.pipeline_mode<synchronous>, transform_indices = @transform_4, window_bounds = array<i64: 1, 128>}, {pipeline_mode = #tpu.pipeline_mode<synchronous>, transform_indices = @transform_5, window_bounds = array<i64: 128, 128>}, {pipeline_mode = #tpu.pipeline_mode<synchronous>, transform_indices = @transform_6, window_bounds = array<i64: 1, 128>}, {pipeline_mode = #tpu.pipeline_mode<synchronous>, transform_indices = @transform_7, window_bounds = array<i64: 128, 64>}, {pipeline_mode = #tpu.pipeline_mode<synchronous>, transform_indices = @transform_8, window_bounds = array<i64: 1, 64>}, {pipeline_mode = #tpu.pipeline_mode<synchronous>, transform_indices = @transform_9, window_bounds = array<i64: 64, 64>}, {pipeline_mode = #tpu.pipeline_mode<synchronous>, transform_indices = @transform_10, window_bounds = array<i64: 1, 64>}, {pipeline_mode = #tpu.pipeline_mode<synchronous>, transform_indices = @transform_11, window_bounds = array<i64: 64, 64>}, {pipeline_mode = #tpu.pipeline_mode<synchronous>, transform_indices = @transform_12, window_bounds = array<i64: 1, 64>}, {pipeline_mode = #tpu.pipeline_mode<synchronous>, transform_indices = @transform_13, window_bounds = array<i64: 64, 32>}, {pipeline_mode = #tpu.pipeline_mode<synchronous>, transform_indices = @transform_14, window_bounds = array<i64: 1, 32>}, {pipeline_mode = #tpu.pipeline_mode<synchronous>, transform_indices = @transform_15, window_bounds = array<i64: 32, 32>}, {pipeline_mode = #tpu.pipeline_mode<synchronous>, transform_indices = @transform_16, window_bounds = array<i64: 1, 32>}, {pipeline_mode = #tpu.pipeline_mode<synchronous>, transform_indices = @transform_17, window_bounds = array<i64: 32, 32>}, {pipeline_mode = #tpu.pipeline_mode<synchronous>, transform_indices = @transform_18, window_bounds = array<i64: 1, 32>}, {pipeline_mode = #tpu.pipeline_mode<synchronous>, transform_indices = @transform_19, window_bounds = array<i64: 32, 8>}, {pipeline_mode = #tpu.pipeline_mode<synchronous>, transform_indices = @transform_20, window_bounds = array<i64: 1, 8>}, {pipeline_mode = #tpu.pipeline_mode<synchronous>, transform_indices = @transform_21, window_bounds = array<i64: 8, 8>}, {pipeline_mode = #tpu.pipeline_mode<synchronous>, transform_indices = @transform_22, window_bounds = array<i64: 1, 8>}, {pipeline_mode = #tpu.pipeline_mode<synchronous>, transform_indices = @transform_23, window_bounds = array<i64: 8, 8>}, {pipeline_mode = #tpu.pipeline_mode<synchronous>, transform_indices = @transform_24, window_bounds = array<i64: 1, 8>}, {pipeline_mode = #tpu.pipeline_mode<synchronous>, transform_indices = @transform_25, window_bounds = array<i64: 8, 4>}, {pipeline_mode = #tpu.pipeline_mode<synchronous>, transform_indices = @transform_26, window_bounds = array<i64: 1, 4>}, {pipeline_mode = #tpu.pipeline_mode<synchronous>, transform_indices = @transform_27, window_bounds = array<i64: 4, 3>}, {pipeline_mode = #tpu.pipeline_mode<synchronous>, transform_indices = @transform_28, window_bounds = array<i64: 1, 3>}, {pipeline_mode = #tpu.pipeline_mode<synchronous>, transform_indices = @transform_29, window_bounds = array<i64: 3, 128>}, {pipeline_mode = #tpu.pipeline_mode<synchronous>, transform_indices = @transform_30, window_bounds = array<i64: 1, 128>}, {pipeline_mode = #tpu.pipeline_mode<synchronous>, transform_indices = @transform_31, window_bounds = array<i64: 128, 128>}]} {
    %c0 = arith.constant 0 : index
    %c0_0 = arith.constant 0 : index
    %0 = vector.load %arg1[%c0, %c0_0] : memref<128x256xbf16, #tpu.memory_space<vmem>>, vector<128x256xbf16>
    %c0_1 = arith.constant 0 : index
    %c0_2 = arith.constant 0 : index
    %1 = vector.load %arg2[%c0_1, %c0_2] : memref<256x128xbf16, #tpu.memory_space<vmem>>, vector<256x128xbf16>
    %c0_3 = arith.constant 0 : index
    %c0_4 = arith.constant 0 : index
    %2 = vector.load %arg3[%c0_3, %c0_4] : memref<1x128xf32, #tpu.memory_space<vmem>>, vector<1x128xf32>
    %cst = arith.constant dense<0.000000e+00> : vector<128x128xf32>
    %3 = tpu.matmul %0, %1, %cst {dimension_numbers = #tpu.dot_dimension_numbers<[1], [0], [0], [1], [0, 0, 1, 1], [], []>} : vector<128x256xbf16>, vector<256x128xbf16>, vector<128x128xf32> -> vector<128x128xf32>
    %4 = vector.broadcast %2 : vector<1x128xf32> to vector<128x128xf32>
    %5 = arith.addf %3, %4 : vector<128x128xf32>
    %cst_5 = arith.constant 0.000000e+00 : f32
    %6 = vector.broadcast %cst_5 : f32 to vector<128x128xf32>
    %7 = arith.maximumf %5, %6 : vector<128x128xf32>
    %8 = arith.truncf %7 : vector<128x128xf32> to vector<128x128xbf16>
    %c0_6 = arith.constant 0 : index
    %c0_7 = arith.constant 0 : index
    %9 = vector.load %arg4[%c0_6, %c0_7] : memref<128x128xbf16, #tpu.memory_space<vmem>>, vector<128x128xbf16>
    %c0_8 = arith.constant 0 : index
    %c0_9 = arith.constant 0 : index
    %10 = vector.load %arg5[%c0_8, %c0_9] : memref<1x128xf32, #tpu.memory_space<vmem>>, vector<1x128xf32>
    %cst_10 = arith.constant dense<0.000000e+00> : vector<128x128xf32>
    %11 = tpu.matmul %8, %9, %cst_10 {dimension_numbers = #tpu.dot_dimension_numbers<[1], [0], [0], [1], [0, 0, 1, 1], [], []>} : vector<128x128xbf16>, vector<128x128xbf16>, vector<128x128xf32> -> vector<128x128xf32>
    %12 = vector.broadcast %10 : vector<1x128xf32> to vector<128x128xf32>
    %13 = arith.addf %11, %12 : vector<128x128xf32>
    %cst_11 = arith.constant 0.000000e+00 : f32
    %14 = vector.broadcast %cst_11 : f32 to vector<128x128xf32>
    %15 = arith.maximumf %13, %14 : vector<128x128xf32>
    %16 = arith.truncf %15 : vector<128x128xf32> to vector<128x128xbf16>
    %c0_12 = arith.constant 0 : index
    %c0_13 = arith.constant 0 : index
    %17 = vector.load %arg6[%c0_12, %c0_13] : memref<128x128xbf16, #tpu.memory_space<vmem>>, vector<128x128xbf16>
    %c0_14 = arith.constant 0 : index
    %c0_15 = arith.constant 0 : index
    %18 = vector.load %arg7[%c0_14, %c0_15] : memref<1x128xf32, #tpu.memory_space<vmem>>, vector<1x128xf32>
    %cst_16 = arith.constant dense<0.000000e+00> : vector<128x128xf32>
    %19 = tpu.matmul %16, %17, %cst_16 {dimension_numbers = #tpu.dot_dimension_numbers<[1], [0], [0], [1], [0, 0, 1, 1], [], []>} : vector<128x128xbf16>, vector<128x128xbf16>, vector<128x128xf32> -> vector<128x128xf32>
    %20 = vector.broadcast %18 : vector<1x128xf32> to vector<128x128xf32>
    %21 = arith.addf %19, %20 : vector<128x128xf32>
    %22 = arith.truncf %21 : vector<128x128xf32> to vector<128x128xbf16>
    %c0_17 = arith.constant 0 : index
    %c0_18 = arith.constant 0 : index
    %23 = vector.load %arg8[%c0_17, %c0_18] : memref<128x64xbf16, #tpu.memory_space<vmem>>, vector<128x64xbf16>
    %c0_19 = arith.constant 0 : index
    %c0_20 = arith.constant 0 : index
    %24 = vector.load %arg9[%c0_19, %c0_20] : memref<1x64xf32, #tpu.memory_space<vmem>>, vector<1x64xf32>
    %cst_21 = arith.constant dense<0.000000e+00> : vector<128x64xf32>
    %25 = tpu.matmul %22, %23, %cst_21 {dimension_numbers = #tpu.dot_dimension_numbers<[1], [0], [0], [1], [0, 0, 1, 1], [], []>} : vector<128x128xbf16>, vector<128x64xbf16>, vector<128x64xf32> -> vector<128x64xf32>
    %26 = vector.broadcast %24 : vector<1x64xf32> to vector<128x64xf32>
    %27 = arith.addf %25, %26 : vector<128x64xf32>
    %cst_22 = arith.constant 0.000000e+00 : f32
    %28 = vector.broadcast %cst_22 : f32 to vector<128x64xf32>
    %29 = arith.maximumf %27, %28 : vector<128x64xf32>
    %30 = arith.truncf %29 : vector<128x64xf32> to vector<128x64xbf16>
    %c0_23 = arith.constant 0 : index
    %c0_24 = arith.constant 0 : index
    %31 = vector.load %arg10[%c0_23, %c0_24] : memref<64x64xbf16, #tpu.memory_space<vmem>>, vector<64x64xbf16>
    %c0_25 = arith.constant 0 : index
    %c0_26 = arith.constant 0 : index
    %32 = vector.load %arg11[%c0_25, %c0_26] : memref<1x64xf32, #tpu.memory_space<vmem>>, vector<1x64xf32>
    %cst_27 = arith.constant dense<0.000000e+00> : vector<128x64xf32>
    %33 = tpu.matmul %30, %31, %cst_27 {dimension_numbers = #tpu.dot_dimension_numbers<[1], [0], [0], [1], [0, 0, 1, 1], [], []>} : vector<128x64xbf16>, vector<64x64xbf16>, vector<128x64xf32> -> vector<128x64xf32>
    %34 = vector.broadcast %32 : vector<1x64xf32> to vector<128x64xf32>
    %35 = arith.addf %33, %34 : vector<128x64xf32>
    %cst_28 = arith.constant 0.000000e+00 : f32
    %36 = vector.broadcast %cst_28 : f32 to vector<128x64xf32>
    %37 = arith.maximumf %35, %36 : vector<128x64xf32>
    %38 = arith.truncf %37 : vector<128x64xf32> to vector<128x64xbf16>
    %c0_29 = arith.constant 0 : index
    %c0_30 = arith.constant 0 : index
    %39 = vector.load %arg12[%c0_29, %c0_30] : memref<64x64xbf16, #tpu.memory_space<vmem>>, vector<64x64xbf16>
    %c0_31 = arith.constant 0 : index
    %c0_32 = arith.constant 0 : index
    %40 = vector.load %arg13[%c0_31, %c0_32] : memref<1x64xf32, #tpu.memory_space<vmem>>, vector<1x64xf32>
    %cst_33 = arith.constant dense<0.000000e+00> : vector<128x64xf32>
    %41 = tpu.matmul %38, %39, %cst_33 {dimension_numbers = #tpu.dot_dimension_numbers<[1], [0], [0], [1], [0, 0, 1, 1], [], []>} : vector<128x64xbf16>, vector<64x64xbf16>, vector<128x64xf32> -> vector<128x64xf32>
    %42 = vector.broadcast %40 : vector<1x64xf32> to vector<128x64xf32>
    %43 = arith.addf %41, %42 : vector<128x64xf32>
    %44 = arith.truncf %43 : vector<128x64xf32> to vector<128x64xbf16>
    %c0_34 = arith.constant 0 : index
    %c0_35 = arith.constant 0 : index
    %45 = vector.load %arg14[%c0_34, %c0_35] : memref<64x32xbf16, #tpu.memory_space<vmem>>, vector<64x32xbf16>
    %c0_36 = arith.constant 0 : index
    %c0_37 = arith.constant 0 : index
    %46 = vector.load %arg15[%c0_36, %c0_37] : memref<1x32xf32, #tpu.memory_space<vmem>>, vector<1x32xf32>
    %cst_38 = arith.constant dense<0.000000e+00> : vector<128x32xf32>
    %47 = tpu.matmul %44, %45, %cst_38 {dimension_numbers = #tpu.dot_dimension_numbers<[1], [0], [0], [1], [0, 0, 1, 1], [], []>} : vector<128x64xbf16>, vector<64x32xbf16>, vector<128x32xf32> -> vector<128x32xf32>
    %48 = vector.broadcast %46 : vector<1x32xf32> to vector<128x32xf32>
    %49 = arith.addf %47, %48 : vector<128x32xf32>
    %cst_39 = arith.constant 0.000000e+00 : f32
    %50 = vector.broadcast %cst_39 : f32 to vector<128x32xf32>
    %51 = arith.maximumf %49, %50 : vector<128x32xf32>
    %52 = arith.truncf %51 : vector<128x32xf32> to vector<128x32xbf16>
    %c0_40 = arith.constant 0 : index
    %c0_41 = arith.constant 0 : index
    %53 = vector.load %arg16[%c0_40, %c0_41] : memref<32x32xbf16, #tpu.memory_space<vmem>>, vector<32x32xbf16>
    %c0_42 = arith.constant 0 : index
    %c0_43 = arith.constant 0 : index
    %54 = vector.load %arg17[%c0_42, %c0_43] : memref<1x32xf32, #tpu.memory_space<vmem>>, vector<1x32xf32>
    %cst_44 = arith.constant dense<0.000000e+00> : vector<128x32xf32>
    %55 = tpu.matmul %52, %53, %cst_44 {dimension_numbers = #tpu.dot_dimension_numbers<[1], [0], [0], [1], [0, 0, 1, 1], [], []>} : vector<128x32xbf16>, vector<32x32xbf16>, vector<128x32xf32> -> vector<128x32xf32>
    %56 = vector.broadcast %54 : vector<1x32xf32> to vector<128x32xf32>
    %57 = arith.addf %55, %56 : vector<128x32xf32>
    %cst_45 = arith.constant 0.000000e+00 : f32
    %58 = vector.broadcast %cst_45 : f32 to vector<128x32xf32>
    %59 = arith.maximumf %57, %58 : vector<128x32xf32>
    %60 = arith.truncf %59 : vector<128x32xf32> to vector<128x32xbf16>
    %c0_46 = arith.constant 0 : index
    %c0_47 = arith.constant 0 : index
    %61 = vector.load %arg18[%c0_46, %c0_47] : memref<32x32xbf16, #tpu.memory_space<vmem>>, vector<32x32xbf16>
    %c0_48 = arith.constant 0 : index
    %c0_49 = arith.constant 0 : index
    %62 = vector.load %arg19[%c0_48, %c0_49] : memref<1x32xf32, #tpu.memory_space<vmem>>, vector<1x32xf32>
    %cst_50 = arith.constant dense<0.000000e+00> : vector<128x32xf32>
    %63 = tpu.matmul %60, %61, %cst_50 {dimension_numbers = #tpu.dot_dimension_numbers<[1], [0], [0], [1], [0, 0, 1, 1], [], []>} : vector<128x32xbf16>, vector<32x32xbf16>, vector<128x32xf32> -> vector<128x32xf32>
    %64 = vector.broadcast %62 : vector<1x32xf32> to vector<128x32xf32>
    %65 = arith.addf %63, %64 : vector<128x32xf32>
    %66 = arith.truncf %65 : vector<128x32xf32> to vector<128x32xbf16>
    %c0_51 = arith.constant 0 : index
    %c0_52 = arith.constant 0 : index
    %67 = vector.load %arg20[%c0_51, %c0_52] : memref<32x8xbf16, #tpu.memory_space<vmem>>, vector<32x8xbf16>
    %c0_53 = arith.constant 0 : index
    %c0_54 = arith.constant 0 : index
    %68 = vector.load %arg21[%c0_53, %c0_54] : memref<1x8xf32, #tpu.memory_space<vmem>>, vector<1x8xf32>
    %cst_55 = arith.constant dense<0.000000e+00> : vector<128x8xf32>
    %69 = tpu.matmul %66, %67, %cst_55 {dimension_numbers = #tpu.dot_dimension_numbers<[1], [0], [0], [1], [0, 0, 1, 1], [], []>} : vector<128x32xbf16>, vector<32x8xbf16>, vector<128x8xf32> -> vector<128x8xf32>
    %70 = vector.broadcast %68 : vector<1x8xf32> to vector<128x8xf32>
    %71 = arith.addf %69, %70 : vector<128x8xf32>
    %cst_56 = arith.constant 0.000000e+00 : f32
    %72 = vector.broadcast %cst_56 : f32 to vector<128x8xf32>
    %73 = arith.maximumf %71, %72 : vector<128x8xf32>
    %74 = arith.truncf %73 : vector<128x8xf32> to vector<128x8xbf16>
    %c0_57 = arith.constant 0 : index
    %c0_58 = arith.constant 0 : index
    %75 = vector.load %arg22[%c0_57, %c0_58] : memref<8x8xbf16, #tpu.memory_space<vmem>>, vector<8x8xbf16>
    %c0_59 = arith.constant 0 : index
    %c0_60 = arith.constant 0 : index
    %76 = vector.load %arg23[%c0_59, %c0_60] : memref<1x8xf32, #tpu.memory_space<vmem>>, vector<1x8xf32>
    %cst_61 = arith.constant dense<0.000000e+00> : vector<128x8xf32>
    %77 = tpu.matmul %74, %75, %cst_61 {dimension_numbers = #tpu.dot_dimension_numbers<[1], [0], [0], [1], [0, 0, 1, 1], [], []>} : vector<128x8xbf16>, vector<8x8xbf16>, vector<128x8xf32> -> vector<128x8xf32>
    %78 = vector.broadcast %76 : vector<1x8xf32> to vector<128x8xf32>
    %79 = arith.addf %77, %78 : vector<128x8xf32>
    %cst_62 = arith.constant 0.000000e+00 : f32
    %80 = vector.broadcast %cst_62 : f32 to vector<128x8xf32>
    %81 = arith.maximumf %79, %80 : vector<128x8xf32>
    %82 = arith.truncf %81 : vector<128x8xf32> to vector<128x8xbf16>
    %c0_63 = arith.constant 0 : index
    %c0_64 = arith.constant 0 : index
    %83 = vector.load %arg24[%c0_63, %c0_64] : memref<8x8xbf16, #tpu.memory_space<vmem>>, vector<8x8xbf16>
    %c0_65 = arith.constant 0 : index
    %c0_66 = arith.constant 0 : index
    %84 = vector.load %arg25[%c0_65, %c0_66] : memref<1x8xf32, #tpu.memory_space<vmem>>, vector<1x8xf32>
    %cst_67 = arith.constant dense<0.000000e+00> : vector<128x8xf32>
    %85 = tpu.matmul %82, %83, %cst_67 {dimension_numbers = #tpu.dot_dimension_numbers<[1], [0], [0], [1], [0, 0, 1, 1], [], []>} : vector<128x8xbf16>, vector<8x8xbf16>, vector<128x8xf32> -> vector<128x8xf32>
    %86 = vector.broadcast %84 : vector<1x8xf32> to vector<128x8xf32>
    %87 = arith.addf %85, %86 : vector<128x8xf32>
    %88 = arith.truncf %87 : vector<128x8xf32> to vector<128x8xbf16>
    %c0_68 = arith.constant 0 : index
    %c0_69 = arith.constant 0 : index
    %89 = vector.load %arg26[%c0_68, %c0_69] : memref<8x4xbf16, #tpu.memory_space<vmem>>, vector<8x4xbf16>
    %c0_70 = arith.constant 0 : index
    %c0_71 = arith.constant 0 : index
    %90 = vector.load %arg27[%c0_70, %c0_71] : memref<1x4xf32, #tpu.memory_space<vmem>>, vector<1x4xf32>
    %cst_72 = arith.constant dense<0.000000e+00> : vector<128x4xf32>
    %91 = tpu.matmul %88, %89, %cst_72 {dimension_numbers = #tpu.dot_dimension_numbers<[1], [0], [0], [1], [0, 0, 1, 1], [], []>} : vector<128x8xbf16>, vector<8x4xbf16>, vector<128x4xf32> -> vector<128x4xf32>
    %92 = vector.broadcast %90 : vector<1x4xf32> to vector<128x4xf32>
    %93 = arith.addf %91, %92 : vector<128x4xf32>
    %cst_73 = arith.constant 0.000000e+00 : f32
    %94 = vector.broadcast %cst_73 : f32 to vector<128x4xf32>
    %95 = arith.maximumf %93, %94 : vector<128x4xf32>
    %96 = arith.truncf %95 : vector<128x4xf32> to vector<128x4xbf16>
    %c0_74 = arith.constant 0 : index
    %c0_75 = arith.constant 0 : index
    %97 = vector.load %arg28[%c0_74, %c0_75] : memref<4x3xbf16, #tpu.memory_space<vmem>>, vector<4x3xbf16>
    %c0_76 = arith.constant 0 : index
    %c0_77 = arith.constant 0 : index
    %98 = vector.load %arg29[%c0_76, %c0_77] : memref<1x3xf32, #tpu.memory_space<vmem>>, vector<1x3xf32>
    %cst_78 = arith.constant dense<0.000000e+00> : vector<128x3xf32>
    %99 = tpu.matmul %96, %97, %cst_78 {dimension_numbers = #tpu.dot_dimension_numbers<[1], [0], [0], [1], [0, 0, 1, 1], [], []>} : vector<128x4xbf16>, vector<4x3xbf16>, vector<128x3xf32> -> vector<128x3xf32>
    %100 = vector.broadcast %98 : vector<1x3xf32> to vector<128x3xf32>
    %101 = arith.addf %99, %100 : vector<128x3xf32>
    %cst_79 = arith.constant 0.000000e+00 : f32
    %102 = vector.broadcast %cst_79 : f32 to vector<128x3xf32>
    %103 = arith.maximumf %101, %102 : vector<128x3xf32>
    %104 = arith.truncf %103 : vector<128x3xf32> to vector<128x3xbf16>
    %c0_80 = arith.constant 0 : index
    %c0_81 = arith.constant 0 : index
    %105 = vector.load %arg30[%c0_80, %c0_81] : memref<3x128xbf16, #tpu.memory_space<vmem>>, vector<3x128xbf16>
    %c0_82 = arith.constant 0 : index
    %c0_83 = arith.constant 0 : index
    %106 = vector.load %arg31[%c0_82, %c0_83] : memref<1x128xf32, #tpu.memory_space<vmem>>, vector<1x128xf32>
    %cst_84 = arith.constant dense<0.000000e+00> : vector<128x128xf32>
    %107 = tpu.matmul %104, %105, %cst_84 {dimension_numbers = #tpu.dot_dimension_numbers<[1], [0], [0], [1], [0, 0, 1, 1], [], []>} : vector<128x3xbf16>, vector<3x128xbf16>, vector<128x128xf32> -> vector<128x128xf32>
    %108 = vector.broadcast %106 : vector<1x128xf32> to vector<128x128xf32>
    %109 = arith.addf %107, %108 : vector<128x128xf32>
    %c0_85 = arith.constant 0 : index
    %c0_86 = arith.constant 0 : index
    %110 = vector.load %arg32[%c0_85, %c0_86] : memref<128x128xf32, #tpu.memory_space<vmem>>, vector<128x128xf32>
    tpu.vector_store %arg32[%c0_85, %c0_86], %109 {strides = array<i32>} : memref<128x128xf32, #tpu.memory_space<vmem>>, vector<128x128xf32>,
    return
  }
  func.func @transform_0(%arg0: i32) -> (i32, i32) {
    %c0_i32 = arith.constant 0 : i32
    %c0_i32_0 = arith.constant 0 : i32
    %c0_i32_1 = arith.constant 0 : i32
    return %c0_i32, %c0_i32_0 : i32, i32
  }
  func.func @transform_1(%arg0: i32) -> (i32, i32) {
    %c0_i32 = arith.constant 0 : i32
    %c0_i32_0 = arith.constant 0 : i32
    %c0_i32_1 = arith.constant 0 : i32
    return %c0_i32, %c0_i32_0 : i32, i32
  }
  func.func @transform_2(%arg0: i32) -> (i32, i32) {
    %c0_i32 = arith.constant 0 : i32
    %c0_i32_0 = arith.constant 0 : i32
    %c0_i32_1 = arith.constant 0 : i32
    return %c0_i32, %c0_i32_0 : i32, i32
  }
  func.func @transform_3(%arg0: i32) -> (i32, i32) {
    %c0_i32 = arith.constant 0 : i32
    %c0_i32_0 = arith.constant 0 : i32
    %c0_i32_1 = arith.constant 0 : i32
    return %c0_i32, %c0_i32_0 : i32, i32
  }
  func.func @transform_4(%arg0: i32) -> (i32, i32) {
    %c0_i32 = arith.constant 0 : i32
    %c0_i32_0 = arith.constant 0 : i32
    %c0_i32_1 = arith.constant 0 : i32
    return %c0_i32, %c0_i32_0 : i32, i32
  }
  func.func @transform_5(%arg0: i32) -> (i32, i32) {
    %c0_i32 = arith.constant 0 : i32
    %c0_i32_0 = arith.constant 0 : i32
    %c0_i32_1 = arith.constant 0 : i32
    return %c0_i32, %c0_i32_0 : i32, i32
  }
  func.func @transform_6(%arg0: i32) -> (i32, i32) {
    %c0_i32 = arith.constant 0 : i32
    %c0_i32_0 = arith.constant 0 : i32
    %c0_i32_1 = arith.constant 0 : i32
    return %c0_i32, %c0_i32_0 : i32, i32
  }
  func.func @transform_7(%arg0: i32) -> (i32, i32) {
    %c0_i32 = arith.constant 0 : i32
    %c0_i32_0 = arith.constant 0 : i32
    %c0_i32_1 = arith.constant 0 : i32
    return %c0_i32, %c0_i32_0 : i32, i32
  }
  func.func @transform_8(%arg0: i32) -> (i32, i32) {
    %c0_i32 = arith.constant 0 : i32
    %c0_i32_0 = arith.constant 0 : i32
    %c0_i32_1 = arith.constant 0 : i32
    return %c0_i32, %c0_i32_0 : i32, i32
  }
  func.func @transform_9(%arg0: i32) -> (i32, i32) {
    %c0_i32 = arith.constant 0 : i32
    %c0_i32_0 = arith.constant 0 : i32
    %c0_i32_1 = arith.constant 0 : i32
    return %c0_i32, %c0_i32_0 : i32, i32
  }
  func.func @transform_10(%arg0: i32) -> (i32, i32) {
    %c0_i32 = arith.constant 0 : i32
    %c0_i32_0 = arith.constant 0 : i32
    %c0_i32_1 = arith.constant 0 : i32
    return %c0_i32, %c0_i32_0 : i32, i32
  }
  func.func @transform_11(%arg0: i32) -> (i32, i32) {
    %c0_i32 = arith.constant 0 : i32
    %c0_i32_0 = arith.constant 0 : i32
    %c0_i32_1 = arith.constant 0 : i32
    return %c0_i32, %c0_i32_0 : i32, i32
  }
  func.func @transform_12(%arg0: i32) -> (i32, i32) {
    %c0_i32 = arith.constant 0 : i32
    %c0_i32_0 = arith.constant 0 : i32
    %c0_i32_1 = arith.constant 0 : i32
    return %c0_i32, %c0_i32_0 : i32, i32
  }
  func.func @transform_13(%arg0: i32) -> (i32, i32) {
    %c0_i32 = arith.constant 0 : i32
    %c0_i32_0 = arith.constant 0 : i32
    %c0_i32_1 = arith.constant 0 : i32
    return %c0_i32, %c0_i32_0 : i32, i32
  }
  func.func @transform_14(%arg0: i32) -> (i32, i32) {
    %c0_i32 = arith.constant 0 : i32
    %c0_i32_0 = arith.constant 0 : i32
    %c0_i32_1 = arith.constant 0 : i32
    return %c0_i32, %c0_i32_0 : i32, i32
  }
  func.func @transform_15(%arg0: i32) -> (i32, i32) {
    %c0_i32 = arith.constant 0 : i32
    %c0_i32_0 = arith.constant 0 : i32
    %c0_i32_1 = arith.constant 0 : i32
    return %c0_i32, %c0_i32_0 : i32, i32
  }
  func.func @transform_16(%arg0: i32) -> (i32, i32) {
    %c0_i32 = arith.constant 0 : i32
    %c0_i32_0 = arith.constant 0 : i32
    %c0_i32_1 = arith.constant 0 : i32
    return %c0_i32, %c0_i32_0 : i32, i32
  }
  func.func @transform_17(%arg0: i32) -> (i32, i32) {
    %c0_i32 = arith.constant 0 : i32
    %c0_i32_0 = arith.constant 0 : i32
    %c0_i32_1 = arith.constant 0 : i32
    return %c0_i32, %c0_i32_0 : i32, i32
  }
  func.func @transform_18(%arg0: i32) -> (i32, i32) {
    %c0_i32 = arith.constant 0 : i32
    %c0_i32_0 = arith.constant 0 : i32
    %c0_i32_1 = arith.constant 0 : i32
    return %c0_i32, %c0_i32_0 : i32, i32
  }
  func.func @transform_19(%arg0: i32) -> (i32, i32) {
    %c0_i32 = arith.constant 0 : i32
    %c0_i32_0 = arith.constant 0 : i32
    %c0_i32_1 = arith.constant 0 : i32
    return %c0_i32, %c0_i32_0 : i32, i32
  }
  func.func @transform_20(%arg0: i32) -> (i32, i32) {
    %c0_i32 = arith.constant 0 : i32
    %c0_i32_0 = arith.constant 0 : i32
    %c0_i32_1 = arith.constant 0 : i32
    return %c0_i32, %c0_i32_0 : i32, i32
  }
  func.func @transform_21(%arg0: i32) -> (i32, i32) {
    %c0_i32 = arith.constant 0 : i32
    %c0_i32_0 = arith.constant 0 : i32
    %c0_i32_1 = arith.constant 0 : i32
    return %c0_i32, %c0_i32_0 : i32, i32
  }
  func.func @transform_22(%arg0: i32) -> (i32, i32) {
    %c0_i32 = arith.constant 0 : i32
    %c0_i32_0 = arith.constant 0 : i32
    %c0_i32_1 = arith.constant 0 : i32
    return %c0_i32, %c0_i32_0 : i32, i32
  }
  func.func @transform_23(%arg0: i32) -> (i32, i32) {
    %c0_i32 = arith.constant 0 : i32
    %c0_i32_0 = arith.constant 0 : i32
    %c0_i32_1 = arith.constant 0 : i32
    return %c0_i32, %c0_i32_0 : i32, i32
  }
  func.func @transform_24(%arg0: i32) -> (i32, i32) {
    %c0_i32 = arith.constant 0 : i32
    %c0_i32_0 = arith.constant 0 : i32
    %c0_i32_1 = arith.constant 0 : i32
    return %c0_i32, %c0_i32_0 : i32, i32
  }
  func.func @transform_25(%arg0: i32) -> (i32, i32) {
    %c0_i32 = arith.constant 0 : i32
    %c0_i32_0 = arith.constant 0 : i32
    %c0_i32_1 = arith.constant 0 : i32
    return %c0_i32, %c0_i32_0 : i32, i32
  }
  func.func @transform_26(%arg0: i32) -> (i32, i32) {
    %c0_i32 = arith.constant 0 : i32
    %c0_i32_0 = arith.constant 0 : i32
    %c0_i32_1 = arith.constant 0 : i32
    return %c0_i32, %c0_i32_0 : i32, i32
  }
  func.func @transform_27(%arg0: i32) -> (i32, i32) {
    %c0_i32 = arith.constant 0 : i32
    %c0_i32_0 = arith.constant 0 : i32
    %c0_i32_1 = arith.constant 0 : i32
    return %c0_i32, %c0_i32_0 : i32, i32
  }
  func.func @transform_28(%arg0: i32) -> (i32, i32) {
    %c0_i32 = arith.constant 0 : i32
    %c0_i32_0 = arith.constant 0 : i32
    %c0_i32_1 = arith.constant 0 : i32
    return %c0_i32, %c0_i32_0 : i32, i32
  }
  func.func @transform_29(%arg0: i32) -> (i32, i32) {
    %c0_i32 = arith.constant 0 : i32
    %c0_i32_0 = arith.constant 0 : i32
    %c0_i32_1 = arith.constant 0 : i32
    return %c0_i32, %c0_i32_0 : i32, i32
  }
  func.func @transform_30(%arg0: i32) -> (i32, i32) {
    %c0_i32 = arith.constant 0 : i32
    %c0_i32_0 = arith.constant 0 : i32
    %c0_i32_1 = arith.constant 0 : i32
    return %c0_i32, %c0_i32_0 : i32, i32
  }
  func.func @transform_31(%arg0: i32) -> (i32, i32) {
    %c0_i32 = arith.constant 0 : i32
    %c0_i32_0 = arith.constant 0 : i32
    %c0_i32_1 = arith.constant 0 : i32
    return %c0_i32, %c0_i32_0 : i32, i32
  }
}

</mosaic_0001>

<bundles_post_ra>
// kernel: resnet_forward.1
= control target key start
LH: loop header
LB: loop body
LE: loop exit
PB: predicated region body
PF: predicated region fallthrough
CT: control target
= control target key end

     0   :  { %s4660_s6 = smov 1   ;;  %s4661_s10 = smov 2   ;;  %s5172_s0 = inlined_call_operand.smem [shape: u32[32], index: -1, kind: input, shape index: {}] }
   0x1   :  { %s4728_s5 = sld [smem:[%s5172_s0]]   ;;  %s4662_s14 = smov 3  }
   0x2   :  { %s4733_s9 = sld [smem:[%s5172_s0 + %s4660_s6]]   ;;  %s4663_s18 = smov 4  }
   0x3   :  { %s4738_s13 = sld [smem:[%s5172_s0 + %s4661_s10]]   ;;  %s4664_s22 = smov 5  }
   0x4   :  { %s4743_s17 = sld [smem:[%s5172_s0 + %s4662_s14]]   ;;  %s4665_s26 = smov 6  }
   0x5   :  { %s4748_s21 = sld [smem:[%s5172_s0 + %s4663_s18]]   ;;  %s4666_s30 = smov 7  }
   0x6   :  { %s4753_s25 = sld [smem:[%s5172_s0 + %s4664_s22]]   ;;  %s4667_s4 = smov 8  }
   0x7   :  { %5186 = sst [smem:[#allocation56_spill]] %s4728_s5  ;;  %s4668_s10 = smov 9  }
   0x8   :  { %s4758_s29 = sld [smem:[%s5172_s0 + %s4665_s26]]   ;;  %s4669_s15 = smov 10  }
   0x9   :  { %s4763_s3 = sld [smem:[%s5172_s0 + %s4666_s30]]   ;;  %s4670_s20 = smov 11  }
   0xa   :  { %s4768_s8 = sld [smem:[%s5172_s0 + %s4667_s4]]   ;;  %s4671_s26 = smov 12  }
   0xb   :  { %s4773_s14 = sld [smem:[%s5172_s0 + %s4668_s10]]   ;;  %s4672_s1 = smov 13  }
   0xc   :  { %s4778_s19 = sld [smem:[%s5172_s0 + %s4669_s15]]   ;;  %s4673_s7 = smov 14  }
   0xd   :  { %s4783_s24 = sld [smem:[%s5172_s0 + %s4670_s20]]   ;;  %s4674_s15 = smov 15  }
   0xe   :  { %s4788_s30 = sld [smem:[%s5172_s0 + %s4671_s26]]   ;;  %s4675_s22 = smov 16  }
   0xf   :  { %5187 = sst [smem:[#allocation57_spill]] %s4763_s3  ;;  %s4676_s28 = smov 17  }
  0x10   :  { %5188 = sst [smem:[#allocation58_spill]] %s4768_s8 }
  0x11   :  { %s4793_s6 = sld [smem:[%s5172_s0 + %s4672_s1]]  }
  0x12   :  { %5189 = sst [smem:[#allocation59_spill]] %s4778_s19 }
  0x13   :  { %s4798_s12 = sld [smem:[%s5172_s0 + %s4673_s7]]   ;;  %s4677_s7 = smov 18  }
  0x14   :  { %5190 = sst [smem:[#allocation60_spill]] %s4788_s30 }
  0x15   :  { %s4803_s20 = sld [smem:[%s5172_s0 + %s4674_s15]]   ;;  %s4678_s15 = smov 19  }
  0x16   :  { %s4808_s27 = sld [smem:[%s5172_s0 + %s4675_s22]]   ;;  %s4679_s22 = smov 20  }
  0x17   :  { %5191 = sst [smem:[#allocation61_spill]] %s4793_s6 }
  0x18   :  { %s4813_s4 = sld [smem:[%s5172_s0 + %s4676_s28]]   ;;  %s4680_s28 = smov 21  }
  0x19   :  { %s4818_s6 = sld [smem:[%s5172_s0 + %s4677_s7]]   ;;  %s4681_s7 = smov 22  }
  0x1a   :  { %s4823_s3 = sld [smem:[%s5172_s0 + %s4678_s15]]   ;;  %s4682_s15 = smov 23  }
  0x1b   :  { %5192 = sst [smem:[#allocation62_spill]] %s4803_s20 }
  0x1c   :  { %s4828_s5 = sld [smem:[%s5172_s0 + %s4679_s22]]   ;;  %s4683_s22 = smov 24  }
  0x1d   :  { %s4838_s20 = sld [smem:[%s5172_s0 + %s4681_s7]]   ;;  %s4685_s7 = smov 26  }
  0x1e   :  { %5193 = sst [smem:[#allocation63_spill]] %s4813_s4 }
  0x1f   :  { %s4833_s4 = sld [smem:[%s5172_s0 + %s4680_s28]]   ;;  %s4684_s28 = smov 25  }
  0x20   :  { %5194 = sst [smem:[#allocation64_spill]] %s4823_s3 }
  0x21   :  { %s4843_s3 = sld [smem:[%s5172_s0 + %s4682_s15]]   ;;  %s4686_s15 = smov 27  }
  0x22   :  { %5195 = sst [smem:[#allocation65_spill]] %s4828_s5 }
  0x23   :  { %5196 = sst [smem:[#allocation66_spill]] %s4838_s20 }
  0x24   :  { %s4848_s5 = sld [smem:[%s5172_s0 + %s4683_s22]]   ;;  %s4687_s22 = smov 28  }
  0x25   :  { %s4853_s30 = sld [smem:[%s5172_s0 + %s4684_s28]]   ;;  %s4688_s28 = smov 29  }
  0x26   :  { %s4858_s20 = sld [smem:[%s5172_s0 + %s4685_s7]]   ;;  %s4689_s7 = smov 30  }
  0x27   :  { %s4863_s19 = sld [smem:[%s5172_s0 + %s4686_s15]]   ;;  %s4690_s15 = smov 31  }
  0x28   :  { %s4878_s8 = sld [smem:[%s5172_s0 + %s4689_s7]]  }
  0x2a   :  { %5197 = sst [smem:[#allocation67_spill]] %s4848_s5 }
  0x2b   :  { %5198 = sst [smem:[#allocation68_spill]] %s4853_s30 }
  0x2c   :  { %s4868_s5 = sld [smem:[%s5172_s0 + %s4687_s22]]  }
  0x2d   :  { %5199 = sst [smem:[#allocation69_spill]] %s4863_s19 }
  0x2e   :  { %s4873_s30 = sld [smem:[%s5172_s0 + %s4688_s28]]  }
  0x2f   :  { %s4883_s19 = sld [smem:[%s5172_s0 + %s4690_s15]]  }
  0x30   :  { %68 = vsyncpa [#allocation3], 0 }
  0x31   :  { %69 = vsyncpa [#allocation5], 0 }
  0x32   :  { %70 = vsyncpa [#allocation8], 0 }
  0x33   :  { %71 = vsyncpa [#allocation11], 0 }
  0x34   :  { %72 = vsyncpa [#allocation14], 0 }
  0x35   :  { %73 = vsyncpa [#allocation17], 0 }
  0x36   :  { %74 = vsyncpa [#allocation20], 0 }
  0x37   :  { %75 = vsyncpa [#allocation23], 0 }
  0x38   :  { %76 = vsyncpa [#allocation26], 0 }
  0x39   :  { %77 = vsyncpa [#allocation29], 0 }
  0x3a   :  { %78 = vsyncpa [#allocation32], 0 }
  0x3b   :  { %79 = vsyncpa [#allocation35], 0 }
  0x3c   :  { %80 = vsyncpa [#allocation38], 0 }
  0x3d   :  { %81 = vsyncpa [#allocation41], 0  ;;  %s4691_s22 = smov [#allocation4]   ;;  %s4692_s23 = smov [#allocation7]  }
  0x3e   :  { %s102_s0 = sshll.u32 %s4691_s22, 4  ;;  %s124_s26 = sshll.u32 %s4692_s23, 4  ;;  %s103_s0 = int_to_ptr.vmem [resolvable:$true] %s102_s0  ;;  %s125_s26 = int_to_ptr.vmem [resolvable:$true] %s124_s26 }
  0x3f   :  { %s4060_s28 = scalar_lea.hbm %s4738_s13, 16 }
  0x40   :  { %p4061_p0 = scmp.ne.s32.totalorder %s4738_s13, %s4060_s28  ;;  %p4064_p1 = scmp.lt.u32.totalorder %s4060_s28, %s4738_s13 }
  0x42   :  { %p4066_p2 = pnand %p4064_p1, %p4061_p0 }
  0x44   :  { %4069 = shalt.err (!%p4066_p2)
}
  0x45   :  { %s4070_s1 = scalar_lea.vmem %s103_s0, 16  ;;  %s4074_s2 = scalar_lea.vmem %s103_s0, 32 }
  0x46   :  { %p4071_p3 = scmp.ne.s32.totalorder %s103_s0, %s4070_s1  ;;  %p4075_p4 = scmp.lt.s32.totalorder %s103_s0, %s103_s0 }
  0x47   :  { %p4076_p5 = scmp.lt.s32.totalorder %s4074_s2, %s4070_s1 }
  0x49   :  { %p4077_p6 = por %p4076_p5, %p4075_p4 }
  0x4b   :  { %p4078_p7 = pnand %p4077_p6, %p4071_p3 }
  0x4d   :  { %4081 = shalt.err (!%p4078_p7)
}
  0x4e   :  { %105 = dma.hbm_to_vmem [thread:$0]  %s4738_s13, 16, %s103_s0, [#allocation5]  }
  0x4f   :  { %s4082_s7 = scalar_lea.hbm %s4748_s21, 16 }
  0x50   :  { %p4083_p8 = scmp.ne.s32.totalorder %s4748_s21, %s4082_s7  ;;  %p4086_p9 = scmp.lt.u32.totalorder %s4082_s7, %s4748_s21 }
  0x52   :  { %p4088_p10 = pnand %p4086_p9, %p4083_p8 }
  0x54   :  { %4091 = shalt.err (!%p4088_p10)
}
  0x55   :  { %s4092_s10 = scalar_lea.vmem %s125_s26, 16  ;;  %s4096_s11 = scalar_lea.vmem %s125_s26, 32 }
  0x56   :  { %p4093_p11 = scmp.ne.s32.totalorder %s125_s26, %s4092_s10  ;;  %p4097_p12 = scmp.lt.s32.totalorder %s125_s26, %s125_s26 }
  0x57   :  { %p4098_p13 = scmp.lt.s32.totalorder %s4096_s11, %s4092_s10 }
  0x59   :  { %p4099_p0 = por %p4098_p13, %p4097_p12 }
  0x5b   :  { %p4100_p1 = pnand %p4099_p0, %p4093_p11 }
  0x5d   :  { %4103 = shalt.err (!%p4100_p1)
}
  0x5e   :  { %127 = dma.hbm_to_vmem [thread:$0]  %s4748_s21, 16, %s125_s26, [#allocation8]  }
  0x5f   :  { %s4693_s15 = smov [#allocation10]   ;;  %s4104_s16 = scalar_lea.hbm %s4758_s29, 16 }
  0x60   :  { %s146_s13 = sshll.u32 %s4693_s15, 4  ;;  %p4105_p2 = scmp.ne.s32.totalorder %s4758_s29, %s4104_s16  ;;  %s147_s13 = int_to_ptr.vmem [resolvable:$true] %s146_s13 }
  0x61   :  { %p4108_p3 = scmp.lt.u32.totalorder %s4104_s16, %s4758_s29 }
  0x63   :  { %p4110_p4 = pnand %p4108_p3, %p4105_p2 }
  0x65   :  { %4113 = shalt.err (!%p4110_p4)
}
  0x66   :  { %s4114_s18 = scalar_lea.vmem %s147_s13, 16  ;;  %s4118_s22 = scalar_lea.vmem %s147_s13, 32 }
  0x67   :  { %p4115_p5 = scmp.ne.s32.totalorder %s147_s13, %s4114_s18  ;;  %p4119_p6 = scmp.lt.s32.totalorder %s147_s13, %s147_s13 }
  0x68   :  { %p4120_p7 = scmp.lt.s32.totalorder %s4118_s22, %s4114_s18 }
  0x6a   :  { %p4121_p8 = por %p4120_p7, %p4119_p6 }
  0x6c   :  { %p4122_p9 = pnand %p4121_p8, %p4115_p5 }
  0x6e   :  { %4125 = shalt.err (!%p4122_p9)
}
  0x6f   :  { %149 = dma.hbm_to_vmem [thread:$0]  %s4758_s29, 16, %s147_s13, [#allocation11]  }
  0x70   :  { %s4694_s21 = smov [#allocation13]   ;;  %s4695_s23 = smov [#allocation16]  }
  0x71   :  { %s167_s0 = sshll.u32 %s4694_s21, 4  ;;  %s189_s26 = sshll.u32 %s4695_s23, 4  ;;  %s168_s0 = int_to_ptr.vmem [resolvable:$true] %s167_s0  ;;  %s190_s26 = int_to_ptr.vmem [resolvable:$true] %s189_s26 }
  0x72   :  { %s4126_s28 = scalar_lea.hbm %s4773_s14, 512 }
  0x73   :  { %p4127_p10 = scmp.ne.s32.totalorder %s4773_s14, %s4126_s28  ;;  %p4130_p11 = scmp.lt.u32.totalorder %s4126_s28, %s4773_s14 }
  0x75   :  { %p4132_p12 = pnand %p4130_p11, %p4127_p10 }
  0x77   :  { %4135 = shalt.err (!%p4132_p12)
}
  0x78   :  { %s4136_s1 = scalar_lea.vmem %s168_s0, 512  ;;  %p4141_p0 = scmp.lt.s32.totalorder %s168_s0, %s168_s0 }
  0x79   :  { %p4137_p13 = scmp.ne.s32.totalorder %s168_s0, %s4136_s1  ;;  %p4142_p1 = scmp.lt.s32.totalorder %s4136_s1, %s4136_s1 }
  0x7b   :  { %p4143_p2 = por %p4142_p1, %p4141_p0 }
  0x7d   :  { %p4144_p3 = pnand %p4143_p2, %p4137_p13 }
  0x7f   :  { %4147 = shalt.err (!%p4144_p3)
}
  0x80   :  { %s4696_s2 = smov 64   ;;  %s4697_s29 = smov 4  }
  0x81   :  { %173 = dma.hbm_to_vmem [thread:$0]  %s4773_s14, 512, %s168_s0, [#allocation14], %s4696_s2, %s4696_s2, %s4697_s29  }
  0x82   :  { %s4148_s7 = scalar_lea.hbm %s4783_s24, 512 }
  0x83   :  { %p4149_p4 = scmp.ne.s32.totalorder %s4783_s24, %s4148_s7  ;;  %p4152_p5 = scmp.lt.u32.totalorder %s4148_s7, %s4783_s24 }
  0x85   :  { %p4154_p6 = pnand %p4152_p5, %p4149_p4 }
  0x87   :  { %4157 = shalt.err (!%p4154_p6)
}
  0x88   :  { %s4158_s10 = scalar_lea.vmem %s190_s26, 512  ;;  %p4163_p8 = scmp.lt.s32.totalorder %s190_s26, %s190_s26 }
  0x89   :  { %p4159_p7 = scmp.ne.s32.totalorder %s190_s26, %s4158_s10  ;;  %p4164_p9 = scmp.lt.s32.totalorder %s4158_s10, %s4158_s10 }
  0x8b   :  { %p4165_p10 = por %p4164_p9, %p4163_p8 }
  0x8d   :  { %p4166_p11 = pnand %p4165_p10, %p4159_p7 }
  0x8f   :  { %4169 = shalt.err (!%p4166_p11)
}
  0x90   :  { %195 = dma.hbm_to_vmem [thread:$0]  %s4783_s24, 512, %s190_s26, [#allocation17], %s4696_s2, %s4696_s2, %s4697_s29  }
  0x91   :  { %s4698_s14 = smov [#allocation19]   ;;  %s4699_s15 = smov [#allocation22]  }
  0x92   :  { %s214_s11 = sshll.u32 %s4698_s14, 4  ;;  %s236_s13 = sshll.u32 %s4699_s15, 4  ;;  %s215_s11 = int_to_ptr.vmem [resolvable:$true] %s214_s11  ;;  %s237_s13 = int_to_ptr.vmem [resolvable:$true] %s236_s13 }
  0x93   :  { %s4170_s16 = scalar_lea.hbm %s4798_s12, 16 }
  0x94   :  { %p4171_p12 = scmp.ne.s32.totalorder %s4798_s12, %s4170_s16  ;;  %p4174_p13 = scmp.lt.u32.totalorder %s4170_s16, %s4798_s12 }
  0x96   :  { %p4176_p0 = pnand %p4174_p13, %p4171_p12 }
  0x98   :  { %4179 = shalt.err (!%p4176_p0)
}
  0x99   :  { %s4180_s18 = scalar_lea.vmem %s215_s11, 16  ;;  %s4184_s22 = scalar_lea.vmem %s215_s11, 32 }
  0x9a   :  { %p4181_p1 = scmp.ne.s32.totalorder %s215_s11, %s4180_s18  ;;  %p4185_p2 = scmp.lt.s32.totalorder %s215_s11, %s215_s11 }
  0x9b   :  { %p4186_p3 = scmp.lt.s32.totalorder %s4184_s22, %s4180_s18 }
  0x9d   :  { %p4187_p4 = por %p4186_p3, %p4185_p2 }
  0x9f   :  { %p4188_p5 = pnand %p4187_p4, %p4181_p1 }
  0xa1   :  { %4191 = shalt.err (!%p4188_p5)
}
  0xa2   :  { %217 = dma.hbm_to_vmem [thread:$0]  %s4798_s12, 16, %s215_s11, [#allocation20]  }
  0xa3   :  { %s4192_s24 = scalar_lea.hbm %s4808_s27, 16 }
  0xa4   :  { %p4193_p6 = scmp.ne.s32.totalorder %s4808_s27, %s4192_s24  ;;  %p4196_p7 = scmp.lt.u32.totalorder %s4192_s24, %s4808_s27 }
  0xa6   :  { %p4198_p8 = pnand %p4196_p7, %p4193_p6 }
  0xa8   :  { %4201 = shalt.err (!%p4198_p8)
}
  0xa9   :  { %s4202_s21 = scalar_lea.vmem %s237_s13, 16  ;;  %s4206_s0 = scalar_lea.vmem %s237_s13, 32 }
  0xaa   :  { %p4203_p9 = scmp.ne.s32.totalorder %s237_s13, %s4202_s21  ;;  %p4207_p10 = scmp.lt.s32.totalorder %s237_s13, %s237_s13 }
  0xab   :  { %p4208_p11 = scmp.lt.s32.totalorder %s4206_s0, %s4202_s21 }
  0xad   :  { %p4209_p12 = por %p4208_p11, %p4207_p10 }
  0xaf   :  { %p4210_p13 = pnand %p4209_p12, %p4203_p9 }
  0xb1   :  { %4213 = shalt.err (!%p4210_p13)
}
  0xb2   :  { %239 = dma.hbm_to_vmem [thread:$0]  %s4808_s27, 16, %s237_s13, [#allocation23]  }
  0xb3   :  { %s4700_s12 = smov [#allocation25]   ;;  %s4701_s26 = smov [#allocation28]  }
  0xb4   :  { %s258_s23 = sshll.u32 %s4700_s12, 4  ;;  %s280_s28 = sshll.u32 %s4701_s26, 4  ;;  %s259_s23 = int_to_ptr.vmem [resolvable:$true] %s258_s23  ;;  %s281_s28 = int_to_ptr.vmem [resolvable:$true] %s280_s28 }
  0xb5   :  { %s4214_s1 = scalar_lea.hbm %s4818_s6, 16 }
  0xb6   :  { %p4215_p0 = scmp.ne.s32.totalorder %s4818_s6, %s4214_s1  ;;  %p4218_p1 = scmp.lt.u32.totalorder %s4214_s1, %s4818_s6 }
  0xb8   :  { %p4220_p2 = pnand %p4218_p1, %p4215_p0 }
  0xba   :  { %4223 = shalt.err (!%p4220_p2)
}
  0xbb   :  { %s4224_s7 = scalar_lea.vmem %s259_s23, 16  ;;  %s4228_s10 = scalar_lea.vmem %s259_s23, 32 }
  0xbc   :  { %p4225_p3 = scmp.ne.s32.totalorder %s259_s23, %s4224_s7  ;;  %p4229_p4 = scmp.lt.s32.totalorder %s259_s23, %s259_s23 }
  0xbd   :  { %p4230_p5 = scmp.lt.s32.totalorder %s4228_s10, %s4224_s7 }
  0xbf   :  { %p4231_p6 = por %p4230_p5, %p4229_p4 }
  0xc1   :  { %p4232_p7 = pnand %p4231_p6, %p4225_p3 }
  0xc3   :  { %4235 = shalt.err (!%p4232_p7)
}
  0xc4   :  { %261 = dma.hbm_to_vmem [thread:$0]  %s4818_s6, 16, %s259_s23, [#allocation26]  }
  0xc5   :  { %s4236_s27 = scalar_lea.hbm %s4833_s4, 64 }
  0xc6   :  { %p4237_p8 = scmp.ne.s32.totalorder %s4833_s4, %s4236_s27  ;;  %p4240_p9 = scmp.lt.u32.totalorder %s4236_s27, %s4833_s4 }
  0xc8   :  { %p4242_p10 = pnand %p4240_p9, %p4237_p8 }
  0xca   :  { %4245 = shalt.err (!%p4242_p10)
}
  0xcb   :  { %s4246_s14 = scalar_lea.vmem %s281_s28, 64  ;;  %p4251_p12 = scmp.lt.s32.totalorder %s281_s28, %s281_s28 }
  0xcc   :  { %p4247_p11 = scmp.ne.s32.totalorder %s281_s28, %s4246_s14  ;;  %p4252_p13 = scmp.lt.s32.totalorder %s4246_s14, %s4246_s14 }
  0xce   :  { %p4253_p0 = por %p4252_p13, %p4251_p12 }
  0xd0   :  { %p4254_p1 = pnand %p4253_p0, %p4247_p11 }
  0xd2   :  { %4257 = shalt.err (!%p4254_p1)
}
  0xd3   :  { %283 = dma.hbm_to_vmem [thread:$0]  %s4833_s4, 64, %s281_s28, [#allocation29]  }
  0xd4   :  { %s4702_s11 = smov [#allocation31]   ;;  %s4703_s15 = smov [#allocation34]  }
  0xd5   :  { %s300_s6 = sshll.u32 %s4702_s11, 4  ;;  %s322_s13 = sshll.u32 %s4703_s15, 4  ;;  %s301_s6 = int_to_ptr.vmem [resolvable:$true] %s300_s6  ;;  %s323_s13 = int_to_ptr.vmem [resolvable:$true] %s322_s13 }
  0xd6   :  { %s4258_s16 = scalar_lea.hbm %s4843_s3, 64 }
  0xd7   :  { %p4259_p2 = scmp.ne.s32.totalorder %s4843_s3, %s4258_s16  ;;  %p4262_p3 = scmp.lt.u32.totalorder %s4258_s16, %s4843_s3 }
  0xd9   :  { %p4264_p4 = pnand %p4262_p3, %p4259_p2 }
  0xdb   :  { %4267 = shalt.err (!%p4264_p4)
}
  0xdc   :  { %s4268_s18 = scalar_lea.vmem %s301_s6, 64  ;;  %p4273_p6 = scmp.lt.s32.totalorder %s301_s6, %s301_s6 }
  0xdd   :  { %p4269_p5 = scmp.ne.s32.totalorder %s301_s6, %s4268_s18  ;;  %p4274_p7 = scmp.lt.s32.totalorder %s4268_s18, %s4268_s18 }
  0xdf   :  { %p4275_p8 = por %p4274_p7, %p4273_p6 }
  0xe1   :  { %p4276_p9 = pnand %p4275_p8, %p4269_p5 }
  0xe3   :  { %4279 = shalt.err (!%p4276_p9)
}
  0xe4   :  { %303 = dma.hbm_to_vmem [thread:$0]  %s4843_s3, 64, %s301_s6, [#allocation32]  }
  0xe5   :  { %s4280_s4 = scalar_lea.hbm %s4858_s20, 16 }
  0xe6   :  { %p4281_p10 = scmp.ne.s32.totalorder %s4858_s20, %s4280_s4  ;;  %p4284_p11 = scmp.lt.u32.totalorder %s4280_s4, %s4858_s20 }
  0xe8   :  { %p4286_p12 = pnand %p4284_p11, %p4281_p10 }
  0xea   :  { %4289 = shalt.err (!%p4286_p12)
}
  0xeb   :  { %s4290_s22 = scalar_lea.vmem %s323_s13, 16  ;;  %s4294_s24 = scalar_lea.vmem %s323_s13, 32 }
  0xec   :  { %p4291_p13 = scmp.ne.s32.totalorder %s323_s13, %s4290_s22  ;;  %p4295_p0 = scmp.lt.s32.totalorder %s323_s13, %s323_s13 }
  0xed   :  { %p4296_p1 = scmp.lt.s32.totalorder %s4294_s24, %s4290_s22 }
  0xef   :  { %p4297_p2 = por %p4296_p1, %p4295_p0 }
  0xf1   :  { %p4298_p3 = pnand %p4297_p2, %p4291_p13 }
  0xf3   :  { %4301 = shalt.err (!%p4298_p3)
}
  0xf4   :  { %325 = dma.hbm_to_vmem [thread:$0]  %s4858_s20, 16, %s323_s13, [#allocation35]  }
  0xf5   :  { %s4704_s3 = smov [#allocation37]   ;;  %s4705_s0 = smov [#allocation2]  }
  0xf6   :  { %s342_s21 = sshll.u32 %s4704_s3, 4  ;;  %s89_s12 = sshll.u32 %s4705_s0, 4  ;;  %s343_s21 = int_to_ptr.vmem [resolvable:$true] %s342_s21  ;;  %s90_s12 = int_to_ptr.vmem [resolvable:$true] %s89_s12 }
  0xf7   :  { %s4302_s23 = scalar_lea.hbm %s4868_s5, 16 }
  0xf8   :  { %p4303_p4 = scmp.ne.s32.totalorder %s4868_s5, %s4302_s23  ;;  %p4306_p5 = scmp.lt.u32.totalorder %s4302_s23, %s4868_s5 }
  0xfa   :  { %p4308_p6 = pnand %p4306_p5, %p4303_p4 }
  0xfc   :  { %4311 = shalt.err (!%p4308_p6)
}
  0xfd   :  { %s4312_s26 = scalar_lea.vmem %s343_s21, 16  ;;  %s4316_s28 = scalar_lea.vmem %s343_s21, 32 }
  0xfe   :  { %p4313_p7 = scmp.ne.s32.totalorder %s343_s21, %s4312_s26  ;;  %p4317_p8 = scmp.lt.s32.totalorder %s343_s21, %s343_s21 }
  0xff   :  { %p4318_p9 = scmp.lt.s32.totalorder %s4316_s28, %s4312_s26 }
 0x101   :  { %p4319_p10 = por %p4318_p9, %p4317_p8 }
 0x103   :  { %p4320_p11 = pnand %p4319_p10, %p4313_p7 }
 0x105   :  { %4323 = shalt.err (!%p4320_p11)
}
 0x106   :  { %345 = dma.hbm_to_vmem [thread:$0]  %s4868_s5, 16, %s343_s21, [#allocation38]  }
 0x107   :  { %s4324_s20 = scalar_lea.hbm %s4733_s9, 2048 }
 0x108   :  { %p4325_p12 = scmp.ne.s32.totalorder %s4733_s9, %s4324_s20  ;;  %p4328_p13 = scmp.lt.u32.totalorder %s4324_s20, %s4733_s9 }
 0x10a   :  { %p4330_p0 = pnand %p4328_p13, %p4325_p12 }
 0x10c   :  { %4333 = shalt.err (!%p4330_p0)
}
 0x10d   :  { %s4334_s1 = scalar_lea.vmem %s90_s12, 2048  ;;  %p4339_p2 = scmp.lt.s32.totalorder %s90_s12, %s90_s12 }
 0x10e   :  { %p4335_p1 = scmp.ne.s32.totalorder %s90_s12, %s4334_s1  ;;  %p4340_p3 = scmp.lt.s32.totalorder %s4334_s1, %s4334_s1 }
 0x110   :  { %p4341_p4 = por %p4340_p3, %p4339_p2 }
 0x112   :  { %p4342_p5 = pnand %p4341_p4, %p4335_p1 }
 0x114   :  { %4345 = shalt.err (!%p4342_p5)
}
 0x115   :  { %95 = dma.hbm_to_vmem [thread:$0]  %s4733_s9, 2048, %s90_s12, [#allocation3], %s4696_s2, %s4696_s2, %s4697_s29  }
 0x116   :  { %s4706_s5 = smov [#allocation6]   ;;  %s4707_s10 = smov [#allocation9]  }
 0x117   :  { %s111_s7 = sshll.u32 %s4706_s5, 4  ;;  %s133_s27 = sshll.u32 %s4707_s10, 4  ;;  %s112_s7 = int_to_ptr.vmem [resolvable:$true] %s111_s7  ;;  %s134_s27 = int_to_ptr.vmem [resolvable:$true] %s133_s27 }
 0x118   :  { %s4346_s14 = scalar_lea.hbm %s4743_s17, 1024 }
 0x119   :  { %p4347_p6 = scmp.ne.s32.totalorder %s4743_s17, %s4346_s14  ;;  %p4350_p7 = scmp.lt.u32.totalorder %s4346_s14, %s4743_s17 }
 0x11b   :  { %p4352_p8 = pnand %p4350_p7, %p4347_p6 }
 0x11d   :  { %4355 = shalt.err (!%p4352_p8)
}
 0x11e   :  { %s4356_s11 = scalar_lea.vmem %s112_s7, 1024  ;;  %p4361_p10 = scmp.lt.s32.totalorder %s112_s7, %s112_s7 }
 0x11f   :  { %p4357_p9 = scmp.ne.s32.totalorder %s112_s7, %s4356_s11  ;;  %p4362_p11 = scmp.lt.s32.totalorder %s4356_s11, %s4356_s11 }
 0x121   :  { %p4363_p12 = por %p4362_p11, %p4361_p10 }
 0x123   :  { %p4364_p13 = pnand %p4363_p12, %p4357_p9 }
 0x125   :  { %4367 = shalt.err (!%p4364_p13)
}
 0x126   :  { %117 = dma.hbm_to_vmem [thread:$0]  %s4743_s17, 1024, %s112_s7, [#allocation5], %s4696_s2, %s4696_s2, %s4697_s29  }
 0x127   :  { %s4368_s9 = scalar_lea.hbm %s4753_s25, 1024 }
 0x128   :  { %p4369_p0 = scmp.ne.s32.totalorder %s4753_s25, %s4368_s9  ;;  %p4372_p1 = scmp.lt.u32.totalorder %s4368_s9, %s4753_s25 }
 0x12a   :  { %p4374_p2 = pnand %p4372_p1, %p4369_p0 }
 0x12c   :  { %4377 = shalt.err (!%p4374_p2)
}
 0x12d   :  { %s4378_s6 = scalar_lea.vmem %s134_s27, 1024  ;;  %p4383_p4 = scmp.lt.s32.totalorder %s134_s27, %s134_s27 }
 0x12e   :  { %p4379_p3 = scmp.ne.s32.totalorder %s134_s27, %s4378_s6  ;;  %p4384_p5 = scmp.lt.s32.totalorder %s4378_s6, %s4378_s6 }
 0x130   :  { %p4385_p6 = por %p4384_p5, %p4383_p4 }
 0x132   :  { %p4386_p7 = pnand %p4385_p6, %p4379_p3 }
 0x134   :  { %4389 = shalt.err (!%p4386_p7)
}
 0x135   :  { %s5200_s15 = sld [smem:[#allocation58_spill]]  ;;  %s4708_s17 = smov [#allocation12]  }
 0x136   :  { %139 = dma.hbm_to_vmem [thread:$0]  %s4753_s25, 1024, %s134_s27, [#allocation8], %s4696_s2, %s4696_s2, %s4697_s29  }
 0x137   :  { %s158_s13 = sshll.u32 %s4708_s17, 4  ;;  %s4709_s16 = smov [#allocation15]   ;;  %s159_s13 = int_to_ptr.vmem [resolvable:$true] %s158_s13 }
 0x138   :  { %s180_s18 = sshll.u32 %s4709_s16, 4  ;;  %s181_s18 = int_to_ptr.vmem [resolvable:$true] %s180_s18 }
 0x13b   :  { %s4390_s4 = scalar_lea.hbm %s5200_s15, 16 }
 0x13c   :  { %p4391_p8 = scmp.ne.s32.totalorder %s5200_s15, %s4390_s4  ;;  %p4394_p9 = scmp.lt.u32.totalorder %s4390_s4, %s5200_s15 }
 0x13e   :  { %p4396_p10 = pnand %p4394_p9, %p4391_p8 }
 0x140   :  { %4399 = shalt.err (!%p4396_p10)
}
 0x141   :  { %s4400_s22 = scalar_lea.vmem %s159_s13, 16  ;;  %s4404_s24 = scalar_lea.vmem %s159_s13, 32 }
 0x142   :  { %p4401_p11 = scmp.ne.s32.totalorder %s159_s13, %s4400_s22  ;;  %p4405_p12 = scmp.lt.s32.totalorder %s159_s13, %s159_s13 }
 0x143   :  { %p4406_p13 = scmp.lt.s32.totalorder %s4404_s24, %s4400_s22 }
 0x145   :  { %p4407_p0 = por %p4406_p13, %p4405_p12 }
 0x147   :  { %p4408_p1 = pnand %p4407_p0, %p4401_p11 }
 0x149   :  { %4411 = shalt.err (!%p4408_p1)
}
 0x14a   :  { %s5201_s25 = sld [smem:[#allocation59_spill]] }
 0x14b   :  { %161 = dma.hbm_to_vmem [thread:$0]  %s5200_s15, 16, %s159_s13, [#allocation11]  }
 0x150   :  { %s4412_s3 = scalar_lea.hbm %s5201_s25, 16 }
 0x151   :  { %p4413_p2 = scmp.ne.s32.totalorder %s5201_s25, %s4412_s3  ;;  %p4416_p3 = scmp.lt.u32.totalorder %s4412_s3, %s5201_s25 }
 0x153   :  { %p4418_p4 = pnand %p4416_p3, %p4413_p2 }
 0x155   :  { %4421 = shalt.err (!%p4418_p4)
}
 0x156   :  { %s4422_s21 = scalar_lea.vmem %s181_s18, 16  ;;  %s4426_s0 = scalar_lea.vmem %s181_s18, 32 }
 0x157   :  { %p4423_p5 = scmp.ne.s32.totalorder %s181_s18, %s4422_s21  ;;  %p4427_p6 = scmp.lt.s32.totalorder %s181_s18, %s181_s18 }
 0x158   :  { %p4428_p7 = scmp.lt.s32.totalorder %s4426_s0, %s4422_s21 }
 0x15a   :  { %p4429_p8 = por %p4428_p7, %p4427_p6 }
 0x15c   :  { %p4430_p9 = pnand %p4429_p8, %p4423_p5 }
 0x15e   :  { %4433 = shalt.err (!%p4430_p9)
}
 0x15f   :  { %s5202_s12 = sld [smem:[#allocation60_spill]]  ;;  %s4710_s23 = smov [#allocation18]  }
 0x160   :  { %183 = dma.hbm_to_vmem [thread:$0]  %s5201_s25, 16, %s181_s18, [#allocation14]  }
 0x161   :  { %s202_s26 = sshll.u32 %s4710_s23, 4  ;;  %s4711_s28 = smov [#allocation21]   ;;  %s203_s26 = int_to_ptr.vmem [resolvable:$true] %s202_s26 }
 0x162   :  { %s223_s20 = sshll.u32 %s4711_s28, 4  ;;  %s224_s20 = int_to_ptr.vmem [resolvable:$true] %s223_s20 }
 0x165   :  { %s4434_s1 = scalar_lea.hbm %s5202_s12, 16 }
 0x166   :  { %p4435_p10 = scmp.ne.s32.totalorder %s5202_s12, %s4434_s1  ;;  %p4438_p11 = scmp.lt.u32.totalorder %s4434_s1, %s5202_s12 }
 0x168   :  { %p4440_p12 = pnand %p4438_p11, %p4435_p10 }
 0x16a   :  { %4443 = shalt.err (!%p4440_p12)
}
 0x16b   :  { %s4444_s5 = scalar_lea.vmem %s203_s26, 16  ;;  %s4448_s7 = scalar_lea.vmem %s203_s26, 32 }
 0x16c   :  { %p4445_p13 = scmp.ne.s32.totalorder %s203_s26, %s4444_s5  ;;  %p4449_p0 = scmp.lt.s32.totalorder %s203_s26, %s203_s26 }
 0x16d   :  { %p4450_p1 = scmp.lt.s32.totalorder %s4448_s7, %s4444_s5 }
 0x16f   :  { %p4451_p2 = por %p4450_p1, %p4449_p0 }
 0x171   :  { %p4452_p3 = pnand %p4451_p2, %p4445_p13 }
 0x173   :  { %4455 = shalt.err (!%p4452_p3)
}
 0x174   :  { %s5203_s10 = sld [smem:[#allocation62_spill]] }
 0x175   :  { %205 = dma.hbm_to_vmem [thread:$0]  %s5202_s12, 16, %s203_s26, [#allocation17]  }
 0x17a   :  { %s4456_s27 = scalar_lea.hbm %s5203_s10, 256 }
 0x17b   :  { %p4457_p4 = scmp.ne.s32.totalorder %s5203_s10, %s4456_s27  ;;  %p4460_p5 = scmp.lt.u32.totalorder %s4456_s27, %s5203_s10 }
 0x17d   :  { %p4462_p6 = pnand %p4460_p5, %p4457_p4 }
 0x17f   :  { %4465 = shalt.err (!%p4462_p6)
}
 0x180   :  { %s4466_s14 = scalar_lea.vmem %s224_s20, 256  ;;  %p4471_p8 = scmp.lt.s32.totalorder %s224_s20, %s224_s20 }
 0x181   :  { %p4467_p7 = scmp.ne.s32.totalorder %s224_s20, %s4466_s14  ;;  %p4472_p9 = scmp.lt.s32.totalorder %s4466_s14, %s4466_s14 }
 0x183   :  { %p4473_p10 = por %p4472_p9, %p4471_p8 }
 0x185   :  { %p4474_p11 = pnand %p4473_p10, %p4467_p7 }
 0x187   :  { %4477 = shalt.err (!%p4474_p11)
}
 0x188   :  { %s5204_s11 = sld [smem:[#allocation63_spill]]  ;;  %s4712_s9 = smov [#allocation24]  }
 0x189   :  { %229 = dma.hbm_to_vmem [thread:$0]  %s5203_s10, 256, %s224_s20, [#allocation20], %s4696_s2, %s4696_s2, %s4697_s29  }
 0x18a   :  { %s245_s6 = sshll.u32 %s4712_s9, 4  ;;  %s4713_s15 = smov [#allocation27]   ;;  %s246_s6 = int_to_ptr.vmem [resolvable:$true] %s245_s6 }
 0x18b   :  { %s270_s17 = sshll.u32 %s4713_s15, 4  ;;  %s271_s17 = int_to_ptr.vmem [resolvable:$true] %s270_s17 }
 0x18e   :  { %s4478_s13 = scalar_lea.hbm %s5204_s11, 256 }
 0x18f   :  { %p4479_p12 = scmp.ne.s32.totalorder %s5204_s11, %s4478_s13  ;;  %p4482_p13 = scmp.lt.u32.totalorder %s4478_s13, %s5204_s11 }
 0x191   :  { %p4484_p0 = pnand %p4482_p13, %p4479_p12 }
 0x193   :  { %4487 = shalt.err (!%p4484_p0)
}
 0x194   :  { %s4488_s16 = scalar_lea.vmem %s246_s6, 256  ;;  %p4493_p2 = scmp.lt.s32.totalorder %s246_s6, %s246_s6 }
 0x195   :  { %p4489_p1 = scmp.ne.s32.totalorder %s246_s6, %s4488_s16  ;;  %p4494_p3 = scmp.lt.s32.totalorder %s4488_s16, %s4488_s16 }
 0x197   :  { %p4495_p4 = por %p4494_p3, %p4493_p2 }
 0x199   :  { %p4496_p5 = pnand %p4495_p4, %p4489_p1 }
 0x19b   :  { %4499 = shalt.err (!%p4496_p5)
}
 0x19c   :  { %s5205_s18 = sld [smem:[#allocation65_spill]] }
 0x19d   :  { %251 = dma.hbm_to_vmem [thread:$0]  %s5204_s11, 256, %s246_s6, [#allocation23], %s4696_s2, %s4696_s2, %s4697_s29  }
 0x1a2   :  { %s4500_s4 = scalar_lea.hbm %s5205_s18, 16 }
 0x1a3   :  { %p4501_p6 = scmp.ne.s32.totalorder %s5205_s18, %s4500_s4  ;;  %p4504_p7 = scmp.lt.u32.totalorder %s4500_s4, %s5205_s18 }
 0x1a5   :  { %p4506_p8 = pnand %p4504_p7, %p4501_p6 }
 0x1a7   :  { %4509 = shalt.err (!%p4506_p8)
}
 0x1a8   :  { %s4510_s22 = scalar_lea.vmem %s271_s17, 16  ;;  %s4514_s24 = scalar_lea.vmem %s271_s17, 32 }
 0x1a9   :  { %p4511_p9 = scmp.ne.s32.totalorder %s271_s17, %s4510_s22  ;;  %p4515_p10 = scmp.lt.s32.totalorder %s271_s17, %s271_s17 }
 0x1aa   :  { %p4516_p11 = scmp.lt.s32.totalorder %s4514_s24, %s4510_s22 }
 0x1ac   :  { %p4517_p12 = por %p4516_p11, %p4515_p10 }
 0x1ae   :  { %p4518_p13 = pnand %p4517_p12, %p4511_p9 }
 0x1b0   :  { %4521 = shalt.err (!%p4518_p13)
}
 0x1b1   :  { %s5206_s25 = sld [smem:[#allocation66_spill]]  ;;  %s4714_s2 = smov [#allocation30]  }
 0x1b2   :  { %273 = dma.hbm_to_vmem [thread:$0]  %s5205_s18, 16, %s271_s17, [#allocation26]  }
 0x1b3   :  { %s290_s29 = sshll.u32 %s4714_s2, 4  ;;  %s4715_s3 = smov [#allocation33]   ;;  %s291_s29 = int_to_ptr.vmem [resolvable:$true] %s290_s29 }
 0x1b4   :  { %s310_s21 = sshll.u32 %s4715_s3, 4  ;;  %s311_s21 = int_to_ptr.vmem [resolvable:$true] %s310_s21 }
 0x1b7   :  { %s4522_s0 = scalar_lea.hbm %s5206_s25, 16 }
 0x1b8   :  { %p4523_p0 = scmp.ne.s32.totalorder %s5206_s25, %s4522_s0  ;;  %p4526_p1 = scmp.lt.u32.totalorder %s4522_s0, %s5206_s25 }
 0x1ba   :  { %p4528_p2 = pnand %p4526_p1, %p4523_p0 }
 0x1bc   :  { %4531 = shalt.err (!%p4528_p2)
}
 0x1bd   :  { %s4532_s12 = scalar_lea.vmem %s291_s29, 16  ;;  %s4536_s23 = scalar_lea.vmem %s291_s29, 32 }
 0x1be   :  { %p4533_p3 = scmp.ne.s32.totalorder %s291_s29, %s4532_s12  ;;  %p4537_p4 = scmp.lt.s32.totalorder %s291_s29, %s291_s29 }
 0x1bf   :  { %p4538_p5 = scmp.lt.s32.totalorder %s4536_s23, %s4532_s12 }
 0x1c1   :  { %p4539_p6 = por %p4538_p5, %p4537_p4 }
 0x1c3   :  { %p4540_p7 = pnand %p4539_p6, %p4533_p3 }
 0x1c5   :  { %4543 = shalt.err (!%p4540_p7)
}
 0x1c6   :  { %s5207_s26 = sld [smem:[#allocation67_spill]] }
 0x1c7   :  { %293 = dma.hbm_to_vmem [thread:$0]  %s5206_s25, 16, %s291_s29, [#allocation29]  }
 0x1cc   :  { %s4544_s28 = scalar_lea.hbm %s5207_s26, 16 }
 0x1cd   :  { %p4545_p8 = scmp.ne.s32.totalorder %s5207_s26, %s4544_s28  ;;  %p4548_p9 = scmp.lt.u32.totalorder %s4544_s28, %s5207_s26 }
 0x1cf   :  { %p4550_p10 = pnand %p4548_p9, %p4545_p8 }
 0x1d1   :  { %4553 = shalt.err (!%p4550_p10)
}
 0x1d2   :  { %s4554_s20 = scalar_lea.vmem %s311_s21, 16  ;;  %s4558_s1 = scalar_lea.vmem %s311_s21, 32 }
 0x1d3   :  { %p4555_p11 = scmp.ne.s32.totalorder %s311_s21, %s4554_s20  ;;  %p4559_p12 = scmp.lt.s32.totalorder %s311_s21, %s311_s21 }
 0x1d4   :  { %p4560_p13 = scmp.lt.s32.totalorder %s4558_s1, %s4554_s20 }
 0x1d6   :  { %p4561_p0 = por %p4560_p13, %p4559_p12 }
 0x1d8   :  { %p4562_p1 = pnand %p4561_p0, %p4555_p11 }
 0x1da   :  { %4565 = shalt.err (!%p4562_p1)
}
 0x1db   :  { %s5208_s5 = sld [smem:[#allocation69_spill]]  ;;  %s4716_s7 = smov [#allocation36]  }
 0x1dc   :  { %313 = dma.hbm_to_vmem [thread:$0]  %s5207_s26, 16, %s311_s21, [#allocation32]  }
 0x1dd   :  { %s332_s10 = sshll.u32 %s4716_s7, 4  ;;  %s4717_s27 = smov [#allocation39]   ;;  %s333_s10 = int_to_ptr.vmem [resolvable:$true] %s332_s10 }
 0x1de   :  { %s352_s14 = sshll.u32 %s4717_s27, 4  ;;  %s353_s14 = int_to_ptr.vmem [resolvable:$true] %s352_s14 }
 0x1e1   :  { %s4566_s11 = scalar_lea.hbm %s5208_s5, 32 }
 0x1e2   :  { %p4567_p2 = scmp.ne.s32.totalorder %s5208_s5, %s4566_s11  ;;  %p4570_p3 = scmp.lt.u32.totalorder %s4566_s11, %s5208_s5 }
 0x1e4   :  { %p4572_p4 = pnand %p4570_p3, %p4567_p2 }
 0x1e6   :  { %4575 = shalt.err (!%p4572_p4)
}
 0x1e7   :  { %s4576_s9 = scalar_lea.vmem %s333_s10, 32  ;;  %p4581_p6 = scmp.lt.s32.totalorder %s333_s10, %s333_s10 }
 0x1e8   :  { %p4577_p5 = scmp.ne.s32.totalorder %s333_s10, %s4576_s9  ;;  %p4582_p7 = scmp.lt.s32.totalorder %s4576_s9, %s4576_s9 }
 0x1ea   :  { %p4583_p8 = por %p4582_p7, %p4581_p6 }
 0x1ec   :  { %p4584_p9 = pnand %p4583_p8, %p4577_p5 }
 0x1ee   :  { %4587 = shalt.err (!%p4584_p9)
}
 0x1ef   :  { %335 = dma.hbm_to_vmem [thread:$0]  %s5208_s5, 32, %s333_s10, [#allocation35]  }
 0x1f0   :  { %s4588_s6 = scalar_lea.hbm %s4873_s30, 32 }
 0x1f1   :  { %p4589_p10 = scmp.ne.s32.totalorder %s4873_s30, %s4588_s6  ;;  %p4592_p11 = scmp.lt.u32.totalorder %s4588_s6, %s4873_s30 }
 0x1f3   :  { %p4594_p12 = pnand %p4592_p11, %p4589_p10 }
 0x1f5   :  { %4597 = shalt.err (!%p4594_p12)
}
 0x1f6   :  { %s4598_s15 = scalar_lea.vmem %s353_s14, 32  ;;  %p4603_p0 = scmp.lt.s32.totalorder %s353_s14, %s353_s14 }
 0x1f7   :  { %p4599_p13 = scmp.ne.s32.totalorder %s353_s14, %s4598_s15  ;;  %p4604_p1 = scmp.lt.s32.totalorder %s4598_s15, %s4598_s15 }
 0x1f9   :  { %p4605_p2 = por %p4604_p1, %p4603_p0 }
 0x1fb   :  { %p4606_p3 = pnand %p4605_p2, %p4599_p13 }
 0x1fd   :  { %4609 = shalt.err (!%p4606_p3)
}
 0x1fe   :  { %355 = dma.hbm_to_vmem [thread:$0]  %s4873_s30, 32, %s353_s14, [#allocation38]  }
 0x1ff   :  { %s4718_s17 = smov [#allocation40]   ;;  %s4610_s16 = scalar_lea.hbm %s4878_s8, 16 }
 0x200   :  { %s362_s13 = sshll.u32 %s4718_s17, 4  ;;  %p4611_p4 = scmp.ne.s32.totalorder %s4878_s8, %s4610_s16  ;;  %s363_s13 = int_to_ptr.vmem [resolvable:$true] %s362_s13 }
 0x201   :  { %p4614_p5 = scmp.lt.u32.totalorder %s4610_s16, %s4878_s8 }
 0x203   :  { %p4616_p6 = pnand %p4614_p5, %p4611_p4 }
 0x205   :  { %4619 = shalt.err (!%p4616_p6)
}
 0x206   :  { %s4620_s18 = scalar_lea.vmem %s363_s13, 16  ;;  %s4624_s4 = scalar_lea.vmem %s363_s13, 32 }
 0x207   :  { %p4621_p7 = scmp.ne.s32.totalorder %s363_s13, %s4620_s18  ;;  %p4625_p8 = scmp.lt.s32.totalorder %s363_s13, %s363_s13 }
 0x208   :  { %p4626_p9 = scmp.lt.s32.totalorder %s4624_s4, %s4620_s18 }
 0x20a   :  { %p4627_p10 = por %p4626_p9, %p4625_p8 }
 0x20c   :  { %p4628_p11 = pnand %p4627_p10, %p4621_p7 }
 0x20e   :  { %4631 = shalt.err (!%p4628_p11)
}
 0x20f   :  { %365 = dma.hbm_to_vmem [thread:$0]  %s4878_s8, 16, %s363_s13, [#allocation41]  }
 0x210   :  { %4632 = dma.done.wait [#allocation3], 2048  }
 0x211   :  { %4633 = vsyncadd [#allocation3], 4294965248 }
 0x212   :  { %4634 = dma.done.wait [#allocation5], 1040  }
 0x213   :  { %4635 = vsyncadd [#allocation5], 4294966256 }
 0x214   :  { %4636 = dma.done.wait [#allocation8], 1040  }
 0x215   :  { %4637 = vsyncadd [#allocation8], 4294966256 }
 0x216   :  { %4638 = dma.done.wait [#allocation11], 32  }
 0x217   :  { %4639 = vsyncadd [#allocation11], 4294967264 }
 0x218   :  { %4640 = dma.done.wait [#allocation14], 528  }
 0x219   :  { %4641 = vsyncadd [#allocation14], 4294966768 }
 0x21a   :  { %4642 = dma.done.wait [#allocation17], 528  }
 0x21b   :  { %4643 = vsyncadd [#allocation17], 4294966768 }
 0x21c   :  { %4644 = dma.done.wait [#allocation20], 272  }
 0x21d   :  { %4645 = vsyncadd [#allocation20], 4294967024 }
 0x21e   :  { %4646 = dma.done.wait [#allocation23], 272  }
 0x21f   :  { %4647 = vsyncadd [#allocation23], 4294967024 }
 0x220   :  { %4648 = dma.done.wait [#allocation26], 32  }
 0x221   :  { %4649 = vsyncadd [#allocation26], 4294967264 }
 0x222   :  { %4650 = dma.done.wait [#allocation29], 80  }
 0x223   :  { %4651 = vsyncadd [#allocation29], 4294967216 }
 0x224   :  { %4652 = dma.done.wait [#allocation32], 80  }
 0x225   :  { %4653 = vsyncadd [#allocation32], 4294967216 }
 0x226   :  { %4654 = dma.done.wait [#allocation35], 48  }
 0x227   :  { %4655 = vsyncadd [#allocation35], 4294967248 }
 0x228   :  { %4656 = dma.done.wait [#allocation38], 48  }
 0x229   :  { %4657 = vsyncadd [#allocation38], 4294967248 }
 0x22a   :  { %4658 = dma.done.wait [#allocation41], 16  }
 0x22b   :  { %4659 = vsyncadd [#allocation41], 4294967280  ;;  %v3978_v0 = vld [vmem:[#allocation2 + $0x40] sm:$0xff]   ;;  %v3980_v2 = vld [vmem:[#allocation2 + $0x48] sm:$0xff]   ;;  %s5209_s8 = sld [smem:[#allocation56_spill]]  ;;  %s5210_s30 = sld [smem:[#allocation57_spill]] }
 0x22c   :  { %v3979_v1 = vld [vmem:[#allocation2] sm:$0xff]   ;;  %3373 = vmatprep.subr.bf16.mxu0 %v3978_v0  ;;  %v3981_v3 = vld [vmem:[#allocation2 + $0x8] sm:$0xff]   ;;  %v3982_v4 = vld [vmem:[#allocation2 + $0x50] sm:$0xff]   ;;  %vm1396_vm0 = vcmask 523264   ;;  %s5211_s22 = sld [smem:[#allocation61_spill]]  ;;  %vm1917_vm1 = vcmask 261120  }
 0x22d   :  { %3374 = vmatpush3.bf16.msra.mxu0 %v3979_v1  ;;  %v3983_v5 = vld [vmem:[#allocation2 + $0x10] sm:$0xff]   ;;  %v3984_v6 = vld [vmem:[#allocation2 + $0x58] sm:$0xff]   ;;  %v3986_v8 = vld [vmem:[#allocation2 + $0x60] sm:$0xff]   ;;  %s5212_s24 = sld [smem:[#allocation64_spill]]  ;;  %vm2416_vm2 = vcmask 1043456   ;;  %vm2391_vm3 = vcmask 64512  }
 0x22e   :  { %3375 = vmatprep.subr.bf16.mxu0 %v3980_v2  ;;  %v3985_v7 = vld [vmem:[#allocation2 + $0x18] sm:$0xff]   ;;  %v3987_v9 = vld [vmem:[#allocation2 + $0x20] sm:$0xff]   ;;  %v3988_v10 = vld [vmem:[#allocation2 + $0x68] sm:$0xff]   ;;  %s5213_s25 = sld [smem:[#allocation68_spill]]  ;;  %vm2870_vm4 = vcmask 1041408   ;;  %vm2845_vm5 = vcmask 31744  }
 0x22f   :  { %v3989_v12 = vld [vmem:[#allocation2 + $0x28] sm:$0xff]   ;;  %v3990_v13 = vld [vmem:[#allocation2 + $0x70] sm:$0xff]   ;;  %v3992_v15 = vld [vmem:[#allocation2 + $0x78] sm:$0xff]   ;;  %vm3028_vm6 = vcmask 1040384   ;;  %vm3003_vm7 = vcmask 23552  }
 0x230   :  { %v3991_v14 = vld [vmem:[#allocation2 + $0x30] sm:$0xff]   ;;  %v3993_v16 = vld [vmem:[#allocation2 + $0x38] sm:$0xff]   ;;  %v4018_v17 = vld [vmem:[#allocation6] sm:$0xff]  }
 0x231   :  { %3376 = vmatpush3.bf16.msra.mxu0 %v3981_v3  ;;  %v3996_v11 = vld [vmem:[%s5209_s8 + $0x4] ss:$8 sps:$4 sm:$0xff]   ;;  %v3994_v18 = vld [vmem:[%s5209_s8] ss:$8 sps:$4 sm:$0xff]   ;;  %v3997_v20 = vld [vmem:[%s5209_s8 + $0x14] ss:$8 sps:$4 sm:$0xff]   ;;  %3596 = vmatprep.subr.bf16.mxu1 %v4018_v17 }
 0x232   :  { %3377 = vmatprep.subr.bf16.mxu0 %v3982_v4  ;;  %708 = vmatprep.mubr.bf16.mxu0 %v3996_v11  ;;  %v4019_v19 = vld [vmem:[#allocation6 + $0x8] sm:$0xff]   ;;  %v4020_v21 = vld [vmem:[#allocation6 + $0x10] sm:$0xff]   ;;  %v4021_v35 = vld [vmem:[#allocation6 + $0x18] sm:$0xff]  }
 0x233   :  { %3597 = vmatpush3.bf16.msra.mxu1 %v4018_v17  ;;  %v3999_v22 = vld [vmem:[%s5209_s8 + $0x10] ss:$8 sps:$4 sm:$0xff]   ;;  %v4000_v23 = vld [vmem:[%s5209_s8 + $0x24] ss:$8 sps:$4 sm:$0xff]   ;;  %v4002_v24 = vld [vmem:[%s5209_s8 + $0x20] ss:$8 sps:$4 sm:$0xff]  }
 0x234   :  { %3598 = vmatprep.subr.bf16.mxu1 %v4019_v19  ;;  %v4003_v25 = vld [vmem:[%s5209_s8 + $0x34] ss:$8 sps:$4 sm:$0xff]   ;;  %v4005_v26 = vld [vmem:[%s5209_s8 + $0x30] ss:$8 sps:$4 sm:$0xff]   ;;  %v4006_v27 = vld [vmem:[%s5209_s8 + $0x44] ss:$8 sps:$4 sm:$0xff]  }
 0x235   :  { %3378 = vmatpush3.bf16.msra.mxu0 %v3983_v5  ;;  %v4008_v28 = vld [vmem:[%s5209_s8 + $0x40] ss:$8 sps:$4 sm:$0xff]   ;;  %v4009_v29 = vld [vmem:[%s5209_s8 + $0x54] ss:$8 sps:$4 sm:$0xff]   ;;  %v4011_v30 = vld [vmem:[%s5209_s8 + $0x50] ss:$8 sps:$4 sm:$0xff]  }
 0x236   :  { %3379 = vmatprep.subr.bf16.mxu0 %v3984_v6  ;;  %v4012_v31 = vld [vmem:[%s5209_s8 + $0x64] ss:$8 sps:$4 sm:$0xff]   ;;  %v4014_v32 = vld [vmem:[%s5209_s8 + $0x60] ss:$8 sps:$4 sm:$0xff]   ;;  %v4015_v33 = vld [vmem:[%s5209_s8 + $0x74] ss:$8 sps:$4 sm:$0xff]  }
 0x237   :  { %3599 = vmatpush3.bf16.msra.mxu1 %v4019_v19  ;;  %v4017_v34 = vld [vmem:[%s5209_s8 + $0x70] ss:$8 sps:$4 sm:$0xff]   ;;  %v4022_v36 = vld [vmem:[#allocation6 + $0x20] sm:$0xff]   ;;  %v5026_v43 = vld [vmem:[#allocation4] ss:$0 sm:$0xff] }
 0x238   :  { %3600 = vmatprep.subr.bf16.mxu1 %v4020_v21  ;;  %v4023_v37 = vld [vmem:[#allocation6 + $0x28] sm:$0xff]   ;;  %v4024_v38 = vld [vmem:[#allocation6 + $0x30] sm:$0xff]   ;;  %v4025_v39 = vld [vmem:[#allocation6 + $0x38] sm:$0xff]  }
 0x239   :  { %3380 = vmatpush3.bf16.msra.mxu0 %v3985_v7  ;;  %v4026_v40 = vld [vmem:[#allocation9] sm:$0xff]   ;;  %v4027_v4 = vld [vmem:[#allocation9 + $0x8] sm:$0xff]   ;;  %v4029_v17 = vld [vmem:[#allocation9 + $0x18] sm:$0xff]  }
 0x23a   :  { %3381 = vmatprep.subr.bf16.mxu0 %v3986_v8 }
 0x23b   :  { %3601 = vmatpush3.bf16.msra.mxu1 %v4020_v21 }
 0x23c   :  { %3602 = vmatprep.subr.bf16.mxu1 %v4021_v35 }
 0x23d   :  { %3382 = vmatpush3.bf16.msra.mxu0 %v3987_v9  ;;  %v4028_v9 = vld [vmem:[#allocation9 + $0x10] sm:$0xff]  }
 0x23e   :  { %3383 = vmatprep.subr.bf16.mxu0 %v3988_v10 }
 0x23f   :  { %3603 = vmatpush3.bf16.msra.mxu1 %v4021_v35 }
 0x240   :  { %3604 = vmatprep.subr.bf16.mxu1 %v4022_v36 }
 0x241   :  { %3384 = vmatpush3.bf16.msra.mxu0 %v3989_v12 }
 0x242   :  { %3385 = vmatprep.subr.bf16.mxu0 %v3990_v13 }
 0x243   :  { %3605 = vmatpush3.bf16.msra.mxu1 %v4022_v36 }
 0x244   :  { %3606 = vmatprep.subr.bf16.mxu1 %v4023_v37 }
 0x245   :  { %3386 = vmatpush3.bf16.msra.mxu0 %v3991_v14 }
 0x246   :  { %3387 = vmatprep.subr.bf16.mxu0 %v3992_v15 }
 0x247   :  { %3607 = vmatpush3.bf16.msra.mxu1 %v4023_v37 }
 0x248   :  { %3608 = vmatprep.subr.bf16.mxu1 %v4024_v38 }
 0x249   :  { %3388 = vmatpush3.bf16.msra.mxu0 %v3993_v16 }
 0x24b   :  { %3609 = vmatpush3.bf16.msra.mxu1 %v4024_v38 }
 0x24c   :  { %709 = vmatmul.mubr.bf16.vlgmr.msra.gmra.mrb[0].mxu0 %v3994_v18  ;;  %3610 = vmatprep.subr.bf16.mxu1 %v4025_v39 }
 0x24d   :  { %716 = vmatprep.mubr.bf16.mxu0 %v3997_v20 }
 0x24f   :  { %3611 = vmatpush3.bf16.msra.mxu1 %v4025_v39 }
 0x250   :  { %3628 = vmatprep.subr.bf16.mxu1 %v4026_v40 }
 0x254   :  { %717 = vmatmul.mubr.bf16.gmra.mrb[4].mxu0 %v3999_v22  ;;  %v4030_v22 = vld [vmem:[#allocation9 + $0x20] sm:$0xff]  }
 0x255   :  { %724 = vmatprep.mubr.bf16.mxu0 %v4000_v23 }
 0x25c   :  { %725 = vmatmul.mubr.bf16.gmra.mrb[8].mxu0 %v4002_v24 }
 0x25d   :  { %732 = vmatprep.mubr.bf16.mxu0 %v4003_v25 }
 0x264   :  { %733 = vmatmul.mubr.bf16.gmra.mrb[12].mxu0 %v4005_v26 }
 0x265   :  { %740 = vmatprep.mubr.bf16.mxu0 %v4006_v27 }
 0x26c   :  { %741 = vmatmul.mubr.bf16.gmra.mrb[16].mxu0 %v4008_v28 }
 0x26d   :  { %748 = vmatprep.mubr.bf16.mxu0 %v4009_v29 }
 0x274   :  { %749 = vmatmul.mubr.bf16.gmra.mrb[20].mxu0 %v4011_v30  ;;  %v4031_v30 = vld [vmem:[#allocation9 + $0x28] sm:$0xff]  }
 0x275   :  { %756 = vmatprep.mubr.bf16.mxu0 %v4012_v31 }
 0x27c   :  { %757 = vmatmul.mubr.bf16.gmra.mrb[24].mxu0 %v4014_v32 }
 0x27d   :  { %764 = vmatprep.mubr.bf16.mxu0 %v4015_v33 }
 0x284   :  { %765 = vmatmul.mubr.bf16.gmra.mrb[28].mxu0 %v4017_v34 }
 0x31f   :  { %v3389_v41 = vpop.f32.mrb[0].mxu0 }
 0x320   :  { %v3390_v42 = vpop.f32.mrb[1].mxu0 }
 0x321   :  { %v3391_v44 = vadd.f32 %v3390_v42, %v3389_v41  ;;  %v3392_v45 = vpop.f32.mrb[2].mxu0 }
 0x322   :  { %v3393_v46 = vpop.f32.mrb[3].mxu0 }
 0x323   :  { %v3394_v47 = vadd.f32 %v3393_v46, %v3392_v45  ;;  %v711_v48 = vadd.f32 %v3391_v44, %v5026_v43 }
 0x325   :  { %v714_v49 = vadd.f32 %v3394_v47, %v5026_v43  ;;  %v773_v51 = vmax.f32 %v711_v48, 0.0 }
 0x327   :  { %v3395_v50 = vpop.f32.mrb[4].mxu0  ;;  %v774_v52 = vmax.f32 %v714_v49, 0.0 }
 0x328   :  { %v3396_v53 = vpop.f32.mrb[5].mxu0 }
 0x329   :  { %v3397_v54 = vadd.f32 %v3396_v53, %v3395_v50  ;;  %v3398_v55 = vpop.f32.mrb[6].mxu0  ;;  %v789_v56 = vpack.c.bf16 %v774_v52, %v773_v51 }
 0x32a   :  { %v3399_v57 = vpop.f32.mrb[7].mxu0 }
 0x32b   :  { %v719_v58 = vadd.f32 %v3397_v54, %v5026_v43  ;;  %v3400_v59 = vadd.f32 %v3399_v57, %v3398_v55  ;;  %3612 = vmatprep.mubr.bf16.mxu1 %v789_v56 }
 0x32d   :  { %v722_v60 = vadd.f32 %v3400_v59, %v5026_v43  ;;  %v775_v61 = vmax.f32 %v719_v58, 0.0 }
 0x32f   :  { %v776_v62 = vmax.f32 %v722_v60, 0.0  ;;  %v3401_v63 = vpop.f32.mrb[8].mxu0 }
 0x330   :  { %v3402_v0 = vpop.f32.mrb[9].mxu0 }
 0x331   :  { %v3403_v1 = vadd.f32 %v3402_v0, %v3401_v63  ;;  %v3404_v2 = vpop.f32.mrb[10].mxu0  ;;  %v790_v3 = vpack.c.bf16 %v776_v62, %v775_v61 }
 0x332   :  { %v3405_v5 = vpop.f32.mrb[11].mxu0 }
 0x333   :  { %v727_v6 = vadd.f32 %v3403_v1, %v5026_v43  ;;  %v3406_v7 = vadd.f32 %v3405_v5, %v3404_v2  ;;  %3613 = vmatmul.mubr.bf16.vlgmr.msra.gmra.mrb[0].mxu1 %v790_v3 }
 0x334   :  { %3629 = vmatpush3.bf16.msra.mxu1 %v4026_v40 }
 0x335   :  { %v730_v8 = vadd.f32 %v3406_v7, %v5026_v43  ;;  %3630 = vmatprep.subr.bf16.mxu1 %v4027_v4  ;;  %v777_v10 = vmax.f32 %v727_v6, 0.0 }
 0x337   :  { %v778_v11 = vmax.f32 %v730_v8, 0.0  ;;  %v3407_v12 = vpop.f32.mrb[12].mxu0  ;;  %v4032_v8 = vld [vmem:[#allocation9 + $0x30] sm:$0xff]  }
 0x338   :  { %v3408_v13 = vpop.f32.mrb[13].mxu0  ;;  %3631 = vmatpush3.bf16.msra.mxu1 %v4027_v4 }
 0x339   :  { %v3409_v14 = vadd.f32 %v3408_v13, %v3407_v12  ;;  %v3410_v15 = vpop.f32.mrb[14].mxu0  ;;  %v791_v16 = vpack.c.bf16 %v778_v11, %v777_v10  ;;  %3632 = vmatprep.subr.bf16.mxu1 %v4028_v9  ;;  %v4034_v10 = vld [vmem:[%s5210_s30] sm:$0xff]   ;;  %v4035_v11 = vld [vmem:[%s5210_s30 + $0x8] sm:$0xff]   ;;  %v4037_v12 = vld [vmem:[%s5210_s30 + $0x18] sm:$0xff]  }
 0x33a   :  { %v3411_v18 = vpop.f32.mrb[15].mxu0  ;;  %3660 = vmatprep.subr.bf16.mxu0 %v4034_v10  ;;  %v4038_v13 = vld [vmem:[%s5210_s30 + $0x20] sm:$0xff]  }
 0x33b   :  { %v735_v19 = vadd.f32 %v3409_v14, %v5026_v43  ;;  %v3412_v20 = vadd.f32 %v3411_v18, %v3410_v15  ;;  %3616 = vmatprep.mubr.bf16.mxu1 %v791_v16  ;;  %3661 = vmatpush3.bf16.msra.mxu0 %v4034_v10  ;;  %v4039_v14 = vld [vmem:[%s5210_s30 + $0x28] sm:$0xff]   ;;  %v3229_v15 = vld [vmem:[#allocation7] ss:$0 sm:$0xff]  ;;  %v4041_v10 = vld [vmem:[%s5210_s30 + $0x38] sm:$0xff]  }
 0x33c   :  { %3633 = vmatpush3.bf16.msra.mxu1 %v4028_v9  ;;  %v4033_v9 = vld [vmem:[#allocation9 + $0x38] sm:$0xff]   ;;  %3662 = vmatprep.subr.bf16.mxu0 %v4035_v11 }
 0x33d   :  { %v738_v21 = vadd.f32 %v3412_v20, %v5026_v43  ;;  %3634 = vmatprep.subr.bf16.mxu1 %v4029_v17  ;;  %v779_v23 = vmax.f32 %v735_v19, 0.0 }
 0x33f   :  { %v780_v24 = vmax.f32 %v738_v21, 0.0  ;;  %v3413_v25 = vpop.f32.mrb[16].mxu0  ;;  %3663 = vmatpush3.bf16.msra.mxu0 %v4035_v11  ;;  %v4042_v11 = vld [vmem:[#allocation13] sm:$0xff]  }
 0x340   :  { %v3414_v26 = vpop.f32.mrb[17].mxu0  ;;  %3635 = vmatpush3.bf16.msra.mxu1 %v4029_v17 }
 0x341   :  { %v3415_v27 = vadd.f32 %v3414_v26, %v3413_v25  ;;  %v3416_v28 = vpop.f32.mrb[18].mxu0  ;;  %v792_v29 = vpack.c.bf16 %v780_v24, %v779_v23  ;;  %3636 = vmatprep.subr.bf16.mxu1 %v4030_v22 }
 0x342   :  { %v3417_v31 = vpop.f32.mrb[19].mxu0 }
 0x343   :  { %v743_v32 = vadd.f32 %v3415_v27, %v5026_v43  ;;  %v3418_v33 = vadd.f32 %v3417_v31, %v3416_v28  ;;  %3617 = vmatmul.mubr.bf16.gmra.mrb[4].mxu1 %v792_v29 }
 0x344   :  { %3637 = vmatpush3.bf16.msra.mxu1 %v4030_v22 }
 0x345   :  { %v746_v34 = vadd.f32 %v3418_v33, %v5026_v43  ;;  %3638 = vmatprep.subr.bf16.mxu1 %v4031_v30  ;;  %v781_v35 = vmax.f32 %v743_v32, 0.0 }
 0x347   :  { %v782_v36 = vmax.f32 %v746_v34, 0.0  ;;  %v3419_v37 = vpop.f32.mrb[20].mxu0 }
 0x348   :  { %v3420_v38 = vpop.f32.mrb[21].mxu0  ;;  %3639 = vmatpush3.bf16.msra.mxu1 %v4031_v30 }
 0x349   :  { %v3421_v39 = vadd.f32 %v3420_v38, %v3419_v37  ;;  %v3422_v40 = vpop.f32.mrb[22].mxu0  ;;  %v793_v41 = vpack.c.bf16 %v782_v36, %v781_v35  ;;  %3640 = vmatprep.subr.bf16.mxu1 %v4032_v8 }
 0x34a   :  { %v3423_v42 = vpop.f32.mrb[23].mxu0 }
 0x34b   :  { %v751_v44 = vadd.f32 %v3421_v39, %v5026_v43  ;;  %v3424_v45 = vadd.f32 %v3423_v42, %v3422_v40  ;;  %3620 = vmatprep.mubr.bf16.mxu1 %v793_v41 }
 0x34c   :  { %3641 = vmatpush3.bf16.msra.mxu1 %v4032_v8 }
 0x34d   :  { %v754_v46 = vadd.f32 %v3424_v45, %v5026_v43  ;;  %v783_v47 = vmax.f32 %v751_v44, 0.0  ;;  %3642 = vmatprep.subr.bf16.mxu1 %v4033_v9 }
 0x34f   :  { %v784_v48 = vmax.f32 %v754_v46, 0.0  ;;  %v3425_v49 = vpop.f32.mrb[24].mxu0 }
 0x350   :  { %v3426_v50 = vpop.f32.mrb[25].mxu0  ;;  %3643 = vmatpush3.bf16.msra.mxu1 %v4033_v9  ;;  %v4040_v9 = vld [vmem:[%s5210_s30 + $0x30] sm:$0xff]  }
 0x351   :  { %v3427_v51 = vadd.f32 %v3426_v50, %v3425_v49  ;;  %v3428_v52 = vpop.f32.mrb[26].mxu0  ;;  %v794_v53 = vpack.c.bf16 %v784_v48, %v783_v47  ;;  %3692 = vmatprep.subr.bf16.mxu1 %v4042_v11 }
 0x352   :  { %v3429_v54 = vpop.f32.mrb[27].mxu0 }
 0x353   :  { %v759_v55 = vadd.f32 %v3427_v51, %v5026_v43  ;;  %v3430_v56 = vadd.f32 %v3429_v54, %v3428_v52  ;;  %3621 = vmatmul.mubr.bf16.gmra.mrb[8].mxu1 %v794_v53 }
 0x355   :  { %v762_v57 = vadd.f32 %v3430_v56, %v5026_v43  ;;  %v785_v58 = vmax.f32 %v759_v55, 0.0 }
 0x357   :  { %v786_v59 = vmax.f32 %v762_v57, 0.0  ;;  %v3431_v60 = vpop.f32.mrb[28].mxu0 }
 0x358   :  { %v3432_v61 = vpop.f32.mrb[29].mxu0 }
 0x359   :  { %v3433_v62 = vadd.f32 %v3432_v61, %v3431_v60  ;;  %v3434_v63 = vpop.f32.mrb[30].mxu0  ;;  %v795_v0 = vpack.c.bf16 %v786_v59, %v785_v58 }
 0x35a   :  { %v3435_v1 = vpop.f32.mrb[31].mxu0 }
 0x35b   :  { %v767_v2 = vadd.f32 %v3433_v62, %v5026_v43  ;;  %v3436_v3 = vadd.f32 %v3435_v1, %v3434_v63  ;;  %3624 = vmatprep.mubr.bf16.mxu1 %v795_v0 }
 0x35d   :  { %v770_v4 = vadd.f32 %v3436_v3, %v5026_v43  ;;  %v787_v5 = vmax.f32 %v767_v2, 0.0  ;;  %v4036_v43 = vld [vmem:[%s5210_s30 + $0x10] sm:$0xff]  }
 0x35e   :  { %3664 = vmatprep.subr.bf16.mxu0 %v4036_v43 }
 0x35f   :  { %v788_v6 = vmax.f32 %v770_v4, 0.0  ;;  %3665 = vmatpush3.bf16.msra.mxu0 %v4036_v43  ;;  %v4043_v43 = vld [vmem:[#allocation13 + $0x8] sm:$0xff]  }
 0x360   :  { %3666 = vmatprep.subr.bf16.mxu0 %v4037_v12 }
 0x361   :  { %v796_v7 = vpack.c.bf16 %v788_v6, %v787_v5 }
 0x363   :  { %3625 = vmatmul.mubr.bf16.gmra.mrb[12].mxu1 %v796_v7  ;;  %3667 = vmatpush3.bf16.msra.mxu0 %v4037_v12 }
 0x364   :  { %3668 = vmatprep.subr.bf16.mxu0 %v4038_v13 }
 0x367   :  { %3669 = vmatpush3.bf16.msra.mxu0 %v4038_v13  ;;  %v3238_v13 = vld [vmem:[#allocation10] ss:$0 sm:$0xff] }
 0x368   :  { %3670 = vmatprep.subr.bf16.mxu0 %v4039_v14 }
 0x36b   :  { %3671 = vmatpush3.bf16.msra.mxu0 %v4039_v14 }
 0x36c   :  { %3672 = vmatprep.subr.bf16.mxu0 %v4040_v9 }
 0x36f   :  { %3673 = vmatpush3.bf16.msra.mxu0 %v4040_v9 }
 0x370   :  { %3674 = vmatprep.subr.bf16.mxu0 %v4041_v10 }
 0x373   :  { %3675 = vmatpush3.bf16.msra.mxu0 %v4041_v10 }
 0x406   :  { %v3614_v16 = vpop.f32.mrb[0].mxu1 }
 0x407   :  { %v911_v17 = vadd.f32 %v3614_v16, %v3229_v15  ;;  %v902_v18 = vpop.f32.mrb[1].mxu1 }
 0x408   :  { %v903_v19 = vadd.f32 %v3229_v15, %v902_v18  ;;  %v3615_v20 = vpop.f32.mrb[2].mxu1 }
 0x409   :  { %v914_v21 = vadd.f32 %v3615_v20, %v3229_v15  ;;  %v905_v22 = vpop.f32.mrb[3].mxu1  ;;  %v967_v24 = vmax.f32 %v911_v17, 0.0 }
 0x40a   :  { %v906_v23 = vadd.f32 %v3229_v15, %v905_v22  ;;  %v965_v26 = vmax.f32 %v903_v19, 0.0 }
 0x40b   :  { %v968_v25 = vmax.f32 %v914_v21, 0.0 }
 0x40c   :  { %v966_v27 = vmax.f32 %v906_v23, 0.0 }
 0x40d   :  { %v982_v28 = vpack.c.bf16 %v968_v25, %v967_v24 }
 0x40e   :  { %v981_v29 = vpack.c.bf16 %v966_v27, %v965_v26 }
 0x410   :  { %3644 = vmatprep.mubr.bf16.mxu1 %v981_v29 }
 0x411   :  { %3645 = vmatmul.mubr.bf16.vlgmr.msra.gmra.mrb[16].mxu1 %v982_v28 }
 0x412   :  { %3693 = vmatpush3.bf16.msra.mxu1 %v4042_v11 }
 0x413   :  { %3694 = vmatprep.subr.bf16.mxu1 %v4043_v43 }
 0x416   :  { %v3618_v30 = vpop.f32.mrb[4].mxu1  ;;  %3695 = vmatpush3.bf16.msra.mxu1 %v4043_v43 }
 0x417   :  { %v927_v31 = vadd.f32 %v3618_v30, %v3229_v15  ;;  %v918_v32 = vpop.f32.mrb[5].mxu1 }
 0x418   :  { %v919_v33 = vadd.f32 %v3229_v15, %v918_v32  ;;  %v3619_v34 = vpop.f32.mrb[6].mxu1 }
 0x419   :  { %v930_v35 = vadd.f32 %v3619_v34, %v3229_v15  ;;  %v921_v36 = vpop.f32.mrb[7].mxu1  ;;  %v971_v38 = vmax.f32 %v927_v31, 0.0 }
 0x41a   :  { %v922_v37 = vadd.f32 %v3229_v15, %v921_v36  ;;  %v969_v40 = vmax.f32 %v919_v33, 0.0 }
 0x41b   :  { %v972_v39 = vmax.f32 %v930_v35, 0.0 }
 0x41c   :  { %v970_v41 = vmax.f32 %v922_v37, 0.0 }
 0x41d   :  { %v984_v42 = vpack.c.bf16 %v972_v39, %v971_v38 }
 0x41e   :  { %v983_v44 = vpack.c.bf16 %v970_v41, %v969_v40 }
 0x420   :  { %3648 = vmatprep.mubr.bf16.mxu1 %v983_v44 }
 0x421   :  { %3649 = vmatmul.mubr.bf16.gmra.mrb[20].mxu1 %v984_v42 }
 0x426   :  { %v3622_v45 = vpop.f32.mrb[8].mxu1 }
 0x427   :  { %v943_v46 = vadd.f32 %v3622_v45, %v3229_v15  ;;  %v934_v47 = vpop.f32.mrb[9].mxu1 }
 0x428   :  { %v935_v48 = vadd.f32 %v3229_v15, %v934_v47  ;;  %v3623_v49 = vpop.f32.mrb[10].mxu1 }
 0x429   :  { %v946_v50 = vadd.f32 %v3623_v49, %v3229_v15  ;;  %v937_v51 = vpop.f32.mrb[11].mxu1  ;;  %v975_v53 = vmax.f32 %v943_v46, 0.0 }
 0x42a   :  { %v938_v52 = vadd.f32 %v3229_v15, %v937_v51  ;;  %v973_v55 = vmax.f32 %v935_v48, 0.0 }
 0x42b   :  { %v976_v54 = vmax.f32 %v946_v50, 0.0 }
 0x42c   :  { %v974_v56 = vmax.f32 %v938_v52, 0.0 }
 0x42d   :  { %v986_v57 = vpack.c.bf16 %v976_v54, %v975_v53  ;;  %v4044_v54 = vld [vmem:[#allocation13 + $0x10] sm:$0xff]  }
 0x42e   :  { %v985_v58 = vpack.c.bf16 %v974_v56, %v973_v55  ;;  %3696 = vmatprep.subr.bf16.mxu1 %v4044_v54  ;;  %v4045_v55 = vld [vmem:[#allocation13 + $0x18] sm:$0xff]   ;;  %v4046_v56 = vld [vmem:[#allocation16] sm:$0xff]  }
 0x42f   :  { %3697 = vmatpush3.bf16.msra.mxu1 %v4044_v54  ;;  %3716 = vmatprep.subr.bf16.mxu0 %v4046_v56  ;;  %v4051_v54 = vld [vmem:[%s5211_s22 + $0x8] sm:$0xff]  }
 0x430   :  { %3652 = vmatprep.mubr.bf16.mxu1 %v985_v58  ;;  %3698 = vmatprep.subr.bf16.mxu1 %v4045_v55  ;;  %v3247_v58 = vld [vmem:[#allocation12] ss:$0 sm:$0xff] }
 0x431   :  { %3653 = vmatmul.mubr.bf16.gmra.mrb[24].mxu1 %v986_v57  ;;  %v4047_v57 = vld [vmem:[#allocation16 + $0x8] sm:$0xff]  }
 0x433   :  { %3699 = vmatpush3.bf16.msra.mxu1 %v4045_v55  ;;  %v3256_v55 = vld [vmem:[#allocation15] ss:$0 sm:$0xff] }
 0x436   :  { %v3626_v59 = vpop.f32.mrb[12].mxu1 }
 0x437   :  { %v959_v60 = vadd.f32 %v3626_v59, %v3229_v15  ;;  %v950_v61 = vpop.f32.mrb[13].mxu1 }
 0x438   :  { %v951_v62 = vadd.f32 %v3229_v15, %v950_v61  ;;  %v3627_v63 = vpop.f32.mrb[14].mxu1 }
 0x439   :  { %v962_v0 = vadd.f32 %v3627_v63, %v3229_v15  ;;  %v953_v1 = vpop.f32.mrb[15].mxu1  ;;  %v979_v3 = vmax.f32 %v959_v60, 0.0 }
 0x43a   :  { %v954_v2 = vadd.f32 %v3229_v15, %v953_v1  ;;  %v977_v5 = vmax.f32 %v951_v62, 0.0 }
 0x43b   :  { %v980_v4 = vmax.f32 %v962_v0, 0.0 }
 0x43c   :  { %v978_v6 = vmax.f32 %v954_v2, 0.0 }
 0x43d   :  { %v988_v7 = vpack.c.bf16 %v980_v4, %v979_v3 }
 0x43e   :  { %v987_v8 = vpack.c.bf16 %v978_v6, %v977_v5 }
 0x440   :  { %3656 = vmatprep.mubr.bf16.mxu1 %v987_v8 }
 0x441   :  { %3657 = vmatmul.mubr.bf16.gmra.mrb[28].mxu1 %v988_v7 }
 0x4e4   :  { %v3646_v12 = vpop.f32.mrb[16].mxu1 }
 0x4e5   :  { %v1094_v14 = vpop.f32.mrb[17].mxu1  ;;  %v1103_v16 = vadd.f32 %v3646_v12, %v3238_v13 }
 0x4e6   :  { %v3647_v15 = vpop.f32.mrb[18].mxu1  ;;  %v1095_v19 = vadd.f32 %v3238_v13, %v1094_v14 }
 0x4e7   :  { %v1106_v17 = vadd.f32 %v3647_v15, %v3238_v13  ;;  %v1097_v18 = vpop.f32.mrb[19].mxu1 }
 0x4e8   :  { %v1098_v20 = vadd.f32 %v3238_v13, %v1097_v18 }
 0x4e9   :  { %v1158_v21 = vpack.c.bf16 %v1106_v17, %v1103_v16 }
 0x4ea   :  { %v1157_v22 = vpack.c.bf16 %v1098_v20, %v1095_v19 }
 0x4ec   :  { %3676 = vmatprep.mubr.bf16.mxu0 %v1157_v22 }
 0x4ed   :  { %3677 = vmatmul.mubr.bf16.vlgmr.msra.gmra.mrb[32].mxu0 %v1158_v21 }
 0x4ee   :  { %3717 = vmatpush3.bf16.msra.mxu0 %v4046_v56 }
 0x4ef   :  { %3718 = vmatprep.subr.bf16.mxu0 %v4047_v57 }
 0x4f2   :  { %3719 = vmatpush3.bf16.msra.mxu0 %v4047_v57 }
 0x4f4   :  { %v3650_v23 = vpop.f32.mrb[20].mxu1 }
 0x4f5   :  { %v1110_v24 = vpop.f32.mrb[21].mxu1  ;;  %v1119_v26 = vadd.f32 %v3650_v23, %v3238_v13 }
 0x4f6   :  { %v3651_v25 = vpop.f32.mrb[22].mxu1  ;;  %v1111_v29 = vadd.f32 %v3238_v13, %v1110_v24 }
 0x4f7   :  { %v1122_v27 = vadd.f32 %v3651_v25, %v3238_v13  ;;  %v1113_v28 = vpop.f32.mrb[23].mxu1 }
 0x4f8   :  { %v1114_v30 = vadd.f32 %v3238_v13, %v1113_v28 }
 0x4f9   :  { %v1160_v31 = vpack.c.bf16 %v1122_v27, %v1119_v26 }
 0x4fa   :  { %v1159_v32 = vpack.c.bf16 %v1114_v30, %v1111_v29 }
 0x4fc   :  { %3680 = vmatprep.mubr.bf16.mxu0 %v1159_v32 }
 0x4fd   :  { %3681 = vmatmul.mubr.bf16.gmra.mrb[36].mxu0 %v1160_v31 }
 0x504   :  { %v3654_v33 = vpop.f32.mrb[24].mxu1 }
 0x505   :  { %v1126_v34 = vpop.f32.mrb[25].mxu1  ;;  %v1135_v36 = vadd.f32 %v3654_v33, %v3238_v13 }
 0x506   :  { %v3655_v35 = vpop.f32.mrb[26].mxu1  ;;  %v1127_v39 = vadd.f32 %v3238_v13, %v1126_v34 }
 0x507   :  { %v1138_v37 = vadd.f32 %v3655_v35, %v3238_v13  ;;  %v1129_v38 = vpop.f32.mrb[27].mxu1 }
 0x508   :  { %v1130_v40 = vadd.f32 %v3238_v13, %v1129_v38 }
 0x509   :  { %v1162_v41 = vpack.c.bf16 %v1138_v37, %v1135_v36 }
 0x50a   :  { %v1161_v42 = vpack.c.bf16 %v1130_v40, %v1127_v39 }
 0x50c   :  { %3684 = vmatprep.mubr.bf16.mxu0 %v1161_v42 }
 0x50d   :  { %3685 = vmatmul.mubr.bf16.gmra.mrb[40].mxu0 %v1162_v41 }
 0x514   :  { %v3658_v44 = vpop.f32.mrb[28].mxu1 }
 0x515   :  { %v1142_v45 = vpop.f32.mrb[29].mxu1  ;;  %v1151_v47 = vadd.f32 %v3658_v44, %v3238_v13 }
 0x516   :  { %v3659_v46 = vpop.f32.mrb[30].mxu1  ;;  %v1143_v50 = vadd.f32 %v3238_v13, %v1142_v45 }
 0x517   :  { %v1154_v48 = vadd.f32 %v3659_v46, %v3238_v13  ;;  %v1145_v49 = vpop.f32.mrb[31].mxu1 }
 0x518   :  { %v1146_v51 = vadd.f32 %v3238_v13, %v1145_v49 }
 0x519   :  { %v1164_v52 = vpack.c.bf16 %v1154_v48, %v1151_v47 }
 0x51a   :  { %v1163_v53 = vpack.c.bf16 %v1146_v51, %v1143_v50  ;;  %v4048_v51 = vld [vmem:[#allocation16 + $0x10] sm:$0xff]  }
 0x51b   :  { %3720 = vmatprep.subr.bf16.mxu0 %v4048_v51 }
 0x51c   :  { %3688 = vmatprep.mubr.bf16.mxu0 %v1163_v53  ;;  %3721 = vmatpush3.bf16.msra.mxu0 %v4048_v51  ;;  %v4050_v53 = vld [vmem:[%s5211_s22] sm:$0xff]   ;;  %v3269_v51 = vld [vmem:[#allocation18] ss:$0 sm:$0xff] }
 0x51d   :  { %3689 = vmatmul.mubr.bf16.gmra.mrb[44].mxu0 %v1164_v52  ;;  %v4049_v52 = vld [vmem:[#allocation16 + $0x18] sm:$0xff]   ;;  %3740 = vmatprep.subr.bf16.mxu1 %v4050_v53 }
 0x51e   :  { %3722 = vmatprep.subr.bf16.mxu0 %v4049_v52 }
 0x520   :  { %3723 = vmatpush3.bf16.msra.mxu0 %v4049_v52 }
 0x5c0   :  { %v3678_v59 = vpop.f32.mrb[32].mxu0 }
 0x5c1   :  { %v1279_v60 = vadd.f32 %v3678_v59, %v3247_v58  ;;  %v1270_v61 = vpop.f32.mrb[33].mxu0 }
 0x5c2   :  { %v1271_v62 = vadd.f32 %v3247_v58, %v1270_v61  ;;  %v3679_v63 = vpop.f32.mrb[34].mxu0 }
 0x5c3   :  { %v1282_v0 = vadd.f32 %v3679_v63, %v3247_v58  ;;  %v1273_v1 = vpop.f32.mrb[35].mxu0  ;;  %v1335_v3 = vmax.f32 %v1279_v60, 0.0 }
 0x5c4   :  { %v1274_v2 = vadd.f32 %v3247_v58, %v1273_v1  ;;  %v1333_v5 = vmax.f32 %v1271_v62, 0.0 }
 0x5c5   :  { %v1336_v4 = vmax.f32 %v1282_v0, 0.0 }
 0x5c6   :  { %v1334_v6 = vmax.f32 %v1274_v2, 0.0 }
 0x5c7   :  { %v1350_v7 = vpack.c.bf16 %v1336_v4, %v1335_v3 }
 0x5c8   :  { %v1349_v8 = vpack.c.bf16 %v1334_v6, %v1333_v5 }
 0x5ca   :  { %3700 = vmatprep.mubr.msk.bf16.mxu1 %vm1396_vm0, %v1349_v8 }
 0x5cb   :  { %3701 = vmatmul.mubr.msk.bf16.vlgmr.msra.gmra.mrb[32].mxu1 %vm1396_vm0, %v1350_v7 }
 0x5cc   :  { %3741 = vmatpush3.bf16.msra.mxu1 %v4050_v53 }
 0x5cd   :  { %3742 = vmatprep.subr.bf16.mxu1 %v4051_v54 }
 0x5d0   :  { %v3682_v9 = vpop.f32.mrb[36].mxu0  ;;  %3743 = vmatpush3.bf16.msra.mxu1 %v4051_v54 }
 0x5d1   :  { %v1295_v10 = vadd.f32 %v3682_v9, %v3247_v58  ;;  %v1286_v11 = vpop.f32.mrb[37].mxu0 }
 0x5d2   :  { %v1287_v43 = vadd.f32 %v3247_v58, %v1286_v11  ;;  %v3683_v12 = vpop.f32.mrb[38].mxu0 }
 0x5d3   :  { %v1298_v13 = vadd.f32 %v3683_v12, %v3247_v58  ;;  %v1289_v14 = vpop.f32.mrb[39].mxu0  ;;  %v1339_v16 = vmax.f32 %v1295_v10, 0.0 }
 0x5d4   :  { %v1290_v15 = vadd.f32 %v3247_v58, %v1289_v14  ;;  %v1337_v18 = vmax.f32 %v1287_v43, 0.0 }
 0x5d5   :  { %v1340_v17 = vmax.f32 %v1298_v13, 0.0 }
 0x5d6   :  { %v1338_v19 = vmax.f32 %v1290_v15, 0.0 }
 0x5d7   :  { %v1352_v20 = vpack.c.bf16 %v1340_v17, %v1339_v16 }
 0x5d8   :  { %v1351_v21 = vpack.c.bf16 %v1338_v19, %v1337_v18 }
 0x5da   :  { %3704 = vmatprep.mubr.msk.bf16.mxu1 %vm1396_vm0, %v1351_v21 }
 0x5db   :  { %3705 = vmatmul.mubr.msk.bf16.gmra.mrb[36].mxu1 %vm1396_vm0, %v1352_v20 }
 0x5e0   :  { %v3686_v22 = vpop.f32.mrb[40].mxu0 }
 0x5e1   :  { %v1311_v23 = vadd.f32 %v3686_v22, %v3247_v58  ;;  %v1302_v24 = vpop.f32.mrb[41].mxu0 }
 0x5e2   :  { %v1303_v25 = vadd.f32 %v3247_v58, %v1302_v24  ;;  %v3687_v26 = vpop.f32.mrb[42].mxu0 }
 0x5e3   :  { %v1314_v27 = vadd.f32 %v3687_v26, %v3247_v58  ;;  %v1305_v28 = vpop.f32.mrb[43].mxu0  ;;  %v1343_v30 = vmax.f32 %v1311_v23, 0.0 }
 0x5e4   :  { %v1306_v29 = vadd.f32 %v3247_v58, %v1305_v28  ;;  %v1341_v32 = vmax.f32 %v1303_v25, 0.0 }
 0x5e5   :  { %v1344_v31 = vmax.f32 %v1314_v27, 0.0 }
 0x5e6   :  { %v1342_v33 = vmax.f32 %v1306_v29, 0.0 }
 0x5e7   :  { %v1354_v34 = vpack.c.bf16 %v1344_v31, %v1343_v30 }
 0x5e8   :  { %v1353_v35 = vpack.c.bf16 %v1342_v33, %v1341_v32 }
 0x5ea   :  { %3708 = vmatprep.mubr.msk.bf16.mxu1 %vm1396_vm0, %v1353_v35 }
 0x5eb   :  { %3709 = vmatmul.mubr.msk.bf16.gmra.mrb[40].mxu1 %vm1396_vm0, %v1354_v34 }
 0x5f0   :  { %v3690_v36 = vpop.f32.mrb[44].mxu0 }
 0x5f1   :  { %v1327_v37 = vadd.f32 %v3690_v36, %v3247_v58  ;;  %v1318_v38 = vpop.f32.mrb[45].mxu0 }
 0x5f2   :  { %v1319_v39 = vadd.f32 %v3247_v58, %v1318_v38  ;;  %v3691_v40 = vpop.f32.mrb[46].mxu0 }
 0x5f3   :  { %v1330_v41 = vadd.f32 %v3691_v40, %v3247_v58  ;;  %v1321_v42 = vpop.f32.mrb[47].mxu0  ;;  %v1347_v45 = vmax.f32 %v1327_v37, 0.0 }
 0x5f4   :  { %v1322_v44 = vadd.f32 %v3247_v58, %v1321_v42  ;;  %v1345_v47 = vmax.f32 %v1319_v39, 0.0 }
 0x5f5   :  { %v1348_v46 = vmax.f32 %v1330_v41, 0.0 }
 0x5f6   :  { %v1346_v48 = vmax.f32 %v1322_v44, 0.0 }
 0x5f7   :  { %v1356_v49 = vpack.c.bf16 %v1348_v46, %v1347_v45 }
 0x5f8   :  { %v1355_v50 = vpack.c.bf16 %v1346_v48, %v1345_v47  ;;  %v4052_v48 = vld [vmem:[%s5211_s22 + $0x10] sm:$0xff]  }
 0x5f9   :  { %3744 = vmatprep.subr.bf16.mxu1 %v4052_v48 }
 0x5fa   :  { %3712 = vmatprep.mubr.msk.bf16.mxu1 %vm1396_vm0, %v1355_v50  ;;  %3745 = vmatpush3.bf16.msra.mxu1 %v4052_v48 }
 0x5fb   :  { %3713 = vmatmul.mubr.msk.bf16.gmra.mrb[44].mxu1 %vm1396_vm0, %v1356_v49  ;;  %v4053_v49 = vld [vmem:[%s5211_s22 + $0x18] sm:$0xff]  }
 0x5fc   :  { %3746 = vmatprep.subr.bf16.mxu1 %v4053_v49 }
 0x5fe   :  { %3747 = vmatpush3.bf16.msra.mxu1 %v4053_v49 }
 0x69e   :  { %v3702_v56 = vpop.f32.mrb[32].mxu1 }
 0x69f   :  { %v1464_v57 = vadd.f32 %v3702_v56, %v3256_v55  ;;  %v1455_v58 = vpop.f32.mrb[33].mxu1 }
 0x6a0   :  { %v1456_v59 = vadd.f32 %v3256_v55, %v1455_v58  ;;  %v3703_v60 = vpop.f32.mrb[34].mxu1 }
 0x6a1   :  { %v1467_v61 = vadd.f32 %v3703_v60, %v3256_v55  ;;  %v1458_v62 = vpop.f32.mrb[35].mxu1  ;;  %v1520_v0 = vmax.f32 %v1464_v57, 0.0 }
 0x6a2   :  { %v1459_v63 = vadd.f32 %v3256_v55, %v1458_v62  ;;  %v1518_v2 = vmax.f32 %v1456_v59, 0.0 }
 0x6a3   :  { %v1521_v1 = vmax.f32 %v1467_v61, 0.0 }
 0x6a4   :  { %v1519_v3 = vmax.f32 %v1459_v63, 0.0 }
 0x6a5   :  { %v1535_v4 = vpack.c.bf16 %v1521_v1, %v1520_v0 }
 0x6a6   :  { %v1534_v5 = vpack.c.bf16 %v1519_v3, %v1518_v2 }
 0x6a8   :  { %3724 = vmatprep.mubr.msk.bf16.mxu0 %vm1396_vm0, %v1534_v5 }
 0x6a9   :  { %3725 = vmatmul.mubr.msk.bf16.vlgmr.msra.gmra.mrb[48].mxu0 %vm1396_vm0, %v1535_v4 }
 0x6ae   :  { %v3706_v6 = vpop.f32.mrb[36].mxu1 }
 0x6af   :  { %v1480_v7 = vadd.f32 %v3706_v6, %v3256_v55  ;;  %v1471_v8 = vpop.f32.mrb[37].mxu1 }
 0x6b0   :  { %v1472_v9 = vadd.f32 %v3256_v55, %v1471_v8  ;;  %v3707_v10 = vpop.f32.mrb[38].mxu1 }
 0x6b1   :  { %v1483_v11 = vadd.f32 %v3707_v10, %v3256_v55  ;;  %v1474_v43 = vpop.f32.mrb[39].mxu1  ;;  %v1524_v13 = vmax.f32 %v1480_v7, 0.0 }
 0x6b2   :  { %v1475_v12 = vadd.f32 %v3256_v55, %v1474_v43  ;;  %v1522_v15 = vmax.f32 %v1472_v9, 0.0 }
 0x6b3   :  { %v1525_v14 = vmax.f32 %v1483_v11, 0.0 }
 0x6b4   :  { %v1523_v16 = vmax.f32 %v1475_v12, 0.0 }
 0x6b5   :  { %v1537_v17 = vpack.c.bf16 %v1525_v14, %v1524_v13 }
 0x6b6   :  { %v1536_v18 = vpack.c.bf16 %v1523_v16, %v1522_v15 }
 0x6b8   :  { %3728 = vmatprep.mubr.msk.bf16.mxu0 %vm1396_vm0, %v1536_v18 }
 0x6b9   :  { %3729 = vmatmul.mubr.msk.bf16.gmra.mrb[52].mxu0 %vm1396_vm0, %v1537_v17 }
 0x6be   :  { %v3710_v19 = vpop.f32.mrb[40].mxu1 }
 0x6bf   :  { %v1496_v20 = vadd.f32 %v3710_v19, %v3256_v55  ;;  %v1487_v21 = vpop.f32.mrb[41].mxu1 }
 0x6c0   :  { %v1488_v22 = vadd.f32 %v3256_v55, %v1487_v21  ;;  %v3711_v23 = vpop.f32.mrb[42].mxu1 }
 0x6c1   :  { %v1499_v24 = vadd.f32 %v3711_v23, %v3256_v55  ;;  %v1490_v25 = vpop.f32.mrb[43].mxu1  ;;  %v1528_v27 = vmax.f32 %v1496_v20, 0.0 }
 0x6c2   :  { %v1491_v26 = vadd.f32 %v3256_v55, %v1490_v25  ;;  %v1526_v29 = vmax.f32 %v1488_v22, 0.0 }
 0x6c3   :  { %v1529_v28 = vmax.f32 %v1499_v24, 0.0 }
 0x6c4   :  { %v1527_v30 = vmax.f32 %v1491_v26, 0.0  ;;  %v4054_v26 = vld [vmem:[#allocation21] sm:$0xff]  }
 0x6c5   :  { %v1539_v31 = vpack.c.bf16 %v1529_v28, %v1528_v27  ;;  %3764 = vmatprep.subr.bf16.mxu0 %v4054_v26  ;;  %v4055_v27 = vld [vmem:[#allocation21 + $0x8] sm:$0xff]   ;;  %v3282_v28 = vld [vmem:[#allocation19] ss:$0 sm:$0xff] }
 0x6c6   :  { %v1538_v32 = vpack.c.bf16 %v1527_v30, %v1526_v29  ;;  %3765 = vmatpush3.bf16.msra.mxu0 %v4054_v26 }
 0x6c7   :  { %3766 = vmatprep.subr.bf16.mxu0 %v4055_v27 }
 0x6c8   :  { %3732 = vmatprep.mubr.msk.bf16.mxu0 %vm1396_vm0, %v1538_v32 }
 0x6c9   :  { %3733 = vmatmul.mubr.msk.bf16.gmra.mrb[56].mxu0 %vm1396_vm0, %v1539_v31 }
 0x6ca   :  { %3767 = vmatpush3.bf16.msra.mxu0 %v4055_v27 }
 0x6ce   :  { %v3714_v33 = vpop.f32.mrb[44].mxu1 }
 0x6cf   :  { %v1512_v34 = vadd.f32 %v3714_v33, %v3256_v55  ;;  %v1503_v35 = vpop.f32.mrb[45].mxu1 }
 0x6d0   :  { %v1504_v36 = vadd.f32 %v3256_v55, %v1503_v35  ;;  %v3715_v37 = vpop.f32.mrb[46].mxu1 }
 0x6d1   :  { %v1515_v38 = vadd.f32 %v3715_v37, %v3256_v55  ;;  %v1506_v39 = vpop.f32.mrb[47].mxu1  ;;  %v1532_v41 = vmax.f32 %v1512_v34, 0.0 }
 0x6d2   :  { %v1507_v40 = vadd.f32 %v3256_v55, %v1506_v39  ;;  %v1530_v44 = vmax.f32 %v1504_v36, 0.0 }
 0x6d3   :  { %v1533_v42 = vmax.f32 %v1515_v38, 0.0 }
 0x6d4   :  { %v1531_v45 = vmax.f32 %v1507_v40, 0.0 }
 0x6d5   :  { %v1541_v46 = vpack.c.bf16 %v1533_v42, %v1532_v41 }
 0x6d6   :  { %v1540_v47 = vpack.c.bf16 %v1531_v45, %v1530_v44 }
 0x6d8   :  { %3736 = vmatprep.mubr.msk.bf16.mxu0 %vm1396_vm0, %v1540_v47 }
 0x6d9   :  { %3737 = vmatmul.mubr.msk.bf16.gmra.mrb[60].mxu0 %vm1396_vm0, %v1541_v46 }
 0x77c   :  { %v3726_v50 = vpop.f32.mrb[48].mxu0 }
 0x77d   :  { %v1639_v52 = vpop.f32.mrb[49].mxu0  ;;  %v1648_v54 = vadd.f32 %v3726_v50, %v3269_v51 }
 0x77e   :  { %v3727_v53 = vpop.f32.mrb[50].mxu0  ;;  %v1640_v57 = vadd.f32 %v3269_v51, %v1639_v52 }
 0x77f   :  { %v1651_v55 = vadd.f32 %v3727_v53, %v3269_v51  ;;  %v1642_v56 = vpop.f32.mrb[51].mxu0 }
 0x780   :  { %v1643_v58 = vadd.f32 %v3269_v51, %v1642_v56 }
 0x781   :  { %v1703_v59 = vpack.c.bf16 %v1651_v55, %v1648_v54 }
 0x782   :  { %v1702_v60 = vpack.c.bf16 %v1643_v58, %v1640_v57 }
 0x784   :  { %3748 = vmatprep.mubr.msk.bf16.mxu1 %vm1396_vm0, %v1702_v60 }
 0x785   :  { %3749 = vmatmul.mubr.msk.bf16.vlgmr.msra.gmra.mrb[48].mxu1 %vm1396_vm0, %v1703_v59 }
 0x78c   :  { %v3730_v61 = vpop.f32.mrb[52].mxu0 }
 0x78d   :  { %v1655_v62 = vpop.f32.mrb[53].mxu0  ;;  %v1664_v0 = vadd.f32 %v3730_v61, %v3269_v51 }
 0x78e   :  { %v3731_v63 = vpop.f32.mrb[54].mxu0  ;;  %v1656_v3 = vadd.f32 %v3269_v51, %v1655_v62 }
 0x78f   :  { %v1667_v1 = vadd.f32 %v3731_v63, %v3269_v51  ;;  %v1658_v2 = vpop.f32.mrb[55].mxu0 }
 0x790   :  { %v1659_v4 = vadd.f32 %v3269_v51, %v1658_v2 }
 0x791   :  { %v1705_v5 = vpack.c.bf16 %v1667_v1, %v1664_v0 }
 0x792   :  { %v1704_v6 = vpack.c.bf16 %v1659_v4, %v1656_v3 }
 0x794   :  { %3752 = vmatprep.mubr.msk.bf16.mxu1 %vm1396_vm0, %v1704_v6 }
 0x795   :  { %3753 = vmatmul.mubr.msk.bf16.gmra.mrb[52].mxu1 %vm1396_vm0, %v1705_v5 }
 0x79c   :  { %v3734_v7 = vpop.f32.mrb[56].mxu0 }
 0x79d   :  { %v1671_v8 = vpop.f32.mrb[57].mxu0  ;;  %v1680_v10 = vadd.f32 %v3734_v7, %v3269_v51 }
 0x79e   :  { %v3735_v9 = vpop.f32.mrb[58].mxu0  ;;  %v1672_v12 = vadd.f32 %v3269_v51, %v1671_v8 }
 0x79f   :  { %v1683_v11 = vadd.f32 %v3735_v9, %v3269_v51  ;;  %v1674_v43 = vpop.f32.mrb[59].mxu0 }
 0x7a0   :  { %v1675_v13 = vadd.f32 %v3269_v51, %v1674_v43 }
 0x7a1   :  { %v1707_v14 = vpack.c.bf16 %v1683_v11, %v1680_v10 }
 0x7a2   :  { %v1706_v15 = vpack.c.bf16 %v1675_v13, %v1672_v12 }
 0x7a4   :  { %3756 = vmatprep.mubr.msk.bf16.mxu1 %vm1396_vm0, %v1706_v15 }
 0x7a5   :  { %3757 = vmatmul.mubr.msk.bf16.gmra.mrb[56].mxu1 %vm1396_vm0, %v1707_v14 }
 0x7ac   :  { %v3738_v16 = vpop.f32.mrb[60].mxu0 }
 0x7ad   :  { %v1687_v17 = vpop.f32.mrb[61].mxu0  ;;  %v1696_v19 = vadd.f32 %v3738_v16, %v3269_v51 }
 0x7ae   :  { %v3739_v18 = vpop.f32.mrb[62].mxu0  ;;  %v1688_v22 = vadd.f32 %v3269_v51, %v1687_v17 }
 0x7af   :  { %v1699_v20 = vadd.f32 %v3739_v18, %v3269_v51  ;;  %v1690_v21 = vpop.f32.mrb[63].mxu0 }
 0x7b0   :  { %v1691_v23 = vadd.f32 %v3269_v51, %v1690_v21  ;;  %v4056_v21 = vld [vmem:[#allocation24] sm:$0xff]  }
 0x7b1   :  { %v1709_v24 = vpack.c.bf16 %v1699_v20, %v1696_v19  ;;  %3784 = vmatprep.subr.bf16.mxu1 %v4056_v21 }
 0x7b2   :  { %v1708_v25 = vpack.c.bf16 %v1691_v23, %v1688_v22  ;;  %3785 = vmatpush3.bf16.msra.mxu1 %v4056_v21  ;;  %v4057_v22 = vld [vmem:[#allocation24 + $0x8] sm:$0xff]   ;;  %v3295_v23 = vld [vmem:[#allocation22] ss:$0 sm:$0xff] }
 0x7b3   :  { %3786 = vmatprep.subr.bf16.mxu1 %v4057_v22 }
 0x7b4   :  { %3760 = vmatprep.mubr.msk.bf16.mxu1 %vm1396_vm0, %v1708_v25 }
 0x7b5   :  { %3761 = vmatmul.mubr.msk.bf16.gmra.mrb[60].mxu1 %vm1396_vm0, %v1709_v24 }
 0x7b6   :  { %3787 = vmatpush3.bf16.msra.mxu1 %v4057_v22 }
 0x858   :  { %v3750_v29 = vpop.f32.mrb[48].mxu1 }
 0x859   :  { %v1816_v30 = vadd.f32 %v3750_v29, %v3282_v28  ;;  %v1807_v31 = vpop.f32.mrb[49].mxu1 }
 0x85a   :  { %v1808_v32 = vadd.f32 %v3282_v28, %v1807_v31  ;;  %v3751_v33 = vpop.f32.mrb[50].mxu1 }
 0x85b   :  { %v1819_v34 = vadd.f32 %v3751_v33, %v3282_v28  ;;  %v1810_v35 = vpop.f32.mrb[51].mxu1  ;;  %v1872_v37 = vmax.f32 %v1816_v30, 0.0 }
 0x85c   :  { %v1811_v36 = vadd.f32 %v3282_v28, %v1810_v35  ;;  %v1870_v39 = vmax.f32 %v1808_v32, 0.0 }
 0x85d   :  { %v1873_v38 = vmax.f32 %v1819_v34, 0.0 }
 0x85e   :  { %v1871_v40 = vmax.f32 %v1811_v36, 0.0 }
 0x85f   :  { %v1887_v41 = vpack.c.bf16 %v1873_v38, %v1872_v37 }
 0x860   :  { %v1886_v42 = vpack.c.bf16 %v1871_v40, %v1870_v39 }
 0x862   :  { %3768 = vmatprep.mubr.msk.bf16.mxu0 %vm1917_vm1, %v1886_v42 }
 0x863   :  { %3769 = vmatmul.mubr.msk.bf16.vlgmr.msra.gmra.mrb[64].mxu0 %vm1917_vm1, %v1887_v41 }
 0x868   :  { %v3754_v44 = vpop.f32.mrb[52].mxu1 }
 0x869   :  { %v1832_v45 = vadd.f32 %v3754_v44, %v3282_v28  ;;  %v1823_v46 = vpop.f32.mrb[53].mxu1 }
 0x86a   :  { %v1824_v47 = vadd.f32 %v3282_v28, %v1823_v46  ;;  %v3755_v48 = vpop.f32.mrb[54].mxu1 }
 0x86b   :  { %v1835_v49 = vadd.f32 %v3755_v48, %v3282_v28  ;;  %v1826_v50 = vpop.f32.mrb[55].mxu1  ;;  %v1876_v52 = vmax.f32 %v1832_v45, 0.0 }
 0x86c   :  { %v1827_v51 = vadd.f32 %v3282_v28, %v1826_v50  ;;  %v1874_v54 = vmax.f32 %v1824_v47, 0.0 }
 0x86d   :  { %v1877_v53 = vmax.f32 %v1835_v49, 0.0 }
 0x86e   :  { %v1875_v55 = vmax.f32 %v1827_v51, 0.0 }
 0x86f   :  { %v1889_v56 = vpack.c.bf16 %v1877_v53, %v1876_v52 }
 0x870   :  { %v1888_v57 = vpack.c.bf16 %v1875_v55, %v1874_v54 }
 0x872   :  { %3772 = vmatprep.mubr.msk.bf16.mxu0 %vm1917_vm1, %v1888_v57 }
 0x873   :  { %3773 = vmatmul.mubr.msk.bf16.gmra.mrb[68].mxu0 %vm1917_vm1, %v1889_v56 }
 0x878   :  { %v3758_v58 = vpop.f32.mrb[56].mxu1 }
 0x879   :  { %v1848_v59 = vadd.f32 %v3758_v58, %v3282_v28  ;;  %v1839_v60 = vpop.f32.mrb[57].mxu1 }
 0x87a   :  { %v1840_v61 = vadd.f32 %v3282_v28, %v1839_v60  ;;  %v3759_v62 = vpop.f32.mrb[58].mxu1 }
 0x87b   :  { %v1851_v63 = vadd.f32 %v3759_v62, %v3282_v28  ;;  %v1842_v0 = vpop.f32.mrb[59].mxu1  ;;  %v1880_v2 = vmax.f32 %v1848_v59, 0.0 }
 0x87c   :  { %v1843_v1 = vadd.f32 %v3282_v28, %v1842_v0  ;;  %v1878_v4 = vmax.f32 %v1840_v61, 0.0 }
 0x87d   :  { %v1881_v3 = vmax.f32 %v1851_v63, 0.0 }
 0x87e   :  { %v1879_v5 = vmax.f32 %v1843_v1, 0.0 }
 0x87f   :  { %v1891_v6 = vpack.c.bf16 %v1881_v3, %v1880_v2 }
 0x880   :  { %v1890_v7 = vpack.c.bf16 %v1879_v5, %v1878_v4 }
 0x882   :  { %3776 = vmatprep.mubr.msk.bf16.mxu0 %vm1917_vm1, %v1890_v7 }
 0x883   :  { %3777 = vmatmul.mubr.msk.bf16.gmra.mrb[72].mxu0 %vm1917_vm1, %v1891_v6 }
 0x888   :  { %v3762_v8 = vpop.f32.mrb[60].mxu1 }
 0x889   :  { %v1864_v9 = vadd.f32 %v3762_v8, %v3282_v28  ;;  %v1855_v10 = vpop.f32.mrb[61].mxu1 }
 0x88a   :  { %v1856_v11 = vadd.f32 %v3282_v28, %v1855_v10  ;;  %v3763_v43 = vpop.f32.mrb[62].mxu1 }
 0x88b   :  { %v1867_v12 = vadd.f32 %v3763_v43, %v3282_v28  ;;  %v1858_v13 = vpop.f32.mrb[63].mxu1  ;;  %v1884_v15 = vmax.f32 %v1864_v9, 0.0 }
 0x88c   :  { %v1859_v14 = vadd.f32 %v3282_v28, %v1858_v13  ;;  %v1882_v17 = vmax.f32 %v1856_v11, 0.0 }
 0x88d   :  { %v1885_v16 = vmax.f32 %v1867_v12, 0.0 }
 0x88e   :  { %v1883_v18 = vmax.f32 %v1859_v14, 0.0 }
 0x88f   :  { %v1893_v19 = vpack.c.bf16 %v1885_v16, %v1884_v15  ;;  %v4058_v16 = vld [vmem:[%s5212_s24] sm:$0xff]  }
 0x890   :  { %v1892_v20 = vpack.c.bf16 %v1883_v18, %v1882_v17  ;;  %3804 = vmatprep.subr.bf16.mxu0 %v4058_v16  ;;  %v4059_v17 = vld [vmem:[%s5212_s24 + $0x8] sm:$0xff]  }
 0x891   :  { %3805 = vmatpush3.bf16.msra.mxu0 %v4058_v16 }
 0x892   :  { %3780 = vmatprep.mubr.msk.bf16.mxu0 %vm1917_vm1, %v1892_v20  ;;  %3806 = vmatprep.subr.bf16.mxu0 %v4059_v17 }
 0x893   :  { %3781 = vmatmul.mubr.msk.bf16.gmra.mrb[76].mxu0 %vm1917_vm1, %v1893_v19  ;;  %v3306_v19 = vld [vmem:[#allocation25] ss:$0 sm:$0xff] }
 0x895   :  { %3807 = vmatpush3.bf16.msra.mxu0 %v4059_v17 }
 0x936   :  { %v3770_v24 = vpop.f32.mrb[64].mxu0 }
 0x937   :  { %v1985_v25 = vadd.f32 %v3770_v24, %v3295_v23  ;;  %v1976_v26 = vpop.f32.mrb[65].mxu0 }
 0x938   :  { %v1977_v27 = vadd.f32 %v3295_v23, %v1976_v26  ;;  %v3771_v28 = vpop.f32.mrb[66].mxu0 }
 0x939   :  { %v1988_v29 = vadd.f32 %v3771_v28, %v3295_v23  ;;  %v1979_v30 = vpop.f32.mrb[67].mxu0  ;;  %v2041_v32 = vmax.f32 %v1985_v25, 0.0 }
 0x93a   :  { %v1980_v31 = vadd.f32 %v3295_v23, %v1979_v30  ;;  %v2039_v34 = vmax.f32 %v1977_v27, 0.0 }
 0x93b   :  { %v2042_v33 = vmax.f32 %v1988_v29, 0.0 }
 0x93c   :  { %v2040_v35 = vmax.f32 %v1980_v31, 0.0 }
 0x93d   :  { %v2056_v36 = vpack.c.bf16 %v2042_v33, %v2041_v32 }
 0x93e   :  { %v2055_v37 = vpack.c.bf16 %v2040_v35, %v2039_v34 }
 0x940   :  { %3788 = vmatprep.mubr.msk.bf16.mxu1 %vm1917_vm1, %v2055_v37 }
 0x941   :  { %3789 = vmatmul.mubr.msk.bf16.vlgmr.msra.gmra.mrb[64].mxu1 %vm1917_vm1, %v2056_v36 }
 0x946   :  { %v3774_v38 = vpop.f32.mrb[68].mxu0 }
 0x947   :  { %v2001_v39 = vadd.f32 %v3774_v38, %v3295_v23  ;;  %v1992_v40 = vpop.f32.mrb[69].mxu0 }
 0x948   :  { %v1993_v41 = vadd.f32 %v3295_v23, %v1992_v40  ;;  %v3775_v42 = vpop.f32.mrb[70].mxu0 }
 0x949   :  { %v2004_v44 = vadd.f32 %v3775_v42, %v3295_v23  ;;  %v1995_v45 = vpop.f32.mrb[71].mxu0  ;;  %v2045_v47 = vmax.f32 %v2001_v39, 0.0 }
 0x94a   :  { %v1996_v46 = vadd.f32 %v3295_v23, %v1995_v45  ;;  %v2043_v49 = vmax.f32 %v1993_v41, 0.0 }
 0x94b   :  { %v2046_v48 = vmax.f32 %v2004_v44, 0.0 }
 0x94c   :  { %v2044_v50 = vmax.f32 %v1996_v46, 0.0 }
 0x94d   :  { %v2058_v51 = vpack.c.bf16 %v2046_v48, %v2045_v47 }
 0x94e   :  { %v2057_v52 = vpack.c.bf16 %v2044_v50, %v2043_v49 }
 0x950   :  { %3792 = vmatprep.mubr.msk.bf16.mxu1 %vm1917_vm1, %v2057_v52 }
 0x951   :  { %3793 = vmatmul.mubr.msk.bf16.gmra.mrb[68].mxu1 %vm1917_vm1, %v2058_v51 }
 0x956   :  { %v3778_v53 = vpop.f32.mrb[72].mxu0 }
 0x957   :  { %v2017_v54 = vadd.f32 %v3778_v53, %v3295_v23  ;;  %v2008_v55 = vpop.f32.mrb[73].mxu0 }
 0x958   :  { %v2009_v56 = vadd.f32 %v3295_v23, %v2008_v55  ;;  %v3779_v57 = vpop.f32.mrb[74].mxu0 }
 0x959   :  { %v2020_v58 = vadd.f32 %v3779_v57, %v3295_v23  ;;  %v2011_v59 = vpop.f32.mrb[75].mxu0  ;;  %v2049_v61 = vmax.f32 %v2017_v54, 0.0 }
 0x95a   :  { %v2012_v60 = vadd.f32 %v3295_v23, %v2011_v59  ;;  %v2047_v63 = vmax.f32 %v2009_v56, 0.0 }
 0x95b   :  { %v2050_v62 = vmax.f32 %v2020_v58, 0.0 }
 0x95c   :  { %v2048_v0 = vmax.f32 %v2012_v60, 0.0  ;;  %v2383_v60 = vld [vmem:[#allocation28] sm:$0xf] }
 0x95d   :  { %v2060_v1 = vpack.c.bf16 %v2050_v62, %v2049_v61  ;;  %3914 = vmatprep.subr.msk.bf16.mxu1 %vm2416_vm2, %v2383_v60  ;;  %v2418_v61 = vsel %vm2416_vm2, %v2383_v60, 0  ;;  %v3317_v62 = vld [vmem:[#allocation27] ss:$0 sm:$0xff] }
 0x95e   :  { %v2059_v2 = vpack.c.bf16 %v2048_v0, %v2047_v63  ;;  %3825 = vmatpush3.bf16.msra.mxu1 %v2418_v61 }
 0x960   :  { %3796 = vmatprep.mubr.msk.bf16.mxu1 %vm1917_vm1, %v2059_v2 }
 0x961   :  { %3797 = vmatmul.mubr.msk.bf16.gmra.mrb[72].mxu1 %vm1917_vm1, %v2060_v1 }
 0x966   :  { %v3782_v3 = vpop.f32.mrb[76].mxu0 }
 0x967   :  { %v2033_v4 = vadd.f32 %v3782_v3, %v3295_v23  ;;  %v2024_v5 = vpop.f32.mrb[77].mxu0 }
 0x968   :  { %v2025_v6 = vadd.f32 %v3295_v23, %v2024_v5  ;;  %v3783_v7 = vpop.f32.mrb[78].mxu0 }
 0x969   :  { %v2036_v8 = vadd.f32 %v3783_v7, %v3295_v23  ;;  %v2027_v9 = vpop.f32.mrb[79].mxu0  ;;  %v2053_v11 = vmax.f32 %v2033_v4, 0.0 }
 0x96a   :  { %v2028_v10 = vadd.f32 %v3295_v23, %v2027_v9  ;;  %v2051_v12 = vmax.f32 %v2025_v6, 0.0 }
 0x96b   :  { %v2054_v43 = vmax.f32 %v2036_v8, 0.0 }
 0x96c   :  { %v2052_v13 = vmax.f32 %v2028_v10, 0.0 }
 0x96d   :  { %v2062_v14 = vpack.c.bf16 %v2054_v43, %v2053_v11 }
 0x96e   :  { %v2061_v15 = vpack.c.bf16 %v2052_v13, %v2051_v12 }
 0x970   :  { %3800 = vmatprep.mubr.msk.bf16.mxu1 %vm1917_vm1, %v2061_v15 }
 0x971   :  { %3801 = vmatmul.mubr.msk.bf16.gmra.mrb[76].mxu1 %vm1917_vm1, %v2062_v14 }
 0xa14   :  { %v3790_v18 = vpop.f32.mrb[64].mxu1 }
 0xa15   :  { %v2144_v20 = vpop.f32.mrb[65].mxu1  ;;  %v2153_v22 = vadd.f32 %v3790_v18, %v3306_v19 }
 0xa16   :  { %v3791_v21 = vpop.f32.mrb[66].mxu1  ;;  %v2145_v25 = vadd.f32 %v3306_v19, %v2144_v20 }
 0xa17   :  { %v2156_v23 = vadd.f32 %v3791_v21, %v3306_v19  ;;  %v2147_v24 = vpop.f32.mrb[67].mxu1 }
 0xa18   :  { %v2148_v26 = vadd.f32 %v3306_v19, %v2147_v24 }
 0xa19   :  { %v2208_v27 = vpack.c.bf16 %v2156_v23, %v2153_v22 }
 0xa1a   :  { %v2207_v28 = vpack.c.bf16 %v2148_v26, %v2145_v25 }
 0xa1c   :  { %3808 = vmatprep.mubr.msk.bf16.mxu0 %vm1917_vm1, %v2207_v28 }
 0xa1d   :  { %3809 = vmatmul.mubr.msk.bf16.vlgmr.msra.gmra.mrb[80].mxu0 %vm1917_vm1, %v2208_v27 }
 0xa24   :  { %v3794_v29 = vpop.f32.mrb[68].mxu1 }
 0xa25   :  { %v2160_v30 = vpop.f32.mrb[69].mxu1  ;;  %v2169_v32 = vadd.f32 %v3794_v29, %v3306_v19 }
 0xa26   :  { %v3795_v31 = vpop.f32.mrb[70].mxu1  ;;  %v2161_v35 = vadd.f32 %v3306_v19, %v2160_v30 }
 0xa27   :  { %v2172_v33 = vadd.f32 %v3795_v31, %v3306_v19  ;;  %v2163_v34 = vpop.f32.mrb[71].mxu1 }
 0xa28   :  { %v2164_v36 = vadd.f32 %v3306_v19, %v2163_v34 }
 0xa29   :  { %v2210_v37 = vpack.c.bf16 %v2172_v33, %v2169_v32 }
 0xa2a   :  { %v2209_v38 = vpack.c.bf16 %v2164_v36, %v2161_v35 }
 0xa2c   :  { %3812 = vmatprep.mubr.msk.bf16.mxu0 %vm1917_vm1, %v2209_v38 }
 0xa2d   :  { %3813 = vmatmul.mubr.msk.bf16.gmra.mrb[84].mxu0 %vm1917_vm1, %v2210_v37 }
 0xa34   :  { %v3798_v39 = vpop.f32.mrb[72].mxu1 }
 0xa35   :  { %v2176_v40 = vpop.f32.mrb[73].mxu1  ;;  %v2185_v42 = vadd.f32 %v3798_v39, %v3306_v19 }
 0xa36   :  { %v3799_v41 = vpop.f32.mrb[74].mxu1  ;;  %v2177_v46 = vadd.f32 %v3306_v19, %v2176_v40 }
 0xa37   :  { %v2188_v44 = vadd.f32 %v3799_v41, %v3306_v19  ;;  %v2179_v45 = vpop.f32.mrb[75].mxu1 }
 0xa38   :  { %v2180_v47 = vadd.f32 %v3306_v19, %v2179_v45 }
 0xa39   :  { %v2212_v48 = vpack.c.bf16 %v2188_v44, %v2185_v42 }
 0xa3a   :  { %v2211_v49 = vpack.c.bf16 %v2180_v47, %v2177_v46 }
 0xa3c   :  { %3816 = vmatprep.mubr.msk.bf16.mxu0 %vm1917_vm1, %v2211_v49 }
 0xa3d   :  { %3817 = vmatmul.mubr.msk.bf16.gmra.mrb[88].mxu0 %vm1917_vm1, %v2212_v48 }
 0xa44   :  { %v3802_v50 = vpop.f32.mrb[76].mxu1 }
 0xa45   :  { %v2192_v51 = vpop.f32.mrb[77].mxu1  ;;  %v2201_v53 = vadd.f32 %v3802_v50, %v3306_v19 }
 0xa46   :  { %v3803_v52 = vpop.f32.mrb[78].mxu1  ;;  %v2193_v56 = vadd.f32 %v3306_v19, %v2192_v51 }
 0xa47   :  { %v2204_v54 = vadd.f32 %v3803_v52, %v3306_v19  ;;  %v2195_v55 = vpop.f32.mrb[79].mxu1 }
 0xa48   :  { %v2196_v57 = vadd.f32 %v3306_v19, %v2195_v55  ;;  %v2541_v55 = vld [vmem:[#allocation31] sm:$0xf] }
 0xa49   :  { %v2214_v58 = vpack.c.bf16 %v2204_v54, %v2201_v53  ;;  %3915 = vmatprep.subr.msk.bf16.mxu0 %vm2416_vm2, %v2541_v55 }
 0xa4a   :  { %v2213_v59 = vpack.c.bf16 %v2196_v57, %v2193_v56  ;;  %v2574_v56 = vsel %vm2416_vm2, %v2541_v55, 0  ;;  %v3328_v57 = vld [vmem:[#allocation30] ss:$0 sm:$0xff] }
 0xa4b   :  { %3843 = vmatpush3.bf16.msra.mxu0 %v2574_v56 }
 0xa4c   :  { %3820 = vmatprep.mubr.msk.bf16.mxu0 %vm1917_vm1, %v2213_v59 }
 0xa4d   :  { %3821 = vmatmul.mubr.msk.bf16.gmra.mrb[92].mxu0 %vm1917_vm1, %v2214_v58 }
 0xaf0   :  { %v3810_v63 = vpop.f32.mrb[80].mxu0 }
 0xaf1   :  { %v2305_v0 = vadd.f32 %v3810_v63, %v3317_v62  ;;  %v2296_v1 = vpop.f32.mrb[81].mxu0 }
 0xaf2   :  { %v2297_v2 = vadd.f32 %v3317_v62, %v2296_v1  ;;  %v3811_v3 = vpop.f32.mrb[82].mxu0 }
 0xaf3   :  { %v2308_v4 = vadd.f32 %v3811_v3, %v3317_v62  ;;  %v2299_v5 = vpop.f32.mrb[83].mxu0  ;;  %v2361_v7 = vmax.f32 %v2305_v0, 0.0 }
 0xaf4   :  { %v2300_v6 = vadd.f32 %v3317_v62, %v2299_v5  ;;  %v2359_v9 = vmax.f32 %v2297_v2, 0.0 }
 0xaf5   :  { %v2362_v8 = vmax.f32 %v2308_v4, 0.0 }
 0xaf6   :  { %v2360_v10 = vmax.f32 %v2300_v6, 0.0 }
 0xaf7   :  { %v2376_v11 = vpack.c.bf16 %v2362_v8, %v2361_v7 }
 0xaf8   :  { %v2375_v43 = vpack.c.bf16 %v2360_v10, %v2359_v9 }
 0xafa   :  { %3826 = vmatprep.mubr.msk.bf16.mxu1 %vm2391_vm3, %v2375_v43 }
 0xafb   :  { %3827 = vmatmul.mubr.msk.bf16.vlgmr.msra.gmra.mrb[80].mxu1 %vm2391_vm3, %v2376_v11 }
 0xb00   :  { %v3814_v12 = vpop.f32.mrb[84].mxu0 }
 0xb01   :  { %v2321_v13 = vadd.f32 %v3814_v12, %v3317_v62  ;;  %v2312_v14 = vpop.f32.mrb[85].mxu0 }
 0xb02   :  { %v2313_v15 = vadd.f32 %v3317_v62, %v2312_v14  ;;  %v3815_v16 = vpop.f32.mrb[86].mxu0 }
 0xb03   :  { %v2324_v17 = vadd.f32 %v3815_v16, %v3317_v62  ;;  %v2315_v18 = vpop.f32.mrb[87].mxu0  ;;  %v2365_v20 = vmax.f32 %v2321_v13, 0.0 }
 0xb04   :  { %v2316_v19 = vadd.f32 %v3317_v62, %v2315_v18  ;;  %v2363_v22 = vmax.f32 %v2313_v15, 0.0 }
 0xb05   :  { %v2366_v21 = vmax.f32 %v2324_v17, 0.0 }
 0xb06   :  { %v2364_v23 = vmax.f32 %v2316_v19, 0.0 }
 0xb07   :  { %v2378_v24 = vpack.c.bf16 %v2366_v21, %v2365_v20 }
 0xb08   :  { %v2377_v25 = vpack.c.bf16 %v2364_v23, %v2363_v22 }
 0xb0a   :  { %3830 = vmatprep.mubr.msk.bf16.mxu1 %vm2391_vm3, %v2377_v25 }
 0xb0b   :  { %3831 = vmatmul.mubr.msk.bf16.gmra.mrb[84].mxu1 %vm2391_vm3, %v2378_v24 }
 0xb10   :  { %v3818_v26 = vpop.f32.mrb[88].mxu0 }
 0xb11   :  { %v2337_v27 = vadd.f32 %v3818_v26, %v3317_v62  ;;  %v2328_v28 = vpop.f32.mrb[89].mxu0 }
 0xb12   :  { %v2329_v29 = vadd.f32 %v3317_v62, %v2328_v28  ;;  %v3819_v30 = vpop.f32.mrb[90].mxu0 }
 0xb13   :  { %v2340_v31 = vadd.f32 %v3819_v30, %v3317_v62  ;;  %v2331_v32 = vpop.f32.mrb[91].mxu0  ;;  %v2369_v34 = vmax.f32 %v2337_v27, 0.0 }
 0xb14   :  { %v2332_v33 = vadd.f32 %v3317_v62, %v2331_v32  ;;  %v2367_v36 = vmax.f32 %v2329_v29, 0.0 }
 0xb15   :  { %v2370_v35 = vmax.f32 %v2340_v31, 0.0 }
 0xb16   :  { %v2368_v37 = vmax.f32 %v2332_v33, 0.0 }
 0xb17   :  { %v2380_v38 = vpack.c.bf16 %v2370_v35, %v2369_v34 }
 0xb18   :  { %v2379_v39 = vpack.c.bf16 %v2368_v37, %v2367_v36 }
 0xb1a   :  { %3834 = vmatprep.mubr.msk.bf16.mxu1 %vm2391_vm3, %v2379_v39 }
 0xb1b   :  { %3835 = vmatmul.mubr.msk.bf16.gmra.mrb[88].mxu1 %vm2391_vm3, %v2380_v38 }
 0xb20   :  { %v3822_v40 = vpop.f32.mrb[92].mxu0 }
 0xb21   :  { %v2353_v41 = vadd.f32 %v3822_v40, %v3317_v62  ;;  %v2344_v42 = vpop.f32.mrb[93].mxu0 }
 0xb22   :  { %v2345_v44 = vadd.f32 %v3317_v62, %v2344_v42  ;;  %v3823_v45 = vpop.f32.mrb[94].mxu0 }
 0xb23   :  { %v2356_v46 = vadd.f32 %v3823_v45, %v3317_v62  ;;  %v2347_v47 = vpop.f32.mrb[95].mxu0  ;;  %v2373_v49 = vmax.f32 %v2353_v41, 0.0 }
 0xb24   :  { %v2348_v48 = vadd.f32 %v3317_v62, %v2347_v47  ;;  %v2371_v51 = vmax.f32 %v2345_v44, 0.0 }
 0xb25   :  { %v2374_v50 = vmax.f32 %v2356_v46, 0.0 }
 0xb26   :  { %v2372_v52 = vmax.f32 %v2348_v48, 0.0 }
 0xb27   :  { %v2382_v53 = vpack.c.bf16 %v2374_v50, %v2373_v49  ;;  %v2681_v50 = vld [vmem:[%s5213_s25] sm:$0xf] }
 0xb28   :  { %v2381_v54 = vpack.c.bf16 %v2372_v52, %v2371_v51  ;;  %3916 = vmatprep.subr.msk.bf16.mxu1 %vm2416_vm2, %v2681_v50  ;;  %v2714_v51 = vsel %vm2416_vm2, %v2681_v50, 0 }
 0xb29   :  { %3861 = vmatpush3.bf16.msra.mxu1 %v2714_v51 }
 0xb2a   :  { %3838 = vmatprep.mubr.msk.bf16.mxu1 %vm2391_vm3, %v2381_v54 }
 0xb2b   :  { %3839 = vmatmul.mubr.msk.bf16.gmra.mrb[92].mxu1 %vm2391_vm3, %v2382_v53  ;;  %v3337_v53 = vld [vmem:[#allocation33] ss:$0 sm:$0xff] }
 0xbce   :  { %v3828_v58 = vpop.f32.mrb[80].mxu1 }
 0xbcf   :  { %v2463_v59 = vadd.f32 %v3828_v58, %v3328_v57  ;;  %v2454_v60 = vpop.f32.mrb[81].mxu1 }
 0xbd0   :  { %v2455_v61 = vadd.f32 %v3328_v57, %v2454_v60  ;;  %v3829_v62 = vpop.f32.mrb[82].mxu1 }
 0xbd1   :  { %v2466_v63 = vadd.f32 %v3829_v62, %v3328_v57  ;;  %v2457_v0 = vpop.f32.mrb[83].mxu1  ;;  %v2519_v2 = vmax.f32 %v2463_v59, 0.0 }
 0xbd2   :  { %v2458_v1 = vadd.f32 %v3328_v57, %v2457_v0  ;;  %v2517_v4 = vmax.f32 %v2455_v61, 0.0 }
 0xbd3   :  { %v2520_v3 = vmax.f32 %v2466_v63, 0.0 }
 0xbd4   :  { %v2518_v5 = vmax.f32 %v2458_v1, 0.0 }
 0xbd5   :  { %v2534_v6 = vpack.c.bf16 %v2520_v3, %v2519_v2 }
 0xbd6   :  { %v2533_v7 = vpack.c.bf16 %v2518_v5, %v2517_v4 }
 0xbd8   :  { %3844 = vmatprep.mubr.msk.bf16.mxu0 %vm2391_vm3, %v2533_v7 }
 0xbd9   :  { %3845 = vmatmul.mubr.msk.bf16.vlgmr.msra.gmra.mrb[96].mxu0 %vm2391_vm3, %v2534_v6 }
 0xbde   :  { %v3832_v8 = vpop.f32.mrb[84].mxu1 }
 0xbdf   :  { %v2479_v9 = vadd.f32 %v3832_v8, %v3328_v57  ;;  %v2470_v10 = vpop.f32.mrb[85].mxu1 }
 0xbe0   :  { %v2471_v11 = vadd.f32 %v3328_v57, %v2470_v10  ;;  %v3833_v43 = vpop.f32.mrb[86].mxu1 }
 0xbe1   :  { %v2482_v12 = vadd.f32 %v3833_v43, %v3328_v57  ;;  %v2473_v13 = vpop.f32.mrb[87].mxu1  ;;  %v2523_v15 = vmax.f32 %v2479_v9, 0.0 }
 0xbe2   :  { %v2474_v14 = vadd.f32 %v3328_v57, %v2473_v13  ;;  %v2521_v17 = vmax.f32 %v2471_v11, 0.0 }
 0xbe3   :  { %v2524_v16 = vmax.f32 %v2482_v12, 0.0 }
 0xbe4   :  { %v2522_v18 = vmax.f32 %v2474_v14, 0.0 }
 0xbe5   :  { %v2536_v19 = vpack.c.bf16 %v2524_v16, %v2523_v15 }
 0xbe6   :  { %v2535_v20 = vpack.c.bf16 %v2522_v18, %v2521_v17 }
 0xbe8   :  { %3848 = vmatprep.mubr.msk.bf16.mxu0 %vm2391_vm3, %v2535_v20 }
 0xbe9   :  { %3849 = vmatmul.mubr.msk.bf16.gmra.mrb[100].mxu0 %vm2391_vm3, %v2536_v19 }
 0xbee   :  { %v3836_v21 = vpop.f32.mrb[88].mxu1 }
 0xbef   :  { %v2495_v22 = vadd.f32 %v3836_v21, %v3328_v57  ;;  %v2486_v23 = vpop.f32.mrb[89].mxu1 }
 0xbf0   :  { %v2487_v24 = vadd.f32 %v3328_v57, %v2486_v23  ;;  %v3837_v25 = vpop.f32.mrb[90].mxu1 }
 0xbf1   :  { %v2498_v26 = vadd.f32 %v3837_v25, %v3328_v57  ;;  %v2489_v27 = vpop.f32.mrb[91].mxu1  ;;  %v2527_v29 = vmax.f32 %v2495_v22, 0.0 }
 0xbf2   :  { %v2490_v28 = vadd.f32 %v3328_v57, %v2489_v27  ;;  %v2525_v31 = vmax.f32 %v2487_v24, 0.0 }
 0xbf3   :  { %v2528_v30 = vmax.f32 %v2498_v26, 0.0 }
 0xbf4   :  { %v2526_v32 = vmax.f32 %v2490_v28, 0.0  ;;  %v2837_v28 = vld [vmem:[#allocation36] sm:$0x3] }
 0xbf5   :  { %v2538_v33 = vpack.c.bf16 %v2528_v30, %v2527_v29  ;;  %3917 = vmatprep.subr.msk.bf16.mxu0 %vm2870_vm4, %v2837_v28  ;;  %v2872_v29 = vsel %vm2870_vm4, %v2837_v28, 0  ;;  %v3346_v30 = vld [vmem:[#allocation34] ss:$0 sm:$0xff]  ;;  %v3355_v28 = vld [vmem:[#allocation37] ss:$0 sm:$0xff] }
 0xbf6   :  { %v2537_v34 = vpack.c.bf16 %v2526_v32, %v2525_v31  ;;  %3879 = vmatpush3.bf16.msra.mxu0 %v2872_v29 }
 0xbf8   :  { %3852 = vmatprep.mubr.msk.bf16.mxu0 %vm2391_vm3, %v2537_v34 }
 0xbf9   :  { %3853 = vmatmul.mubr.msk.bf16.gmra.mrb[104].mxu0 %vm2391_vm3, %v2538_v33 }
 0xbfe   :  { %v3840_v35 = vpop.f32.mrb[92].mxu1 }
 0xbff   :  { %v2511_v36 = vadd.f32 %v3840_v35, %v3328_v57  ;;  %v2502_v37 = vpop.f32.mrb[93].mxu1 }
 0xc00   :  { %v2503_v38 = vadd.f32 %v3328_v57, %v2502_v37  ;;  %v3841_v39 = vpop.f32.mrb[94].mxu1 }
 0xc01   :  { %v2514_v40 = vadd.f32 %v3841_v39, %v3328_v57  ;;  %v2505_v41 = vpop.f32.mrb[95].mxu1  ;;  %v2531_v44 = vmax.f32 %v2511_v36, 0.0 }
 0xc02   :  { %v2506_v42 = vadd.f32 %v3328_v57, %v2505_v41  ;;  %v2529_v46 = vmax.f32 %v2503_v38, 0.0 }
 0xc03   :  { %v2532_v45 = vmax.f32 %v2514_v40, 0.0 }
 0xc04   :  { %v2530_v47 = vmax.f32 %v2506_v42, 0.0 }
 0xc05   :  { %v2540_v48 = vpack.c.bf16 %v2532_v45, %v2531_v44 }
 0xc06   :  { %v2539_v49 = vpack.c.bf16 %v2530_v47, %v2529_v46 }
 0xc08   :  { %3856 = vmatprep.mubr.msk.bf16.mxu0 %vm2391_vm3, %v2539_v49 }
 0xc09   :  { %3857 = vmatmul.mubr.msk.bf16.gmra.mrb[108].mxu0 %vm2391_vm3, %v2540_v48 }
 0xcac   :  { %v3846_v52 = vpop.f32.mrb[96].mxu0 }
 0xcad   :  { %v2610_v54 = vpop.f32.mrb[97].mxu0  ;;  %v2619_v56 = vadd.f32 %v3846_v52, %v3337_v53 }
 0xcae   :  { %v3847_v55 = vpop.f32.mrb[98].mxu0  ;;  %v2611_v59 = vadd.f32 %v3337_v53, %v2610_v54 }
 0xcaf   :  { %v2622_v57 = vadd.f32 %v3847_v55, %v3337_v53  ;;  %v2613_v58 = vpop.f32.mrb[99].mxu0 }
 0xcb0   :  { %v2614_v60 = vadd.f32 %v3337_v53, %v2613_v58 }
 0xcb1   :  { %v2674_v61 = vpack.c.bf16 %v2622_v57, %v2619_v56 }
 0xcb2   :  { %v2673_v62 = vpack.c.bf16 %v2614_v60, %v2611_v59 }
 0xcb4   :  { %3862 = vmatprep.mubr.msk.bf16.mxu1 %vm2391_vm3, %v2673_v62 }
 0xcb5   :  { %3863 = vmatmul.mubr.msk.bf16.vlgmr.msra.gmra.mrb[96].mxu1 %vm2391_vm3, %v2674_v61 }
 0xcbc   :  { %v3850_v63 = vpop.f32.mrb[100].mxu0 }
 0xcbd   :  { %v2626_v0 = vpop.f32.mrb[101].mxu0  ;;  %v2635_v2 = vadd.f32 %v3850_v63, %v3337_v53 }
 0xcbe   :  { %v3851_v1 = vpop.f32.mrb[102].mxu0  ;;  %v2627_v5 = vadd.f32 %v3337_v53, %v2626_v0 }
 0xcbf   :  { %v2638_v3 = vadd.f32 %v3851_v1, %v3337_v53  ;;  %v2629_v4 = vpop.f32.mrb[103].mxu0 }
 0xcc0   :  { %v2630_v6 = vadd.f32 %v3337_v53, %v2629_v4 }
 0xcc1   :  { %v2676_v7 = vpack.c.bf16 %v2638_v3, %v2635_v2 }
 0xcc2   :  { %v2675_v8 = vpack.c.bf16 %v2630_v6, %v2627_v5 }
 0xcc4   :  { %3866 = vmatprep.mubr.msk.bf16.mxu1 %vm2391_vm3, %v2675_v8 }
 0xcc5   :  { %3867 = vmatmul.mubr.msk.bf16.gmra.mrb[100].mxu1 %vm2391_vm3, %v2676_v7 }
 0xccc   :  { %v3854_v9 = vpop.f32.mrb[104].mxu0 }
 0xccd   :  { %v2642_v10 = vpop.f32.mrb[105].mxu0  ;;  %v2651_v43 = vadd.f32 %v3854_v9, %v3337_v53 }
 0xcce   :  { %v3855_v11 = vpop.f32.mrb[106].mxu0  ;;  %v2643_v14 = vadd.f32 %v3337_v53, %v2642_v10 }
 0xccf   :  { %v2654_v12 = vadd.f32 %v3855_v11, %v3337_v53  ;;  %v2645_v13 = vpop.f32.mrb[107].mxu0 }
 0xcd0   :  { %v2646_v15 = vadd.f32 %v3337_v53, %v2645_v13 }
 0xcd1   :  { %v2678_v16 = vpack.c.bf16 %v2654_v12, %v2651_v43 }
 0xcd2   :  { %v2677_v17 = vpack.c.bf16 %v2646_v15, %v2643_v14 }
 0xcd4   :  { %3870 = vmatprep.mubr.msk.bf16.mxu1 %vm2391_vm3, %v2677_v17 }
 0xcd5   :  { %3871 = vmatmul.mubr.msk.bf16.gmra.mrb[104].mxu1 %vm2391_vm3, %v2678_v16 }
 0xcdc   :  { %v3858_v18 = vpop.f32.mrb[108].mxu0 }
 0xcdd   :  { %v2658_v19 = vpop.f32.mrb[109].mxu0  ;;  %v2667_v21 = vadd.f32 %v3858_v18, %v3337_v53 }
 0xcde   :  { %v3859_v20 = vpop.f32.mrb[110].mxu0  ;;  %v2659_v24 = vadd.f32 %v3337_v53, %v2658_v19 }
 0xcdf   :  { %v2670_v22 = vadd.f32 %v3859_v20, %v3337_v53  ;;  %v2661_v23 = vpop.f32.mrb[111].mxu0 }
 0xce0   :  { %v2662_v25 = vadd.f32 %v3337_v53, %v2661_v23  ;;  %v4719_v23 = vmov 65535  }
 0xce1   :  { %v2680_v26 = vpack.c.bf16 %v2670_v22, %v2667_v21 }
 0xce2   :  { %v2679_v27 = vpack.c.bf16 %v2662_v25, %v2659_v24  ;;  %v3029_v24 = vsel %vm3028_vm6, 4294967295, %v4719_v23  ;;  %v2995_v25 = vld [vmem:[#allocation39] sm:$0x3] }
 0xce4   :  { %3874 = vmatprep.mubr.msk.bf16.mxu1 %vm2391_vm3, %v2679_v27 }
 0xce5   :  { %3875 = vmatmul.mubr.msk.bf16.gmra.mrb[108].mxu1 %vm2391_vm3, %v2680_v26  ;;  %v3030_v26 = vsel %vm2870_vm4, %v3029_v24, 0 }
 0xce6   :  { %v3032_v27 = vand.u32 %v3030_v26, %v2995_v25 }
 0xce8   :  { %3896 = vmatprep.subr.bf16.mxu1 %v3032_v27 }
 0xce9   :  { %3897 = vmatpush3.bf16.msra.mxu1 %v3032_v27 }
 0xd88   :  { %v3864_v31 = vpop.f32.mrb[96].mxu1 }
 0xd89   :  { %v2759_v32 = vadd.f32 %v3864_v31, %v3346_v30  ;;  %v2750_v33 = vpop.f32.mrb[97].mxu1 }
 0xd8a   :  { %v2751_v34 = vadd.f32 %v3346_v30, %v2750_v33  ;;  %v3865_v35 = vpop.f32.mrb[98].mxu1 }
 0xd8b   :  { %v2762_v36 = vadd.f32 %v3865_v35, %v3346_v30  ;;  %v2753_v37 = vpop.f32.mrb[99].mxu1  ;;  %v2815_v39 = vmax.f32 %v2759_v32, 0.0 }
 0xd8c   :  { %v2754_v38 = vadd.f32 %v3346_v30, %v2753_v37  ;;  %v2813_v41 = vmax.f32 %v2751_v34, 0.0 }
 0xd8d   :  { %v2816_v40 = vmax.f32 %v2762_v36, 0.0 }
 0xd8e   :  { %v2814_v42 = vmax.f32 %v2754_v38, 0.0 }
 0xd8f   :  { %v2830_v44 = vpack.c.bf16 %v2816_v40, %v2815_v39 }
 0xd90   :  { %v2829_v45 = vpack.c.bf16 %v2814_v42, %v2813_v41 }
 0xd92   :  { %3880 = vmatprep.mubr.msk.bf16.mxu0 %vm2845_vm5, %v2829_v45 }
 0xd93   :  { %3881 = vmatmul.mubr.msk.bf16.vlgmr.msra.gmra.mrb[112].mxu0 %vm2845_vm5, %v2830_v44 }
 0xd98   :  { %v3868_v46 = vpop.f32.mrb[100].mxu1 }
 0xd99   :  { %v2775_v47 = vadd.f32 %v3868_v46, %v3346_v30  ;;  %v2766_v48 = vpop.f32.mrb[101].mxu1 }
 0xd9a   :  { %v2767_v49 = vadd.f32 %v3346_v30, %v2766_v48  ;;  %v3869_v50 = vpop.f32.mrb[102].mxu1 }
 0xd9b   :  { %v2778_v51 = vadd.f32 %v3869_v50, %v3346_v30  ;;  %v2769_v52 = vpop.f32.mrb[103].mxu1  ;;  %v2819_v54 = vmax.f32 %v2775_v47, 0.0 }
 0xd9c   :  { %v2770_v53 = vadd.f32 %v3346_v30, %v2769_v52  ;;  %v2817_v56 = vmax.f32 %v2767_v49, 0.0 }
 0xd9d   :  { %v2820_v55 = vmax.f32 %v2778_v51, 0.0 }
 0xd9e   :  { %v2818_v57 = vmax.f32 %v2770_v53, 0.0 }
 0xd9f   :  { %v2832_v58 = vpack.c.bf16 %v2820_v55, %v2819_v54 }
 0xda0   :  { %v2831_v59 = vpack.c.bf16 %v2818_v57, %v2817_v56 }
 0xda2   :  { %3884 = vmatprep.mubr.msk.bf16.mxu0 %vm2845_vm5, %v2831_v59 }
 0xda3   :  { %3885 = vmatmul.mubr.msk.bf16.gmra.mrb[116].mxu0 %vm2845_vm5, %v2832_v58 }
 0xda8   :  { %v3872_v60 = vpop.f32.mrb[104].mxu1 }
 0xda9   :  { %v2791_v61 = vadd.f32 %v3872_v60, %v3346_v30  ;;  %v2782_v62 = vpop.f32.mrb[105].mxu1 }
 0xdaa   :  { %v2783_v63 = vadd.f32 %v3346_v30, %v2782_v62  ;;  %v3873_v0 = vpop.f32.mrb[106].mxu1 }
 0xdab   :  { %v2794_v1 = vadd.f32 %v3873_v0, %v3346_v30  ;;  %v2785_v2 = vpop.f32.mrb[107].mxu1  ;;  %v2823_v4 = vmax.f32 %v2791_v61, 0.0 }
 0xdac   :  { %v2786_v3 = vadd.f32 %v3346_v30, %v2785_v2  ;;  %v2821_v6 = vmax.f32 %v2783_v63, 0.0 }
 0xdad   :  { %v2824_v5 = vmax.f32 %v2794_v1, 0.0 }
 0xdae   :  { %v2822_v7 = vmax.f32 %v2786_v3, 0.0 }
 0xdaf   :  { %v2834_v8 = vpack.c.bf16 %v2824_v5, %v2823_v4 }
 0xdb0   :  { %v2833_v9 = vpack.c.bf16 %v2822_v7, %v2821_v6 }
 0xdb2   :  { %3888 = vmatprep.mubr.msk.bf16.mxu0 %vm2845_vm5, %v2833_v9 }
 0xdb3   :  { %3889 = vmatmul.mubr.msk.bf16.gmra.mrb[120].mxu0 %vm2845_vm5, %v2834_v8 }
 0xdb8   :  { %v3876_v10 = vpop.f32.mrb[108].mxu1 }
 0xdb9   :  { %v2807_v11 = vadd.f32 %v3876_v10, %v3346_v30  ;;  %v2798_v43 = vpop.f32.mrb[109].mxu1 }
 0xdba   :  { %v2799_v12 = vadd.f32 %v3346_v30, %v2798_v43  ;;  %v3877_v13 = vpop.f32.mrb[110].mxu1 }
 0xdbb   :  { %v2810_v14 = vadd.f32 %v3877_v13, %v3346_v30  ;;  %v2801_v15 = vpop.f32.mrb[111].mxu1  ;;  %v2827_v17 = vmax.f32 %v2807_v11, 0.0 }
 0xdbc   :  { %v2802_v16 = vadd.f32 %v3346_v30, %v2801_v15  ;;  %v2825_v19 = vmax.f32 %v2799_v12, 0.0 }
 0xdbd   :  { %v2828_v18 = vmax.f32 %v2810_v14, 0.0 }
 0xdbe   :  { %v2826_v20 = vmax.f32 %v2802_v16, 0.0 }
 0xdbf   :  { %v2836_v21 = vpack.c.bf16 %v2828_v18, %v2827_v17 }
 0xdc0   :  { %v2835_v22 = vpack.c.bf16 %v2826_v20, %v2825_v19 }
 0xdc2   :  { %3892 = vmatprep.mubr.msk.bf16.mxu0 %vm2845_vm5, %v2835_v22 }
 0xdc3   :  { %3893 = vmatmul.mubr.msk.bf16.gmra.mrb[124].mxu0 %vm2845_vm5, %v2836_v21  ;;  %v3364_v21 = vld [vmem:[#allocation40] ss:$0 sm:$0xff] }
 0xe66   :  { %v3882_v29 = vpop.f32.mrb[112].mxu0 }
 0xe67   :  { %v2917_v30 = vadd.f32 %v3882_v29, %v3355_v28  ;;  %v2908_v31 = vpop.f32.mrb[113].mxu0 }
 0xe68   :  { %v2909_v32 = vadd.f32 %v3355_v28, %v2908_v31  ;;  %v3883_v33 = vpop.f32.mrb[114].mxu0 }
 0xe69   :  { %v2920_v34 = vadd.f32 %v3883_v33, %v3355_v28  ;;  %v2911_v35 = vpop.f32.mrb[115].mxu0  ;;  %v2973_v37 = vmax.f32 %v2917_v30, 0.0 }
 0xe6a   :  { %v2912_v36 = vadd.f32 %v3355_v28, %v2911_v35  ;;  %v2971_v39 = vmax.f32 %v2909_v32, 0.0 }
 0xe6b   :  { %v2974_v38 = vmax.f32 %v2920_v34, 0.0 }
 0xe6c   :  { %v2972_v40 = vmax.f32 %v2912_v36, 0.0 }
 0xe6d   :  { %v2988_v41 = vpack.c.bf16 %v2974_v38, %v2973_v37 }
 0xe6e   :  { %v2987_v42 = vpack.c.bf16 %v2972_v40, %v2971_v39 }
 0xe70   :  { %3898 = vmatprep.mubr.msk.bf16.mxu1 %vm3003_vm7, %v2987_v42 }
 0xe71   :  { %3899 = vmatmul.mubr.msk.bf16.vlgmr.msra.gmra.mrb[112].mxu1 %vm3003_vm7, %v2988_v41 }
 0xe76   :  { %v3886_v44 = vpop.f32.mrb[116].mxu0 }
 0xe77   :  { %v2933_v45 = vadd.f32 %v3886_v44, %v3355_v28  ;;  %v2924_v46 = vpop.f32.mrb[117].mxu0 }
 0xe78   :  { %v2925_v47 = vadd.f32 %v3355_v28, %v2924_v46  ;;  %v3887_v48 = vpop.f32.mrb[118].mxu0 }
 0xe79   :  { %v2936_v49 = vadd.f32 %v3887_v48, %v3355_v28  ;;  %v2927_v50 = vpop.f32.mrb[119].mxu0  ;;  %v2977_v52 = vmax.f32 %v2933_v45, 0.0 }
 0xe7a   :  { %v2928_v51 = vadd.f32 %v3355_v28, %v2927_v50  ;;  %v2975_v54 = vmax.f32 %v2925_v47, 0.0 }
 0xe7b   :  { %v2978_v53 = vmax.f32 %v2936_v49, 0.0 }
 0xe7c   :  { %v2976_v55 = vmax.f32 %v2928_v51, 0.0 }
 0xe7d   :  { %v2990_v56 = vpack.c.bf16 %v2978_v53, %v2977_v52 }
 0xe7e   :  { %v2989_v57 = vpack.c.bf16 %v2976_v55, %v2975_v54 }
 0xe80   :  { %3902 = vmatprep.mubr.msk.bf16.mxu1 %vm3003_vm7, %v2989_v57 }
 0xe81   :  { %3903 = vmatmul.mubr.msk.bf16.gmra.mrb[116].mxu1 %vm3003_vm7, %v2990_v56 }
 0xe86   :  { %v3890_v58 = vpop.f32.mrb[120].mxu0 }
 0xe87   :  { %v2949_v59 = vadd.f32 %v3890_v58, %v3355_v28  ;;  %v2940_v60 = vpop.f32.mrb[121].mxu0 }
 0xe88   :  { %v2941_v61 = vadd.f32 %v3355_v28, %v2940_v60  ;;  %v3891_v62 = vpop.f32.mrb[122].mxu0 }
 0xe89   :  { %v2952_v63 = vadd.f32 %v3891_v62, %v3355_v28  ;;  %v2943_v0 = vpop.f32.mrb[123].mxu0  ;;  %v2981_v2 = vmax.f32 %v2949_v59, 0.0 }
 0xe8a   :  { %v2944_v1 = vadd.f32 %v3355_v28, %v2943_v0  ;;  %v2979_v4 = vmax.f32 %v2941_v61, 0.0 }
 0xe8b   :  { %v2982_v3 = vmax.f32 %v2952_v63, 0.0 }
 0xe8c   :  { %v2980_v5 = vmax.f32 %v2944_v1, 0.0 }
 0xe8d   :  { %v2992_v6 = vpack.c.bf16 %v2982_v3, %v2981_v2 }
 0xe8e   :  { %v2991_v7 = vpack.c.bf16 %v2980_v5, %v2979_v4 }
 0xe90   :  { %3906 = vmatprep.mubr.msk.bf16.mxu1 %vm3003_vm7, %v2991_v7 }
 0xe91   :  { %3907 = vmatmul.mubr.msk.bf16.gmra.mrb[120].mxu1 %vm3003_vm7, %v2992_v6 }
 0xe96   :  { %v3894_v8 = vpop.f32.mrb[124].mxu0 }
 0xe97   :  { %v2965_v9 = vadd.f32 %v3894_v8, %v3355_v28  ;;  %v2956_v10 = vpop.f32.mrb[125].mxu0 }
 0xe98   :  { %v2957_v11 = vadd.f32 %v3355_v28, %v2956_v10  ;;  %v3895_v43 = vpop.f32.mrb[126].mxu0 }
 0xe99   :  { %v2968_v12 = vadd.f32 %v3895_v43, %v3355_v28  ;;  %v2959_v13 = vpop.f32.mrb[127].mxu0  ;;  %v2985_v15 = vmax.f32 %v2965_v9, 0.0 }
 0xe9a   :  { %v2960_v14 = vadd.f32 %v3355_v28, %v2959_v13  ;;  %v2983_v17 = vmax.f32 %v2957_v11, 0.0 }
 0xe9b   :  { %v2986_v16 = vmax.f32 %v2968_v12, 0.0 }
 0xe9c   :  { %v2984_v18 = vmax.f32 %v2960_v14, 0.0 }
 0xe9d   :  { %v2994_v19 = vpack.c.bf16 %v2986_v16, %v2985_v15 }
 0xe9e   :  { %v2993_v20 = vpack.c.bf16 %v2984_v18, %v2983_v17 }
 0xea0   :  { %3910 = vmatprep.mubr.msk.bf16.mxu1 %vm3003_vm7, %v2993_v20 }
 0xea1   :  { %3911 = vmatmul.mubr.msk.bf16.gmra.mrb[124].mxu1 %vm3003_vm7, %v2994_v19 }
 0xf44   :  { %v3900_v22 = vpop.f32.mrb[112].mxu1 }
 0xf45   :  { %v3077_v23 = vadd.f32 %v3900_v22, %v3364_v21  ;;  %v3068_v24 = vpop.f32.mrb[113].mxu1 }
 0xf46   :  { %v3069_v25 = vadd.f32 %v3364_v21, %v3068_v24  ;;  %v3901_v26 = vpop.f32.mrb[114].mxu1 }
 0xf47   :  { %3133 = vst [vmem:[%s4883_s19 + $0x10] sm:$0xff] %v3077_v23  ;;  %v3080_v27 = vadd.f32 %v3901_v26, %v3364_v21  ;;  %v3071_v28 = vpop.f32.mrb[115].mxu1 }
 0xf48   :  { %3131 = vst [vmem:[%s4883_s19] sm:$0xff] %v3069_v25  ;;  %v3072_v29 = vadd.f32 %v3364_v21, %v3071_v28 }
 0xf49   :  { %3134 = vst [vmem:[%s4883_s19 + $0x18] sm:$0xff] %v3080_v27 }
 0xf4a   :  { %3132 = vst [vmem:[%s4883_s19 + $0x8] sm:$0xff] %v3072_v29 }
 0xf54   :  { %v3904_v30 = vpop.f32.mrb[116].mxu1 }
 0xf55   :  { %v3093_v31 = vadd.f32 %v3904_v30, %v3364_v21  ;;  %v3084_v32 = vpop.f32.mrb[117].mxu1 }
 0xf56   :  { %v3085_v33 = vadd.f32 %v3364_v21, %v3084_v32  ;;  %v3905_v34 = vpop.f32.mrb[118].mxu1 }
 0xf57   :  { %3137 = vst [vmem:[%s4883_s19 + $0x30] sm:$0xff] %v3093_v31  ;;  %v3096_v35 = vadd.f32 %v3905_v34, %v3364_v21  ;;  %v3087_v36 = vpop.f32.mrb[119].mxu1 }
 0xf58   :  { %3135 = vst [vmem:[%s4883_s19 + $0x20] sm:$0xff] %v3085_v33  ;;  %v3088_v37 = vadd.f32 %v3364_v21, %v3087_v36 }
 0xf59   :  { %3138 = vst [vmem:[%s4883_s19 + $0x38] sm:$0xff] %v3096_v35 }
 0xf5a   :  { %3136 = vst [vmem:[%s4883_s19 + $0x28] sm:$0xff] %v3088_v37 }
 0xf64   :  { %v3908_v38 = vpop.f32.mrb[120].mxu1 }
 0xf65   :  { %v3109_v39 = vadd.f32 %v3908_v38, %v3364_v21  ;;  %v3100_v40 = vpop.f32.mrb[121].mxu1 }
 0xf66   :  { %v3101_v41 = vadd.f32 %v3364_v21, %v3100_v40  ;;  %v3909_v42 = vpop.f32.mrb[122].mxu1 }
 0xf67   :  { %3141 = vst [vmem:[%s4883_s19 + $0x50] sm:$0xff] %v3109_v39  ;;  %v3112_v44 = vadd.f32 %v3909_v42, %v3364_v21  ;;  %v3103_v45 = vpop.f32.mrb[123].mxu1 }
 0xf68   :  { %3139 = vst [vmem:[%s4883_s19 + $0x40] sm:$0xff] %v3101_v41  ;;  %v3104_v46 = vadd.f32 %v3364_v21, %v3103_v45 }
 0xf69   :  { %3142 = vst [vmem:[%s4883_s19 + $0x58] sm:$0xff] %v3112_v44 }
 0xf6a   :  { %3140 = vst [vmem:[%s4883_s19 + $0x48] sm:$0xff] %v3104_v46 }
 0xf74   :  { %v3912_v47 = vpop.f32.mrb[124].mxu1 }
 0xf75   :  { %v3125_v48 = vadd.f32 %v3912_v47, %v3364_v21  ;;  %v3116_v49 = vpop.f32.mrb[125].mxu1 }
 0xf76   :  { %v3117_v50 = vadd.f32 %v3364_v21, %v3116_v49  ;;  %v3913_v51 = vpop.f32.mrb[126].mxu1 }
 0xf77   :  { %3145 = vst [vmem:[%s4883_s19 + $0x70] sm:$0xff] %v3125_v48  ;;  %v3128_v52 = vadd.f32 %v3913_v51, %v3364_v21  ;;  %v3119_v53 = vpop.f32.mrb[127].mxu1 }
 0xf78   :  { %3143 = vst [vmem:[%s4883_s19 + $0x60] sm:$0xff] %v3117_v50  ;;  %v3120_v54 = vadd.f32 %v3364_v21, %v3119_v53 }
 0xf79   :  { %3146 = vst [vmem:[%s4883_s19 + $0x78] sm:$0xff] %v3128_v52 }
 0xf7a   :  { %3144 = vst [vmem:[%s4883_s19 + $0x68] sm:$0xff] %v3120_v54 }
 0xf7b   :  { %3151 = vsyncpa [#allocation3], 1 }
 0xf7c   :  { %3152 = vsyncpa [#allocation5], 1 }
 0xf7d   :  { %3153 = vsyncpa [#allocation8], 1 }
 0xf7e   :  { %3154 = vsyncpa [#allocation11], 1 }
 0xf7f   :  { %3155 = vsyncpa [#allocation14], 1 }
 0xf80   :  { %3156 = vsyncpa [#allocation17], 1 }
 0xf81   :  { %3157 = vsyncpa [#allocation20], 1 }
 0xf82   :  { %3158 = vsyncpa [#allocation23], 1 }
 0xf83   :  { %3159 = vsyncpa [#allocation26], 1 }
 0xf84   :  { %3160 = vsyncpa [#allocation29], 1 }
 0xf85   :  { %3161 = vsyncpa [#allocation32], 1 }
 0xf86   :  { %3162 = vsyncpa [#allocation35], 1 }
 0xf87   :  { %3163 = vsyncpa [#allocation38], 1 }
 0xf88   :  { %3164 = vsyncpa [#allocation41], 1 }

</bundles_post_ra>
